<compile_context>
chip_gen: v7x
topology: tpu7x:2x2x1
jax: 0.10.0
libtpu: 0.0.40
codegen_flags: <defaults>
</compile_context>

<pallas_src>
import math
import functools

import jax
import jax.numpy as jnp
from jax import lax
from jax.experimental import pallas as pl
from jax.experimental.pallas import tpu as pltpu

NEG_INF = -1e9
LN_EPS = 1e-5

# ----------------------------------------------------------------------------
# Packed weight-slab layout (shared between init and kernel)
# ----------------------------------------------------------------------------
_MAT_NAMES = ("wq_sa", "wk_sa", "wv_sa", "wo_sa",
              "wq_ca", "wk_ca", "wv_ca", "wo_ca", "w1", "w2")
_VEC_NAMES = ("bq_sa", "bk_sa", "bv_sa", "bo_sa", "ln1_g", "ln1_b",
              "bq_ca", "bk_ca", "bv_ca", "bo_ca", "ln2_g", "ln2_b",
              "b1", "b2", "ln3_g", "ln3_b")


def _round8(x):
    return ((x + 7) // 8) * 8


def _mat_layout(D, F):
    """name -> (row0, nrows, ncols) inside the per-layer matrix slab."""
    shapes = {n: (D, D) for n in _MAT_NAMES[:8]}
    shapes["w1"] = (D, F)
    shapes["w2"] = (F, D)
    offs, r = {}, 0
    for n in _MAT_NAMES:
        nr, nc = shapes[n]
        offs[n] = (r, nr, nc)
        r += _round8(nr)
    return offs, r


def _vec_layout(D, F):
    """name -> (row, width) inside the per-layer bias/LN slab."""
    return {n: (i, F if n == "b1" else D) for i, n in enumerate(_VEC_NAMES)}


# ----------------------------------------------------------------------------
# The single fused Pallas kernel
# ----------------------------------------------------------------------------
def _fused_model_kernel(emb_ref, mask_ref, src_ref, convw_ref, membias_ref,
                        wslab_ref, vslab_ref, fcw_ref, fcb_ref, o_ref,
                        *, nhead, dim_FF, num_layers, eps):
    f32, bf16 = jnp.float32, jnp.bfloat16
    T, D = emb_ref.shape[1], emb_ref.shape[2]
    F = dim_FF
    dh = D // nhead
    scale = 1.0 / math.sqrt(dh)
    moffs, _ = _mat_layout(D, F)
    vlay = _vec_layout(D, F)

    # ---- encoder tail: 1x1 conv == matmul; (conv bias + PE2D) fused operand --
    mem32 = (jnp.dot(src_ref[0], convw_ref[...], preferred_element_type=f32)
             + membias_ref[...])                       # (S, D) f32
    mem = mem32.astype(bf16)

    h = emb_ref[0].astype(f32)                         # (T, D) residual stream (f32)
    self_mask = mask_ref[0]                            # (T, T) additive causal+pad

    # Per-head 0/1 lane masks built once with iota (no dh-wide lane slices).
    lane = lax.broadcasted_iota(jnp.int32, (1, D), 1)
    head_masks = [((lane >= hd * dh) & (lane < (hd + 1) * dh)).astype(bf16)
                  for hd in range(nhead)]

    def layer_norm(x, g, b):
        mu = jnp.mean(x, axis=-1, keepdims=True)
        var = jnp.mean(jnp.square(x - mu), axis=-1, keepdims=True)
        return (x - mu) * lax.rsqrt(var + eps) * g + b

    def mha(q32, k, v, add_mask):
        # Heads via full-width masked matmuls (masked channels contribute 0),
        # accumulated into a full (T, D) output -> no slicing / concat.
        q = q32.astype(bf16)
        out = None
        for hm in head_masks:
            s = lax.dot_general(q * hm, k, (((1,), (1,)), ((), ())),
                                preferred_element_type=f32) * scale
            if add_mask is not None:
                s = s + add_mask
            s = s - jnp.max(s, axis=-1, keepdims=True)
            p = jnp.exp(s)
            p = p * pl.reciprocal(jnp.sum(p, axis=-1, keepdims=True), approx=True)
            oh = jnp.dot(p.astype(bf16), v * hm, preferred_element_type=f32)
            out = oh if out is None else out + oh
        return out

    # ---- decoder stack (static unrolled, post-LN, dropout == identity) -------
    for l in range(num_layers):
        def W(name, _l=l):
            r0, nr, nc = moffs[name]
            return wslab_ref[_l, r0:r0 + nr, 0:nc]        # bf16

        def V(name, _l=l):
            r, nc = vlay[name]
            return vslab_ref[_l, r:r + 1, 0:nc]           # f32 (1, nc)

        # self-attention + add & norm
        hb = h.astype(bf16)
        q = jnp.dot(hb, W("wq_sa"), preferred_element_type=f32) + V("bq_sa")
        k = (jnp.dot(hb, W("wk_sa"), preferred_element_type=f32) + V("bk_sa")).astype(bf16)
        v = (jnp.dot(hb, W("wv_sa"), preferred_element_type=f32) + V("bv_sa")).astype(bf16)
        sa = mha(q, k, v, self_mask)
        sa = jnp.dot(sa.astype(bf16), W("wo_sa"), preferred_element_type=f32) + V("bo_sa")
        h = layer_norm(h + sa, V("ln1_g"), V("ln1_b"))

        # cross-attention (no memory mask) + add & norm
        hb = h.astype(bf16)
        qc = jnp.dot(hb, W("wq_ca"), preferred_element_type=f32) + V("bq_ca")
        kc = (jnp.dot(mem, W("wk_ca"), preferred_element_type=f32) + V("bk_ca")).astype(bf16)
        vc = (jnp.dot(mem, W("wv_ca"), preferred_element_type=f32) + V("bv_ca")).astype(bf16)
        ca = mha(qc, kc, vc, None)
        ca = jnp.dot(ca.astype(bf16), W("wo_ca"), preferred_element_type=f32) + V("bo_ca")
        h = layer_norm(h + ca, V("ln2_g"), V("ln2_b"))

        # feed-forward + add & norm
        f = jnp.dot(h.astype(bf16), W("w1"), preferred_element_type=f32) + V("b1")
        f = jnp.maximum(f, 0.0)
        f = jnp.dot(f.astype(bf16), W("w2"), preferred_element_type=f32) + V("b2")
        h = layer_norm(h + f, V("ln3_g"), V("ln3_b"))

    # ---- fc_out: lane-dense 128-padded vocab output --------------------------
    logits = jnp.dot(h.astype(bf16), fcw_ref[...], preferred_element_type=f32) + fcb_ref[...]
    o_ref[0] = logits.astype(o_ref.dtype)


def fused_model(emb, self_mask, src_tok, conv_w, mem_bias, w_slab, v_slab,
                fc_w, fc_b, *, nhead, dim_FF, num_layers):
    B, T, D = emb.shape
    S, C = src_tok.shape[1], src_tok.shape[2]
    Vpad = fc_w.shape[1]
    kern = functools.partial(_fused_model_kernel, nhead=nhead, dim_FF=dim_FF,
                             num_layers=num_layers, eps=LN_EPS)
    return pl.pallas_call(
        kern,
        out_shape=jax.ShapeDtypeStruct((B, T, Vpad), jnp.float32),
        grid=(B,),
        in_specs=[
            pl.BlockSpec((1, T, D), lambda b: (b, 0, 0)),        # emb (+PE1D)
            pl.BlockSpec((1, T, T), lambda b: (b, 0, 0)),        # causal+pad mask
            pl.BlockSpec((1, S, C), lambda b: (b, 0, 0)),        # backbone tokens
            pl.BlockSpec(conv_w.shape, lambda b: (0, 0)),        # 1x1 conv weight
            pl.BlockSpec(mem_bias.shape, lambda b: (0, 0)),      # conv bias + PE2D
            pl.BlockSpec(w_slab.shape, lambda b: (0, 0, 0)),     # packed layer mats
            pl.BlockSpec(v_slab.shape, lambda b: (0, 0, 0)),     # packed layer vecs
            pl.BlockSpec(fc_w.shape, lambda b: (0, 0)),          # fc_out weight
            pl.BlockSpec(fc_b.shape, lambda b: (0, 0)),          # fc_out bias
        ],
        out_specs=pl.BlockSpec((1, T, Vpad), lambda b: (b, 0, 0)),
        compiler_params=pltpu.CompilerParams(
            dimension_semantics=("parallel",)),   # 2 TCs on v7x; cheap serial steps else
    )(emb, self_mask, src_tok, conv_w, mem_bias, w_slab, v_slab, fc_w, fc_b)


# ----------------------------------------------------------------------------
# Model glue (plain JAX): positional encodings, embedding gather, masks
# ----------------------------------------------------------------------------
def sinusoidal_pe_1d(length, d_model, temp=10000.0):
    pos = jnp.arange(length, dtype=jnp.float32)[:, None]
    idx = jnp.arange(0, d_model, 2, dtype=jnp.float32)
    div = jnp.exp(-jnp.log(temp) * idx / d_model)
    pe = jnp.zeros((length, d_model), jnp.float32)
    pe = pe.at[:, 0::2].set(jnp.sin(pos * div))
    pe = pe.at[:, 1::2].set(jnp.cos(pos * div))
    return pe


def sinusoidal_pe_2d(w, h, d_model, temp=10000.0):
    d_half = d_model // 2
    pe_w = sinusoidal_pe_1d(w, d_half, temp)
    pe_h = sinusoidal_pe_1d(h, d_half, temp)
    return jnp.concatenate(
        [jnp.broadcast_to(pe_w[:, None, :], (w, h, d_half)),
         jnp.broadcast_to(pe_h[None, :, :], (w, h, d_half))], axis=-1)


def model_forward(params, src_features, tgt, tgt_mask, *, d_model, nhead,
                  dim_FF, num_layers, vocab_size):
    D = d_model
    # src_features: densenet121 feature map, NCHW = (N, 1024, H, W).
    N, C, H, W = src_features.shape
    # Conv2d(1x1) -> Permute(0,3,2,1) -> PosEncode2D -> Flatten(1,2): tokens in
    # (w-major, h-minor) order; do the permute in XLA, everything else in-kernel.
    src_tok = jnp.transpose(src_features, (0, 3, 2, 1)).reshape(N, W * H, C)
    src_tok = src_tok.astype(jnp.bfloat16)
    mem_bias = sinusoidal_pe_2d(W, H, D).reshape(W * H, D) + params["conv_b"]

    B, T = tgt.shape
    emb = jnp.take(params["embedding"], tgt, axis=0) * math.sqrt(D)
    emb = emb + sinusoidal_pe_1d(T, D)[None]

    # Combined additive mask (causal/tgt_mask + key padding), one per batch.
    causal_add = jnp.where(tgt_mask, NEG_INF, 0.0).astype(jnp.float32)       # (T, T)
    pad_add = jnp.where(tgt == 0, NEG_INF, 0.0).astype(jnp.float32)          # (B, T)
    self_mask = causal_add[None, :, :] + pad_add[:, None, :]                 # (B, T, T)

    out = fused_model(emb, self_mask, src_tok, params["conv_w"], mem_bias,
                      params["w_slab"], params["v_slab"],
                      params["fc_w"], params["fc_b"],
                      nhead=nhead, dim_FF=dim_FF, num_layers=num_layers)
    return out[:, :, :vocab_size]


# ----------------------------------------------------------------------------
# Deterministic parameter init (xavier_uniform weights, zero bias, LN ones/zeros)
# packed into the slab layout the kernel expects.
# ----------------------------------------------------------------------------
def init_params(key, vocab_size, d_model, nhead, dim_FF, num_layers, in_ch=1024):
    D, F = d_model, dim_FF
    keys = iter(jax.random.split(key, 16 + 10 * num_layers))

    def xavier(shape):
        bound = math.sqrt(6.0 / (shape[0] + shape[1]))
        return jax.random.uniform(next(keys), shape, jnp.float32, -bound, bound)

    moffs, RW = _mat_layout(D, F)
    vlay = _vec_layout(D, F)
    WPAD = 128 * ((max(D, F) + 127) // 128)
    NV = _round8(len(_VEC_NAMES))

    w_slab = jnp.zeros((num_layers, RW, WPAD), jnp.float32)
    v_slab = jnp.zeros((num_layers, NV, WPAD), jnp.float32)
    for l in range(num_layers):
        for n in _MAT_NAMES:
            r0, nr, nc = moffs[n]
            w_slab = w_slab.at[l, r0:r0 + nr, 0:nc].set(xavier((nr, nc)))
        for n in ("ln1_g", "ln2_g", "ln3_g"):
            r, nc = vlay[n]
            v_slab = v_slab.at[l, r, 0:nc].set(1.0)     # LN gamma = 1, everything else 0

    vpad = 128 * ((vocab_size + 127) // 128)
    params = {
        "conv_w": xavier((in_ch, D)).astype(jnp.bfloat16),
        "conv_b": jnp.zeros((1, D), jnp.float32),
        "embedding": xavier((vocab_size, D)),
        "fc_w": jnp.pad(xavier((D, vocab_size)),
                        ((0, 0), (0, vpad - vocab_size))).astype(jnp.bfloat16),
        "fc_b": jnp.zeros((1, vpad), jnp.float32),
        "w_slab": w_slab.astype(jnp.bfloat16),
        "v_slab": v_slab,
    }
    return params


# ----------------------------------------------------------------------------
if __name__ == "__main__":
    vocab_size, d_model, nhead, dim_FF, dropout, num_layers = 50, 32, 4, 64, 0.0, 2
    B, T = 2, 8
    feat_h, feat_w = 4, 4

    key = jax.random.PRNGKey(0)
    k_src, k_tgt, k_par = jax.random.split(key, 3)

    # src = densenet121 backbone output feature map (N, 1024, h, w), NCHW
    src = jax.random.normal(k_src, (B, 1024, feat_h, feat_w), jnp.float32)
    # tgt tokens, 0 = padding (last two positions padded)
    tgt = jax.random.randint(k_tgt, (B, T), 1, vocab_size)
    tgt = tgt.at[:, T - 2:].set(0)
    # causal bool mask: True = not allowed to attend
    tgt_mask = jnp.triu(jnp.ones((T, T), jnp.bool_), k=1)

    params = init_params(k_par, vocab_size, d_model, nhead, dim_FF, num_layers)

    fwd = jax.jit(functools.partial(model_forward, d_model=d_model, nhead=nhead,
                                    dim_FF=dim_FF, num_layers=num_layers,
                                    vocab_size=vocab_size))
    out = fwd(params, src, tgt, tgt_mask)
    out = jax.block_until_ready(out)

    assert out.shape == (B, T, vocab_size), out.shape
    assert bool(jnp.all(jnp.isfinite(out)))
    print("KERNEL_OK")
</pallas_src>

<mosaic_0001>
module attributes {stable_mosaic.version = 11 : i64} {
  func.func @_fused_model_kernel(%arg0: i32, %arg1: memref<1x8x32xf32, #tpu.memory_space<vmem>>, %arg2: memref<1x8x8xf32, #tpu.memory_space<vmem>>, %arg3: memref<1x16x1024xbf16, #tpu.memory_space<vmem>>, %arg4: memref<1024x32xbf16, #tpu.memory_space<vmem>>, %arg5: memref<16x32xf32, #tpu.memory_space<vmem>>, %arg6: memref<2x352x128xbf16, #tpu.memory_space<vmem>>, %arg7: memref<2x16x128xf32, #tpu.memory_space<vmem>>, %arg8: memref<32x128xbf16, #tpu.memory_space<vmem>>, %arg9: memref<1x128xf32, #tpu.memory_space<vmem>>, %arg10: memref<1x8x128xf32, #tpu.memory_space<vmem>>) attributes {dimension_semantics = [#tpu.dimension_semantics<parallel>], iteration_bounds = array<i64: 2>, scalar_prefetch = 0 : i64, scratch_operands = 0 : i64, tpu.core_type = #tpu.core_type<tc>, window_params = [{transform_indices = @transform_0, window_bounds = array<i64: 1, 8, 32>}, {transform_indices = @transform_1, window_bounds = array<i64: 1, 8, 8>}, {transform_indices = @transform_2, window_bounds = array<i64: 1, 16, 1024>}, {pipeline_mode = #tpu.pipeline_mode<synchronous>, transform_indices = @transform_3, window_bounds = array<i64: 1024, 32>}, {pipeline_mode = #tpu.pipeline_mode<synchronous>, transform_indices = @transform_4, window_bounds = array<i64: 16, 32>}, {pipeline_mode = #tpu.pipeline_mode<synchronous>, transform_indices = @transform_5, window_bounds = array<i64: 2, 352, 128>}, {pipeline_mode = #tpu.pipeline_mode<synchronous>, transform_indices = @transform_6, window_bounds = array<i64: 2, 16, 128>}, {pipeline_mode = #tpu.pipeline_mode<synchronous>, transform_indices = @transform_7, window_bounds = array<i64: 32, 128>}, {pipeline_mode = #tpu.pipeline_mode<synchronous>, transform_indices = @transform_8, window_bounds = array<i64: 1, 128>}, {transform_indices = @transform_9, window_bounds = array<i64: 1, 8, 128>}]} {
    %c0 = arith.constant 0 : index
    %c0_0 = arith.constant 0 : index
    %c0_1 = arith.constant 0 : index
    %0 = vector.load %arg3[%c0, %c0_0, %c0_1] : memref<1x16x1024xbf16, #tpu.memory_space<vmem>>, vector<1x16x1024xbf16>
    %1 = vector.shape_cast %0 : vector<1x16x1024xbf16> to vector<16x1024xbf16>
    %c0_2 = arith.constant 0 : index
    %c0_3 = arith.constant 0 : index
    %2 = vector.load %arg4[%c0_2, %c0_3] : memref<1024x32xbf16, #tpu.memory_space<vmem>>, vector<1024x32xbf16>
    %cst = arith.constant dense<0.000000e+00> : vector<16x32xf32>
    %3 = tpu.matmul %1, %2, %cst {dimension_numbers = #tpu.dot_dimension_numbers<[1], [0], [0], [1], [0, 0, 1, 1], [], []>} : vector<16x1024xbf16>, vector<1024x32xbf16>, vector<16x32xf32> -> vector<16x32xf32>
    %c0_4 = arith.constant 0 : index
    %c0_5 = arith.constant 0 : index
    %4 = vector.load %arg5[%c0_4, %c0_5] : memref<16x32xf32, #tpu.memory_space<vmem>>, vector<16x32xf32>
    %5 = arith.addf %3, %4 : vector<16x32xf32>
    %6 = arith.truncf %5 : vector<16x32xf32> to vector<16x32xbf16>
    %c0_6 = arith.constant 0 : index
    %c0_7 = arith.constant 0 : index
    %c0_8 = arith.constant 0 : index
    %7 = vector.load %arg1[%c0_6, %c0_7, %c0_8] : memref<1x8x32xf32, #tpu.memory_space<vmem>>, vector<1x8x32xf32>
    %8 = vector.shape_cast %7 : vector<1x8x32xf32> to vector<8x32xf32>
    %c0_9 = arith.constant 0 : index
    %c0_10 = arith.constant 0 : index
    %c0_11 = arith.constant 0 : index
    %9 = vector.load %arg2[%c0_9, %c0_10, %c0_11] : memref<1x8x8xf32, #tpu.memory_space<vmem>>, vector<1x8x8xf32>
    %10 = vector.shape_cast %9 : vector<1x8x8xf32> to vector<8x8xf32>
    %11 = tpu.iota {dimensions = array<i32: 1>} : vector<1x32xi32>
    %c0_i32 = arith.constant 0 : i32
    %12 = vector.broadcast %c0_i32 : i32 to vector<1x32xi32>
    %13 = arith.cmpi sge, %11, %12 : vector<1x32xi32>
    %c8_i32 = arith.constant 8 : i32
    %14 = vector.broadcast %c8_i32 : i32 to vector<1x32xi32>
    %15 = arith.cmpi slt, %11, %14 : vector<1x32xi32>
    %16 = arith.andi %13, %15 : vector<1x32xi1>
    %17 = arith.extui %16 : vector<1x32xi1> to vector<1x32xi32>
    %18 = arith.sitofp %17 : vector<1x32xi32> to vector<1x32xf32>
    %19 = arith.truncf %18 : vector<1x32xf32> to vector<1x32xbf16>
    %c8_i32_12 = arith.constant 8 : i32
    %20 = vector.broadcast %c8_i32_12 : i32 to vector<1x32xi32>
    %21 = arith.cmpi sge, %11, %20 : vector<1x32xi32>
    %c16_i32 = arith.constant 16 : i32
    %22 = vector.broadcast %c16_i32 : i32 to vector<1x32xi32>
    %23 = arith.cmpi slt, %11, %22 : vector<1x32xi32>
    %24 = arith.andi %21, %23 : vector<1x32xi1>
    %25 = arith.extui %24 : vector<1x32xi1> to vector<1x32xi32>
    %26 = arith.sitofp %25 : vector<1x32xi32> to vector<1x32xf32>
    %27 = arith.truncf %26 : vector<1x32xf32> to vector<1x32xbf16>
    %c16_i32_13 = arith.constant 16 : i32
    %28 = vector.broadcast %c16_i32_13 : i32 to vector<1x32xi32>
    %29 = arith.cmpi sge, %11, %28 : vector<1x32xi32>
    %c24_i32 = arith.constant 24 : i32
    %30 = vector.broadcast %c24_i32 : i32 to vector<1x32xi32>
    %31 = arith.cmpi slt, %11, %30 : vector<1x32xi32>
    %32 = arith.andi %29, %31 : vector<1x32xi1>
    %33 = arith.extui %32 : vector<1x32xi1> to vector<1x32xi32>
    %34 = arith.sitofp %33 : vector<1x32xi32> to vector<1x32xf32>
    %35 = arith.truncf %34 : vector<1x32xf32> to vector<1x32xbf16>
    %c24_i32_14 = arith.constant 24 : i32
    %36 = vector.broadcast %c24_i32_14 : i32 to vector<1x32xi32>
    %37 = arith.cmpi sge, %11, %36 : vector<1x32xi32>
    %c32_i32 = arith.constant 32 : i32
    %38 = vector.broadcast %c32_i32 : i32 to vector<1x32xi32>
    %39 = arith.cmpi slt, %11, %38 : vector<1x32xi32>
    %40 = arith.andi %37, %39 : vector<1x32xi1>
    %41 = arith.extui %40 : vector<1x32xi1> to vector<1x32xi32>
    %42 = arith.sitofp %41 : vector<1x32xi32> to vector<1x32xf32>
    %43 = arith.truncf %42 : vector<1x32xf32> to vector<1x32xbf16>
    %44 = arith.truncf %8 : vector<8x32xf32> to vector<8x32xbf16>
    %c0_15 = arith.constant 0 : index
    %c0_16 = arith.constant 0 : index
    %c0_17 = arith.constant 0 : index
    %45 = vector.load %arg6[%c0_15, %c0_16, %c0_17] : memref<2x352x128xbf16, #tpu.memory_space<vmem>>, vector<1x32x32xbf16>
    %46 = vector.shape_cast %45 : vector<1x32x32xbf16> to vector<32x32xbf16>
    %cst_18 = arith.constant dense<0.000000e+00> : vector<8x32xf32>
    %47 = tpu.matmul %44, %46, %cst_18 {dimension_numbers = #tpu.dot_dimension_numbers<[1], [0], [0], [1], [0, 0, 1, 1], [], []>} : vector<8x32xbf16>, vector<32x32xbf16>, vector<8x32xf32> -> vector<8x32xf32>
    %c0_19 = arith.constant 0 : index
    %c0_20 = arith.constant 0 : index
    %c0_21 = arith.constant 0 : index
    %48 = vector.load %arg7[%c0_19, %c0_20, %c0_21] : memref<2x16x128xf32, #tpu.memory_space<vmem>>, vector<1x1x32xf32>
    %49 = vector.shape_cast %48 : vector<1x1x32xf32> to vector<1x32xf32>
    %50 = vector.broadcast %49 : vector<1x32xf32> to vector<8x32xf32>
    %51 = arith.addf %47, %50 : vector<8x32xf32>
    %c0_22 = arith.constant 0 : index
    %c32 = arith.constant 32 : index
    %c0_23 = arith.constant 0 : index
    %52 = vector.load %arg6[%c0_22, %c32, %c0_23] : memref<2x352x128xbf16, #tpu.memory_space<vmem>>, vector<1x32x32xbf16>
    %53 = vector.shape_cast %52 : vector<1x32x32xbf16> to vector<32x32xbf16>
    %cst_24 = arith.constant dense<0.000000e+00> : vector<8x32xf32>
    %54 = tpu.matmul %44, %53, %cst_24 {dimension_numbers = #tpu.dot_dimension_numbers<[1], [0], [0], [1], [0, 0, 1, 1], [], []>} : vector<8x32xbf16>, vector<32x32xbf16>, vector<8x32xf32> -> vector<8x32xf32>
    %c0_25 = arith.constant 0 : index
    %c1 = arith.constant 1 : index
    %c0_26 = arith.constant 0 : index
    %55 = vector.load %arg7[%c0_25, %c1, %c0_26] : memref<2x16x128xf32, #tpu.memory_space<vmem>>, vector<1x1x32xf32>
    %56 = vector.shape_cast %55 : vector<1x1x32xf32> to vector<1x32xf32>
    %57 = vector.broadcast %56 : vector<1x32xf32> to vector<8x32xf32>
    %58 = arith.addf %54, %57 : vector<8x32xf32>
    %59 = arith.truncf %58 : vector<8x32xf32> to vector<8x32xbf16>
    %c0_27 = arith.constant 0 : index
    %c64 = arith.constant 64 : index
    %c0_28 = arith.constant 0 : index
    %60 = vector.load %arg6[%c0_27, %c64, %c0_28] : memref<2x352x128xbf16, #tpu.memory_space<vmem>>, vector<1x32x32xbf16>
    %61 = vector.shape_cast %60 : vector<1x32x32xbf16> to vector<32x32xbf16>
    %cst_29 = arith.constant dense<0.000000e+00> : vector<8x32xf32>
    %62 = tpu.matmul %44, %61, %cst_29 {dimension_numbers = #tpu.dot_dimension_numbers<[1], [0], [0], [1], [0, 0, 1, 1], [], []>} : vector<8x32xbf16>, vector<32x32xbf16>, vector<8x32xf32> -> vector<8x32xf32>
    %c0_30 = arith.constant 0 : index
    %c2 = arith.constant 2 : index
    %c0_31 = arith.constant 0 : index
    %63 = vector.load %arg7[%c0_30, %c2, %c0_31] : memref<2x16x128xf32, #tpu.memory_space<vmem>>, vector<1x1x32xf32>
    %64 = vector.shape_cast %63 : vector<1x1x32xf32> to vector<1x32xf32>
    %65 = vector.broadcast %64 : vector<1x32xf32> to vector<8x32xf32>
    %66 = arith.addf %62, %65 : vector<8x32xf32>
    %67 = arith.truncf %66 : vector<8x32xf32> to vector<8x32xbf16>
    %68 = arith.truncf %51 : vector<8x32xf32> to vector<8x32xbf16>
    %69 = vector.broadcast %19 : vector<1x32xbf16> to vector<8x32xbf16>
    %70 = arith.mulf %68, %69 : vector<8x32xbf16>
    %cst_32 = arith.constant dense<0.000000e+00> : vector<8x8xf32>
    %71 = tpu.matmul %70, %59, %cst_32 {dimension_numbers = #tpu.dot_dimension_numbers<[1], [1], [0], [0], [0, 0, 1, 0], [], []>} : vector<8x32xbf16>, vector<8x32xbf16>, vector<8x8xf32> -> vector<8x8xf32>
    %cst_33 = arith.constant 0.353553385 : f32
    %72 = vector.broadcast %cst_33 : f32 to vector<8x8xf32>
    %73 = arith.mulf %71, %72 : vector<8x8xf32>
    %74 = arith.addf %73, %10 : vector<8x8xf32>
    %cst_34 = arith.constant dense<0xFF800000> : vector<8xf32>
    %75 = vector.multi_reduction <maximumf>, %74, %cst_34 [1] : vector<8x8xf32> to vector<8xf32>
    %76 = vector.shape_cast %75 : vector<8xf32> to vector<8x1xf32>
    %77 = vector.broadcast %76 : vector<8x1xf32> to vector<8x8xf32>
    %78 = arith.subf %74, %77 : vector<8x8xf32>
    %79 = math.exp %78 : vector<8x8xf32>
    %cst_35 = arith.constant dense<0.000000e+00> : vector<8xf32>
    %80 = vector.multi_reduction <add>, %79, %cst_35 [1] : vector<8x8xf32> to vector<8xf32>
    %81 = vector.shape_cast %80 : vector<8xf32> to vector<8x1xf32>
    %82 = tpu.reciprocal %81 {approx = true} : vector<8x1xf32> -> vector<8x1xf32>
    %83 = vector.broadcast %82 : vector<8x1xf32> to vector<8x8xf32>
    %84 = arith.mulf %79, %83 : vector<8x8xf32>
    %85 = arith.truncf %84 : vector<8x8xf32> to vector<8x8xbf16>
    %86 = vector.broadcast %19 : vector<1x32xbf16> to vector<8x32xbf16>
    %87 = arith.mulf %67, %86 : vector<8x32xbf16>
    %cst_36 = arith.constant dense<0.000000e+00> : vector<8x32xf32>
    %88 = tpu.matmul %85, %87, %cst_36 {dimension_numbers = #tpu.dot_dimension_numbers<[1], [0], [0], [1], [0, 0, 1, 1], [], []>} : vector<8x8xbf16>, vector<8x32xbf16>, vector<8x32xf32> -> vector<8x32xf32>
    %89 = vector.broadcast %27 : vector<1x32xbf16> to vector<8x32xbf16>
    %90 = arith.mulf %68, %89 : vector<8x32xbf16>
    %cst_37 = arith.constant dense<0.000000e+00> : vector<8x8xf32>
    %91 = tpu.matmul %90, %59, %cst_37 {dimension_numbers = #tpu.dot_dimension_numbers<[1], [1], [0], [0], [0, 0, 1, 0], [], []>} : vector<8x32xbf16>, vector<8x32xbf16>, vector<8x8xf32> -> vector<8x8xf32>
    %cst_38 = arith.constant 0.353553385 : f32
    %92 = vector.broadcast %cst_38 : f32 to vector<8x8xf32>
    %93 = arith.mulf %91, %92 : vector<8x8xf32>
    %94 = arith.addf %93, %10 : vector<8x8xf32>
    %cst_39 = arith.constant dense<0xFF800000> : vector<8xf32>
    %95 = vector.multi_reduction <maximumf>, %94, %cst_39 [1] : vector<8x8xf32> to vector<8xf32>
    %96 = vector.shape_cast %95 : vector<8xf32> to vector<8x1xf32>
    %97 = vector.broadcast %96 : vector<8x1xf32> to vector<8x8xf32>
    %98 = arith.subf %94, %97 : vector<8x8xf32>
    %99 = math.exp %98 : vector<8x8xf32>
    %cst_40 = arith.constant dense<0.000000e+00> : vector<8xf32>
    %100 = vector.multi_reduction <add>, %99, %cst_40 [1] : vector<8x8xf32> to vector<8xf32>
    %101 = vector.shape_cast %100 : vector<8xf32> to vector<8x1xf32>
    %102 = tpu.reciprocal %101 {approx = true} : vector<8x1xf32> -> vector<8x1xf32>
    %103 = vector.broadcast %102 : vector<8x1xf32> to vector<8x8xf32>
    %104 = arith.mulf %99, %103 : vector<8x8xf32>
    %105 = arith.truncf %104 : vector<8x8xf32> to vector<8x8xbf16>
    %106 = vector.broadcast %27 : vector<1x32xbf16> to vector<8x32xbf16>
    %107 = arith.mulf %67, %106 : vector<8x32xbf16>
    %cst_41 = arith.constant dense<0.000000e+00> : vector<8x32xf32>
    %108 = tpu.matmul %105, %107, %cst_41 {dimension_numbers = #tpu.dot_dimension_numbers<[1], [0], [0], [1], [0, 0, 1, 1], [], []>} : vector<8x8xbf16>, vector<8x32xbf16>, vector<8x32xf32> -> vector<8x32xf32>
    %109 = arith.addf %88, %108 : vector<8x32xf32>
    %110 = vector.broadcast %35 : vector<1x32xbf16> to vector<8x32xbf16>
    %111 = arith.mulf %68, %110 : vector<8x32xbf16>
    %cst_42 = arith.constant dense<0.000000e+00> : vector<8x8xf32>
    %112 = tpu.matmul %111, %59, %cst_42 {dimension_numbers = #tpu.dot_dimension_numbers<[1], [1], [0], [0], [0, 0, 1, 0], [], []>} : vector<8x32xbf16>, vector<8x32xbf16>, vector<8x8xf32> -> vector<8x8xf32>
    %cst_43 = arith.constant 0.353553385 : f32
    %113 = vector.broadcast %cst_43 : f32 to vector<8x8xf32>
    %114 = arith.mulf %112, %113 : vector<8x8xf32>
    %115 = arith.addf %114, %10 : vector<8x8xf32>
    %cst_44 = arith.constant dense<0xFF800000> : vector<8xf32>
    %116 = vector.multi_reduction <maximumf>, %115, %cst_44 [1] : vector<8x8xf32> to vector<8xf32>
    %117 = vector.shape_cast %116 : vector<8xf32> to vector<8x1xf32>
    %118 = vector.broadcast %117 : vector<8x1xf32> to vector<8x8xf32>
    %119 = arith.subf %115, %118 : vector<8x8xf32>
    %120 = math.exp %119 : vector<8x8xf32>
    %cst_45 = arith.constant dense<0.000000e+00> : vector<8xf32>
    %121 = vector.multi_reduction <add>, %120, %cst_45 [1] : vector<8x8xf32> to vector<8xf32>
    %122 = vector.shape_cast %121 : vector<8xf32> to vector<8x1xf32>
    %123 = tpu.reciprocal %122 {approx = true} : vector<8x1xf32> -> vector<8x1xf32>
    %124 = vector.broadcast %123 : vector<8x1xf32> to vector<8x8xf32>
    %125 = arith.mulf %120, %124 : vector<8x8xf32>
    %126 = arith.truncf %125 : vector<8x8xf32> to vector<8x8xbf16>
    %127 = vector.broadcast %35 : vector<1x32xbf16> to vector<8x32xbf16>
    %128 = arith.mulf %67, %127 : vector<8x32xbf16>
    %cst_46 = arith.constant dense<0.000000e+00> : vector<8x32xf32>
    %129 = tpu.matmul %126, %128, %cst_46 {dimension_numbers = #tpu.dot_dimension_numbers<[1], [0], [0], [1], [0, 0, 1, 1], [], []>} : vector<8x8xbf16>, vector<8x32xbf16>, vector<8x32xf32> -> vector<8x32xf32>
    %130 = arith.addf %109, %129 : vector<8x32xf32>
    %131 = vector.broadcast %43 : vector<1x32xbf16> to vector<8x32xbf16>
    %132 = arith.mulf %68, %131 : vector<8x32xbf16>
    %cst_47 = arith.constant dense<0.000000e+00> : vector<8x8xf32>
    %133 = tpu.matmul %132, %59, %cst_47 {dimension_numbers = #tpu.dot_dimension_numbers<[1], [1], [0], [0], [0, 0, 1, 0], [], []>} : vector<8x32xbf16>, vector<8x32xbf16>, vector<8x8xf32> -> vector<8x8xf32>
    %cst_48 = arith.constant 0.353553385 : f32
    %134 = vector.broadcast %cst_48 : f32 to vector<8x8xf32>
    %135 = arith.mulf %133, %134 : vector<8x8xf32>
    %136 = arith.addf %135, %10 : vector<8x8xf32>
    %cst_49 = arith.constant dense<0xFF800000> : vector<8xf32>
    %137 = vector.multi_reduction <maximumf>, %136, %cst_49 [1] : vector<8x8xf32> to vector<8xf32>
    %138 = vector.shape_cast %137 : vector<8xf32> to vector<8x1xf32>
    %139 = vector.broadcast %138 : vector<8x1xf32> to vector<8x8xf32>
    %140 = arith.subf %136, %139 : vector<8x8xf32>
    %141 = math.exp %140 : vector<8x8xf32>
    %cst_50 = arith.constant dense<0.000000e+00> : vector<8xf32>
    %142 = vector.multi_reduction <add>, %141, %cst_50 [1] : vector<8x8xf32> to vector<8xf32>
    %143 = vector.shape_cast %142 : vector<8xf32> to vector<8x1xf32>
    %144 = tpu.reciprocal %143 {approx = true} : vector<8x1xf32> -> vector<8x1xf32>
    %145 = vector.broadcast %144 : vector<8x1xf32> to vector<8x8xf32>
    %146 = arith.mulf %141, %145 : vector<8x8xf32>
    %147 = arith.truncf %146 : vector<8x8xf32> to vector<8x8xbf16>
    %148 = vector.broadcast %43 : vector<1x32xbf16> to vector<8x32xbf16>
    %149 = arith.mulf %67, %148 : vector<8x32xbf16>
    %cst_51 = arith.constant dense<0.000000e+00> : vector<8x32xf32>
    %150 = tpu.matmul %147, %149, %cst_51 {dimension_numbers = #tpu.dot_dimension_numbers<[1], [0], [0], [1], [0, 0, 1, 1], [], []>} : vector<8x8xbf16>, vector<8x32xbf16>, vector<8x32xf32> -> vector<8x32xf32>
    %151 = arith.addf %130, %150 : vector<8x32xf32>
    %152 = arith.truncf %151 : vector<8x32xf32> to vector<8x32xbf16>
    %c0_52 = arith.constant 0 : index
    %c96 = arith.constant 96 : index
    %c0_53 = arith.constant 0 : index
    %153 = vector.load %arg6[%c0_52, %c96, %c0_53] : memref<2x352x128xbf16, #tpu.memory_space<vmem>>, vector<1x32x32xbf16>
    %154 = vector.shape_cast %153 : vector<1x32x32xbf16> to vector<32x32xbf16>
    %cst_54 = arith.constant dense<0.000000e+00> : vector<8x32xf32>
    %155 = tpu.matmul %152, %154, %cst_54 {dimension_numbers = #tpu.dot_dimension_numbers<[1], [0], [0], [1], [0, 0, 1, 1], [], []>} : vector<8x32xbf16>, vector<32x32xbf16>, vector<8x32xf32> -> vector<8x32xf32>
    %c0_55 = arith.constant 0 : index
    %c3 = arith.constant 3 : index
    %c0_56 = arith.constant 0 : index
    %156 = vector.load %arg7[%c0_55, %c3, %c0_56] : memref<2x16x128xf32, #tpu.memory_space<vmem>>, vector<1x1x32xf32>
    %157 = vector.shape_cast %156 : vector<1x1x32xf32> to vector<1x32xf32>
    %158 = vector.broadcast %157 : vector<1x32xf32> to vector<8x32xf32>
    %159 = arith.addf %155, %158 : vector<8x32xf32>
    %160 = arith.addf %8, %159 : vector<8x32xf32>
    %c0_57 = arith.constant 0 : index
    %c4 = arith.constant 4 : index
    %c0_58 = arith.constant 0 : index
    %161 = vector.load %arg7[%c0_57, %c4, %c0_58] : memref<2x16x128xf32, #tpu.memory_space<vmem>>, vector<1x1x32xf32>
    %162 = vector.shape_cast %161 : vector<1x1x32xf32> to vector<1x32xf32>
    %c0_59 = arith.constant 0 : index
    %c5 = arith.constant 5 : index
    %c0_60 = arith.constant 0 : index
    %163 = vector.load %arg7[%c0_59, %c5, %c0_60] : memref<2x16x128xf32, #tpu.memory_space<vmem>>, vector<1x1x32xf32>
    %164 = vector.shape_cast %163 : vector<1x1x32xf32> to vector<1x32xf32>
    %cst_61 = arith.constant dense<0.000000e+00> : vector<8xf32>
    %165 = vector.multi_reduction <add>, %160, %cst_61 [1] : vector<8x32xf32> to vector<8xf32>
    %166 = vector.shape_cast %165 : vector<8xf32> to vector<8x1xf32>
    %cst_62 = arith.constant 3.200000e+01 : f32
    %167 = vector.broadcast %cst_62 : f32 to vector<8x1xf32>
    %168 = arith.divf %166, %167 : vector<8x1xf32>
    %169 = vector.broadcast %168 : vector<8x1xf32> to vector<8x32xf32>
    %170 = arith.subf %160, %169 : vector<8x32xf32>
    %171 = arith.mulf %170, %170 : vector<8x32xf32>
    %cst_63 = arith.constant dense<0.000000e+00> : vector<8xf32>
    %172 = vector.multi_reduction <add>, %171, %cst_63 [1] : vector<8x32xf32> to vector<8xf32>
    %173 = vector.shape_cast %172 : vector<8xf32> to vector<8x1xf32>
    %cst_64 = arith.constant 3.200000e+01 : f32
    %174 = vector.broadcast %cst_64 : f32 to vector<8x1xf32>
    %175 = arith.divf %173, %174 : vector<8x1xf32>
    %176 = vector.broadcast %168 : vector<8x1xf32> to vector<8x32xf32>
    %177 = arith.subf %160, %176 : vector<8x32xf32>
    %cst_65 = arith.constant 9.99999974E-6 : f32
    %178 = vector.broadcast %cst_65 : f32 to vector<8x1xf32>
    %179 = arith.addf %175, %178 : vector<8x1xf32>
    %180 = math.rsqrt %179 : vector<8x1xf32>
    %181 = vector.broadcast %180 : vector<8x1xf32> to vector<8x32xf32>
    %182 = arith.mulf %177, %181 : vector<8x32xf32>
    %183 = vector.broadcast %162 : vector<1x32xf32> to vector<8x32xf32>
    %184 = arith.mulf %182, %183 : vector<8x32xf32>
    %185 = vector.broadcast %164 : vector<1x32xf32> to vector<8x32xf32>
    %186 = arith.addf %184, %185 : vector<8x32xf32>
    %187 = arith.truncf %186 : vector<8x32xf32> to vector<8x32xbf16>
    %c0_66 = arith.constant 0 : index
    %c128 = arith.constant 128 : index
    %c0_67 = arith.constant 0 : index
    %188 = vector.load %arg6[%c0_66, %c128, %c0_67] : memref<2x352x128xbf16, #tpu.memory_space<vmem>>, vector<1x32x32xbf16>
    %189 = vector.shape_cast %188 : vector<1x32x32xbf16> to vector<32x32xbf16>
    %cst_68 = arith.constant dense<0.000000e+00> : vector<8x32xf32>
    %190 = tpu.matmul %187, %189, %cst_68 {dimension_numbers = #tpu.dot_dimension_numbers<[1], [0], [0], [1], [0, 0, 1, 1], [], []>} : vector<8x32xbf16>, vector<32x32xbf16>, vector<8x32xf32> -> vector<8x32xf32>
    %c0_69 = arith.constant 0 : index
    %c6 = arith.constant 6 : index
    %c0_70 = arith.constant 0 : index
    %191 = vector.load %arg7[%c0_69, %c6, %c0_70] : memref<2x16x128xf32, #tpu.memory_space<vmem>>, vector<1x1x32xf32>
    %192 = vector.shape_cast %191 : vector<1x1x32xf32> to vector<1x32xf32>
    %193 = vector.broadcast %192 : vector<1x32xf32> to vector<8x32xf32>
    %194 = arith.addf %190, %193 : vector<8x32xf32>
    %c0_71 = arith.constant 0 : index
    %c160 = arith.constant 160 : index
    %c0_72 = arith.constant 0 : index
    %195 = vector.load %arg6[%c0_71, %c160, %c0_72] : memref<2x352x128xbf16, #tpu.memory_space<vmem>>, vector<1x32x32xbf16>
    %196 = vector.shape_cast %195 : vector<1x32x32xbf16> to vector<32x32xbf16>
    %cst_73 = arith.constant dense<0.000000e+00> : vector<16x32xf32>
    %197 = tpu.matmul %6, %196, %cst_73 {dimension_numbers = #tpu.dot_dimension_numbers<[1], [0], [0], [1], [0, 0, 1, 1], [], []>} : vector<16x32xbf16>, vector<32x32xbf16>, vector<16x32xf32> -> vector<16x32xf32>
    %c0_74 = arith.constant 0 : index
    %c7 = arith.constant 7 : index
    %c0_75 = arith.constant 0 : index
    %198 = vector.load %arg7[%c0_74, %c7, %c0_75] : memref<2x16x128xf32, #tpu.memory_space<vmem>>, vector<1x1x32xf32>
    %199 = vector.shape_cast %198 : vector<1x1x32xf32> to vector<1x32xf32>
    %200 = vector.broadcast %199 : vector<1x32xf32> to vector<16x32xf32>
    %201 = arith.addf %197, %200 : vector<16x32xf32>
    %202 = arith.truncf %201 : vector<16x32xf32> to vector<16x32xbf16>
    %c0_76 = arith.constant 0 : index
    %c192 = arith.constant 192 : index
    %c0_77 = arith.constant 0 : index
    %203 = vector.load %arg6[%c0_76, %c192, %c0_77] : memref<2x352x128xbf16, #tpu.memory_space<vmem>>, vector<1x32x32xbf16>
    %204 = vector.shape_cast %203 : vector<1x32x32xbf16> to vector<32x32xbf16>
    %cst_78 = arith.constant dense<0.000000e+00> : vector<16x32xf32>
    %205 = tpu.matmul %6, %204, %cst_78 {dimension_numbers = #tpu.dot_dimension_numbers<[1], [0], [0], [1], [0, 0, 1, 1], [], []>} : vector<16x32xbf16>, vector<32x32xbf16>, vector<16x32xf32> -> vector<16x32xf32>
    %c0_79 = arith.constant 0 : index
    %c8 = arith.constant 8 : index
    %c0_80 = arith.constant 0 : index
    %206 = vector.load %arg7[%c0_79, %c8, %c0_80] : memref<2x16x128xf32, #tpu.memory_space<vmem>>, vector<1x1x32xf32>
    %207 = vector.shape_cast %206 : vector<1x1x32xf32> to vector<1x32xf32>
    %208 = vector.broadcast %207 : vector<1x32xf32> to vector<16x32xf32>
    %209 = arith.addf %205, %208 : vector<16x32xf32>
    %210 = arith.truncf %209 : vector<16x32xf32> to vector<16x32xbf16>
    %211 = arith.truncf %194 : vector<8x32xf32> to vector<8x32xbf16>
    %212 = vector.broadcast %19 : vector<1x32xbf16> to vector<8x32xbf16>
    %213 = arith.mulf %211, %212 : vector<8x32xbf16>
    %cst_81 = arith.constant dense<0.000000e+00> : vector<8x16xf32>
    %214 = tpu.matmul %213, %202, %cst_81 {dimension_numbers = #tpu.dot_dimension_numbers<[1], [1], [0], [0], [0, 0, 1, 0], [], []>} : vector<8x32xbf16>, vector<16x32xbf16>, vector<8x16xf32> -> vector<8x16xf32>
    %cst_82 = arith.constant 0.353553385 : f32
    %215 = vector.broadcast %cst_82 : f32 to vector<8x16xf32>
    %216 = arith.mulf %214, %215 : vector<8x16xf32>
    %cst_83 = arith.constant dense<0xFF800000> : vector<8xf32>
    %217 = vector.multi_reduction <maximumf>, %216, %cst_83 [1] : vector<8x16xf32> to vector<8xf32>
    %218 = vector.shape_cast %217 : vector<8xf32> to vector<8x1xf32>
    %219 = vector.broadcast %218 : vector<8x1xf32> to vector<8x16xf32>
    %220 = arith.subf %216, %219 : vector<8x16xf32>
    %221 = math.exp %220 : vector<8x16xf32>
    %cst_84 = arith.constant dense<0.000000e+00> : vector<8xf32>
    %222 = vector.multi_reduction <add>, %221, %cst_84 [1] : vector<8x16xf32> to vector<8xf32>
    %223 = vector.shape_cast %222 : vector<8xf32> to vector<8x1xf32>
    %224 = tpu.reciprocal %223 {approx = true} : vector<8x1xf32> -> vector<8x1xf32>
    %225 = vector.broadcast %224 : vector<8x1xf32> to vector<8x16xf32>
    %226 = arith.mulf %221, %225 : vector<8x16xf32>
    %227 = arith.truncf %226 : vector<8x16xf32> to vector<8x16xbf16>
    %228 = vector.broadcast %19 : vector<1x32xbf16> to vector<16x32xbf16>
    %229 = arith.mulf %210, %228 : vector<16x32xbf16>
    %cst_85 = arith.constant dense<0.000000e+00> : vector<8x32xf32>
    %230 = tpu.matmul %227, %229, %cst_85 {dimension_numbers = #tpu.dot_dimension_numbers<[1], [0], [0], [1], [0, 0, 1, 1], [], []>} : vector<8x16xbf16>, vector<16x32xbf16>, vector<8x32xf32> -> vector<8x32xf32>
    %231 = vector.broadcast %27 : vector<1x32xbf16> to vector<8x32xbf16>
    %232 = arith.mulf %211, %231 : vector<8x32xbf16>
    %cst_86 = arith.constant dense<0.000000e+00> : vector<8x16xf32>
    %233 = tpu.matmul %232, %202, %cst_86 {dimension_numbers = #tpu.dot_dimension_numbers<[1], [1], [0], [0], [0, 0, 1, 0], [], []>} : vector<8x32xbf16>, vector<16x32xbf16>, vector<8x16xf32> -> vector<8x16xf32>
    %cst_87 = arith.constant 0.353553385 : f32
    %234 = vector.broadcast %cst_87 : f32 to vector<8x16xf32>
    %235 = arith.mulf %233, %234 : vector<8x16xf32>
    %cst_88 = arith.constant dense<0xFF800000> : vector<8xf32>
    %236 = vector.multi_reduction <maximumf>, %235, %cst_88 [1] : vector<8x16xf32> to vector<8xf32>
    %237 = vector.shape_cast %236 : vector<8xf32> to vector<8x1xf32>
    %238 = vector.broadcast %237 : vector<8x1xf32> to vector<8x16xf32>
    %239 = arith.subf %235, %238 : vector<8x16xf32>
    %240 = math.exp %239 : vector<8x16xf32>
    %cst_89 = arith.constant dense<0.000000e+00> : vector<8xf32>
    %241 = vector.multi_reduction <add>, %240, %cst_89 [1] : vector<8x16xf32> to vector<8xf32>
    %242 = vector.shape_cast %241 : vector<8xf32> to vector<8x1xf32>
    %243 = tpu.reciprocal %242 {approx = true} : vector<8x1xf32> -> vector<8x1xf32>
    %244 = vector.broadcast %243 : vector<8x1xf32> to vector<8x16xf32>
    %245 = arith.mulf %240, %244 : vector<8x16xf32>
    %246 = arith.truncf %245 : vector<8x16xf32> to vector<8x16xbf16>
    %247 = vector.broadcast %27 : vector<1x32xbf16> to vector<16x32xbf16>
    %248 = arith.mulf %210, %247 : vector<16x32xbf16>
    %cst_90 = arith.constant dense<0.000000e+00> : vector<8x32xf32>
    %249 = tpu.matmul %246, %248, %cst_90 {dimension_numbers = #tpu.dot_dimension_numbers<[1], [0], [0], [1], [0, 0, 1, 1], [], []>} : vector<8x16xbf16>, vector<16x32xbf16>, vector<8x32xf32> -> vector<8x32xf32>
    %250 = arith.addf %230, %249 : vector<8x32xf32>
    %251 = vector.broadcast %35 : vector<1x32xbf16> to vector<8x32xbf16>
    %252 = arith.mulf %211, %251 : vector<8x32xbf16>
    %cst_91 = arith.constant dense<0.000000e+00> : vector<8x16xf32>
    %253 = tpu.matmul %252, %202, %cst_91 {dimension_numbers = #tpu.dot_dimension_numbers<[1], [1], [0], [0], [0, 0, 1, 0], [], []>} : vector<8x32xbf16>, vector<16x32xbf16>, vector<8x16xf32> -> vector<8x16xf32>
    %cst_92 = arith.constant 0.353553385 : f32
    %254 = vector.broadcast %cst_92 : f32 to vector<8x16xf32>
    %255 = arith.mulf %253, %254 : vector<8x16xf32>
    %cst_93 = arith.constant dense<0xFF800000> : vector<8xf32>
    %256 = vector.multi_reduction <maximumf>, %255, %cst_93 [1] : vector<8x16xf32> to vector<8xf32>
    %257 = vector.shape_cast %256 : vector<8xf32> to vector<8x1xf32>
    %258 = vector.broadcast %257 : vector<8x1xf32> to vector<8x16xf32>
    %259 = arith.subf %255, %258 : vector<8x16xf32>
    %260 = math.exp %259 : vector<8x16xf32>
    %cst_94 = arith.constant dense<0.000000e+00> : vector<8xf32>
    %261 = vector.multi_reduction <add>, %260, %cst_94 [1] : vector<8x16xf32> to vector<8xf32>
    %262 = vector.shape_cast %261 : vector<8xf32> to vector<8x1xf32>
    %263 = tpu.reciprocal %262 {approx = true} : vector<8x1xf32> -> vector<8x1xf32>
    %264 = vector.broadcast %263 : vector<8x1xf32> to vector<8x16xf32>
    %265 = arith.mulf %260, %264 : vector<8x16xf32>
    %266 = arith.truncf %265 : vector<8x16xf32> to vector<8x16xbf16>
    %267 = vector.broadcast %35 : vector<1x32xbf16> to vector<16x32xbf16>
    %268 = arith.mulf %210, %267 : vector<16x32xbf16>
    %cst_95 = arith.constant dense<0.000000e+00> : vector<8x32xf32>
    %269 = tpu.matmul %266, %268, %cst_95 {dimension_numbers = #tpu.dot_dimension_numbers<[1], [0], [0], [1], [0, 0, 1, 1], [], []>} : vector<8x16xbf16>, vector<16x32xbf16>, vector<8x32xf32> -> vector<8x32xf32>
    %270 = arith.addf %250, %269 : vector<8x32xf32>
    %271 = vector.broadcast %43 : vector<1x32xbf16> to vector<8x32xbf16>
    %272 = arith.mulf %211, %271 : vector<8x32xbf16>
    %cst_96 = arith.constant dense<0.000000e+00> : vector<8x16xf32>
    %273 = tpu.matmul %272, %202, %cst_96 {dimension_numbers = #tpu.dot_dimension_numbers<[1], [1], [0], [0], [0, 0, 1, 0], [], []>} : vector<8x32xbf16>, vector<16x32xbf16>, vector<8x16xf32> -> vector<8x16xf32>
    %cst_97 = arith.constant 0.353553385 : f32
    %274 = vector.broadcast %cst_97 : f32 to vector<8x16xf32>
    %275 = arith.mulf %273, %274 : vector<8x16xf32>
    %cst_98 = arith.constant dense<0xFF800000> : vector<8xf32>
    %276 = vector.multi_reduction <maximumf>, %275, %cst_98 [1] : vector<8x16xf32> to vector<8xf32>
    %277 = vector.shape_cast %276 : vector<8xf32> to vector<8x1xf32>
    %278 = vector.broadcast %277 : vector<8x1xf32> to vector<8x16xf32>
    %279 = arith.subf %275, %278 : vector<8x16xf32>
    %280 = math.exp %279 : vector<8x16xf32>
    %cst_99 = arith.constant dense<0.000000e+00> : vector<8xf32>
    %281 = vector.multi_reduction <add>, %280, %cst_99 [1] : vector<8x16xf32> to vector<8xf32>
    %282 = vector.shape_cast %281 : vector<8xf32> to vector<8x1xf32>
    %283 = tpu.reciprocal %282 {approx = true} : vector<8x1xf32> -> vector<8x1xf32>
    %284 = vector.broadcast %283 : vector<8x1xf32> to vector<8x16xf32>
    %285 = arith.mulf %280, %284 : vector<8x16xf32>
    %286 = arith.truncf %285 : vector<8x16xf32> to vector<8x16xbf16>
    %287 = vector.broadcast %43 : vector<1x32xbf16> to vector<16x32xbf16>
    %288 = arith.mulf %210, %287 : vector<16x32xbf16>
    %cst_100 = arith.constant dense<0.000000e+00> : vector<8x32xf32>
    %289 = tpu.matmul %286, %288, %cst_100 {dimension_numbers = #tpu.dot_dimension_numbers<[1], [0], [0], [1], [0, 0, 1, 1], [], []>} : vector<8x16xbf16>, vector<16x32xbf16>, vector<8x32xf32> -> vector<8x32xf32>
    %290 = arith.addf %270, %289 : vector<8x32xf32>
    %291 = arith.truncf %290 : vector<8x32xf32> to vector<8x32xbf16>
    %c0_101 = arith.constant 0 : index
    %c224 = arith.constant 224 : index
    %c0_102 = arith.constant 0 : index
    %292 = vector.load %arg6[%c0_101, %c224, %c0_102] : memref<2x352x128xbf16, #tpu.memory_space<vmem>>, vector<1x32x32xbf16>
    %293 = vector.shape_cast %292 : vector<1x32x32xbf16> to vector<32x32xbf16>
    %cst_103 = arith.constant dense<0.000000e+00> : vector<8x32xf32>
    %294 = tpu.matmul %291, %293, %cst_103 {dimension_numbers = #tpu.dot_dimension_numbers<[1], [0], [0], [1], [0, 0, 1, 1], [], []>} : vector<8x32xbf16>, vector<32x32xbf16>, vector<8x32xf32> -> vector<8x32xf32>
    %c0_104 = arith.constant 0 : index
    %c9 = arith.constant 9 : index
    %c0_105 = arith.constant 0 : index
    %295 = vector.load %arg7[%c0_104, %c9, %c0_105] : memref<2x16x128xf32, #tpu.memory_space<vmem>>, vector<1x1x32xf32>
    %296 = vector.shape_cast %295 : vector<1x1x32xf32> to vector<1x32xf32>
    %297 = vector.broadcast %296 : vector<1x32xf32> to vector<8x32xf32>
    %298 = arith.addf %294, %297 : vector<8x32xf32>
    %299 = arith.addf %186, %298 : vector<8x32xf32>
    %c0_106 = arith.constant 0 : index
    %c10 = arith.constant 10 : index
    %c0_107 = arith.constant 0 : index
    %300 = vector.load %arg7[%c0_106, %c10, %c0_107] : memref<2x16x128xf32, #tpu.memory_space<vmem>>, vector<1x1x32xf32>
    %301 = vector.shape_cast %300 : vector<1x1x32xf32> to vector<1x32xf32>
    %c0_108 = arith.constant 0 : index
    %c11 = arith.constant 11 : index
    %c0_109 = arith.constant 0 : index
    %302 = vector.load %arg7[%c0_108, %c11, %c0_109] : memref<2x16x128xf32, #tpu.memory_space<vmem>>, vector<1x1x32xf32>
    %303 = vector.shape_cast %302 : vector<1x1x32xf32> to vector<1x32xf32>
    %cst_110 = arith.constant dense<0.000000e+00> : vector<8xf32>
    %304 = vector.multi_reduction <add>, %299, %cst_110 [1] : vector<8x32xf32> to vector<8xf32>
    %305 = vector.shape_cast %304 : vector<8xf32> to vector<8x1xf32>
    %cst_111 = arith.constant 3.200000e+01 : f32
    %306 = vector.broadcast %cst_111 : f32 to vector<8x1xf32>
    %307 = arith.divf %305, %306 : vector<8x1xf32>
    %308 = vector.broadcast %307 : vector<8x1xf32> to vector<8x32xf32>
    %309 = arith.subf %299, %308 : vector<8x32xf32>
    %310 = arith.mulf %309, %309 : vector<8x32xf32>
    %cst_112 = arith.constant dense<0.000000e+00> : vector<8xf32>
    %311 = vector.multi_reduction <add>, %310, %cst_112 [1] : vector<8x32xf32> to vector<8xf32>
    %312 = vector.shape_cast %311 : vector<8xf32> to vector<8x1xf32>
    %cst_113 = arith.constant 3.200000e+01 : f32
    %313 = vector.broadcast %cst_113 : f32 to vector<8x1xf32>
    %314 = arith.divf %312, %313 : vector<8x1xf32>
    %315 = vector.broadcast %307 : vector<8x1xf32> to vector<8x32xf32>
    %316 = arith.subf %299, %315 : vector<8x32xf32>
    %cst_114 = arith.constant 9.99999974E-6 : f32
    %317 = vector.broadcast %cst_114 : f32 to vector<8x1xf32>
    %318 = arith.addf %314, %317 : vector<8x1xf32>
    %319 = math.rsqrt %318 : vector<8x1xf32>
    %320 = vector.broadcast %319 : vector<8x1xf32> to vector<8x32xf32>
    %321 = arith.mulf %316, %320 : vector<8x32xf32>
    %322 = vector.broadcast %301 : vector<1x32xf32> to vector<8x32xf32>
    %323 = arith.mulf %321, %322 : vector<8x32xf32>
    %324 = vector.broadcast %303 : vector<1x32xf32> to vector<8x32xf32>
    %325 = arith.addf %323, %324 : vector<8x32xf32>
    %326 = arith.truncf %325 : vector<8x32xf32> to vector<8x32xbf16>
    %c0_115 = arith.constant 0 : index
    %c256 = arith.constant 256 : index
    %c0_116 = arith.constant 0 : index
    %327 = vector.load %arg6[%c0_115, %c256, %c0_116] : memref<2x352x128xbf16, #tpu.memory_space<vmem>>, vector<1x32x64xbf16>
    %328 = vector.shape_cast %327 : vector<1x32x64xbf16> to vector<32x64xbf16>
    %cst_117 = arith.constant dense<0.000000e+00> : vector<8x64xf32>
    %329 = tpu.matmul %326, %328, %cst_117 {dimension_numbers = #tpu.dot_dimension_numbers<[1], [0], [0], [1], [0, 0, 1, 1], [], []>} : vector<8x32xbf16>, vector<32x64xbf16>, vector<8x64xf32> -> vector<8x64xf32>
    %c0_118 = arith.constant 0 : index
    %c12 = arith.constant 12 : index
    %c0_119 = arith.constant 0 : index
    %330 = vector.load %arg7[%c0_118, %c12, %c0_119] : memref<2x16x128xf32, #tpu.memory_space<vmem>>, vector<1x1x64xf32>
    %331 = vector.shape_cast %330 : vector<1x1x64xf32> to vector<1x64xf32>
    %332 = vector.broadcast %331 : vector<1x64xf32> to vector<8x64xf32>
    %333 = arith.addf %329, %332 : vector<8x64xf32>
    %cst_120 = arith.constant 0.000000e+00 : f32
    %334 = vector.broadcast %cst_120 : f32 to vector<8x64xf32>
    %335 = arith.maximumf %333, %334 : vector<8x64xf32>
    %336 = arith.truncf %335 : vector<8x64xf32> to vector<8x64xbf16>
    %c0_121 = arith.constant 0 : index
    %c288 = arith.constant 288 : index
    %c0_122 = arith.constant 0 : index
    %337 = vector.load %arg6[%c0_121, %c288, %c0_122] : memref<2x352x128xbf16, #tpu.memory_space<vmem>>, vector<1x64x32xbf16>
    %338 = vector.shape_cast %337 : vector<1x64x32xbf16> to vector<64x32xbf16>
    %cst_123 = arith.constant dense<0.000000e+00> : vector<8x32xf32>
    %339 = tpu.matmul %336, %338, %cst_123 {dimension_numbers = #tpu.dot_dimension_numbers<[1], [0], [0], [1], [0, 0, 1, 1], [], []>} : vector<8x64xbf16>, vector<64x32xbf16>, vector<8x32xf32> -> vector<8x32xf32>
    %c0_124 = arith.constant 0 : index
    %c13 = arith.constant 13 : index
    %c0_125 = arith.constant 0 : index
    %340 = vector.load %arg7[%c0_124, %c13, %c0_125] : memref<2x16x128xf32, #tpu.memory_space<vmem>>, vector<1x1x32xf32>
    %341 = vector.shape_cast %340 : vector<1x1x32xf32> to vector<1x32xf32>
    %342 = vector.broadcast %341 : vector<1x32xf32> to vector<8x32xf32>
    %343 = arith.addf %339, %342 : vector<8x32xf32>
    %344 = arith.addf %325, %343 : vector<8x32xf32>
    %c0_126 = arith.constant 0 : index
    %c14 = arith.constant 14 : index
    %c0_127 = arith.constant 0 : index
    %345 = vector.load %arg7[%c0_126, %c14, %c0_127] : memref<2x16x128xf32, #tpu.memory_space<vmem>>, vector<1x1x32xf32>
    %346 = vector.shape_cast %345 : vector<1x1x32xf32> to vector<1x32xf32>
    %c0_128 = arith.constant 0 : index
    %c15 = arith.constant 15 : index
    %c0_129 = arith.constant 0 : index
    %347 = vector.load %arg7[%c0_128, %c15, %c0_129] : memref<2x16x128xf32, #tpu.memory_space<vmem>>, vector<1x1x32xf32>
    %348 = vector.shape_cast %347 : vector<1x1x32xf32> to vector<1x32xf32>
    %cst_130 = arith.constant dense<0.000000e+00> : vector<8xf32>
    %349 = vector.multi_reduction <add>, %344, %cst_130 [1] : vector<8x32xf32> to vector<8xf32>
    %350 = vector.shape_cast %349 : vector<8xf32> to vector<8x1xf32>
    %cst_131 = arith.constant 3.200000e+01 : f32
    %351 = vector.broadcast %cst_131 : f32 to vector<8x1xf32>
    %352 = arith.divf %350, %351 : vector<8x1xf32>
    %353 = vector.broadcast %352 : vector<8x1xf32> to vector<8x32xf32>
    %354 = arith.subf %344, %353 : vector<8x32xf32>
    %355 = arith.mulf %354, %354 : vector<8x32xf32>
    %cst_132 = arith.constant dense<0.000000e+00> : vector<8xf32>
    %356 = vector.multi_reduction <add>, %355, %cst_132 [1] : vector<8x32xf32> to vector<8xf32>
    %357 = vector.shape_cast %356 : vector<8xf32> to vector<8x1xf32>
    %cst_133 = arith.constant 3.200000e+01 : f32
    %358 = vector.broadcast %cst_133 : f32 to vector<8x1xf32>
    %359 = arith.divf %357, %358 : vector<8x1xf32>
    %360 = vector.broadcast %352 : vector<8x1xf32> to vector<8x32xf32>
    %361 = arith.subf %344, %360 : vector<8x32xf32>
    %cst_134 = arith.constant 9.99999974E-6 : f32
    %362 = vector.broadcast %cst_134 : f32 to vector<8x1xf32>
    %363 = arith.addf %359, %362 : vector<8x1xf32>
    %364 = math.rsqrt %363 : vector<8x1xf32>
    %365 = vector.broadcast %364 : vector<8x1xf32> to vector<8x32xf32>
    %366 = arith.mulf %361, %365 : vector<8x32xf32>
    %367 = vector.broadcast %346 : vector<1x32xf32> to vector<8x32xf32>
    %368 = arith.mulf %366, %367 : vector<8x32xf32>
    %369 = vector.broadcast %348 : vector<1x32xf32> to vector<8x32xf32>
    %370 = arith.addf %368, %369 : vector<8x32xf32>
    %371 = arith.truncf %370 : vector<8x32xf32> to vector<8x32xbf16>
    %c1_135 = arith.constant 1 : index
    %c0_136 = arith.constant 0 : index
    %c0_137 = arith.constant 0 : index
    %372 = vector.load %arg6[%c1_135, %c0_136, %c0_137] : memref<2x352x128xbf16, #tpu.memory_space<vmem>>, vector<1x32x32xbf16>
    %373 = vector.shape_cast %372 : vector<1x32x32xbf16> to vector<32x32xbf16>
    %cst_138 = arith.constant dense<0.000000e+00> : vector<8x32xf32>
    %374 = tpu.matmul %371, %373, %cst_138 {dimension_numbers = #tpu.dot_dimension_numbers<[1], [0], [0], [1], [0, 0, 1, 1], [], []>} : vector<8x32xbf16>, vector<32x32xbf16>, vector<8x32xf32> -> vector<8x32xf32>
    %c1_139 = arith.constant 1 : index
    %c0_140 = arith.constant 0 : index
    %c0_141 = arith.constant 0 : index
    %375 = vector.load %arg7[%c1_139, %c0_140, %c0_141] : memref<2x16x128xf32, #tpu.memory_space<vmem>>, vector<1x1x32xf32>
    %376 = vector.shape_cast %375 : vector<1x1x32xf32> to vector<1x32xf32>
    %377 = vector.broadcast %376 : vector<1x32xf32> to vector<8x32xf32>
    %378 = arith.addf %374, %377 : vector<8x32xf32>
    %c1_142 = arith.constant 1 : index
    %c32_143 = arith.constant 32 : index
    %c0_144 = arith.constant 0 : index
    %379 = vector.load %arg6[%c1_142, %c32_143, %c0_144] : memref<2x352x128xbf16, #tpu.memory_space<vmem>>, vector<1x32x32xbf16>
    %380 = vector.shape_cast %379 : vector<1x32x32xbf16> to vector<32x32xbf16>
    %cst_145 = arith.constant dense<0.000000e+00> : vector<8x32xf32>
    %381 = tpu.matmul %371, %380, %cst_145 {dimension_numbers = #tpu.dot_dimension_numbers<[1], [0], [0], [1], [0, 0, 1, 1], [], []>} : vector<8x32xbf16>, vector<32x32xbf16>, vector<8x32xf32> -> vector<8x32xf32>
    %c1_146 = arith.constant 1 : index
    %c1_147 = arith.constant 1 : index
    %c0_148 = arith.constant 0 : index
    %382 = vector.load %arg7[%c1_146, %c1_147, %c0_148] : memref<2x16x128xf32, #tpu.memory_space<vmem>>, vector<1x1x32xf32>
    %383 = vector.shape_cast %382 : vector<1x1x32xf32> to vector<1x32xf32>
    %384 = vector.broadcast %383 : vector<1x32xf32> to vector<8x32xf32>
    %385 = arith.addf %381, %384 : vector<8x32xf32>
    %386 = arith.truncf %385 : vector<8x32xf32> to vector<8x32xbf16>
    %c1_149 = arith.constant 1 : index
    %c64_150 = arith.constant 64 : index
    %c0_151 = arith.constant 0 : index
    %387 = vector.load %arg6[%c1_149, %c64_150, %c0_151] : memref<2x352x128xbf16, #tpu.memory_space<vmem>>, vector<1x32x32xbf16>
    %388 = vector.shape_cast %387 : vector<1x32x32xbf16> to vector<32x32xbf16>
    %cst_152 = arith.constant dense<0.000000e+00> : vector<8x32xf32>
    %389 = tpu.matmul %371, %388, %cst_152 {dimension_numbers = #tpu.dot_dimension_numbers<[1], [0], [0], [1], [0, 0, 1, 1], [], []>} : vector<8x32xbf16>, vector<32x32xbf16>, vector<8x32xf32> -> vector<8x32xf32>
    %c1_153 = arith.constant 1 : index
    %c2_154 = arith.constant 2 : index
    %c0_155 = arith.constant 0 : index
    %390 = vector.load %arg7[%c1_153, %c2_154, %c0_155] : memref<2x16x128xf32, #tpu.memory_space<vmem>>, vector<1x1x32xf32>
    %391 = vector.shape_cast %390 : vector<1x1x32xf32> to vector<1x32xf32>
    %392 = vector.broadcast %391 : vector<1x32xf32> to vector<8x32xf32>
    %393 = arith.addf %389, %392 : vector<8x32xf32>
    %394 = arith.truncf %393 : vector<8x32xf32> to vector<8x32xbf16>
    %395 = arith.truncf %378 : vector<8x32xf32> to vector<8x32xbf16>
    %396 = vector.broadcast %19 : vector<1x32xbf16> to vector<8x32xbf16>
    %397 = arith.mulf %395, %396 : vector<8x32xbf16>
    %cst_156 = arith.constant dense<0.000000e+00> : vector<8x8xf32>
    %398 = tpu.matmul %397, %386, %cst_156 {dimension_numbers = #tpu.dot_dimension_numbers<[1], [1], [0], [0], [0, 0, 1, 0], [], []>} : vector<8x32xbf16>, vector<8x32xbf16>, vector<8x8xf32> -> vector<8x8xf32>
    %cst_157 = arith.constant 0.353553385 : f32
    %399 = vector.broadcast %cst_157 : f32 to vector<8x8xf32>
    %400 = arith.mulf %398, %399 : vector<8x8xf32>
    %401 = arith.addf %400, %10 : vector<8x8xf32>
    %cst_158 = arith.constant dense<0xFF800000> : vector<8xf32>
    %402 = vector.multi_reduction <maximumf>, %401, %cst_158 [1] : vector<8x8xf32> to vector<8xf32>
    %403 = vector.shape_cast %402 : vector<8xf32> to vector<8x1xf32>
    %404 = vector.broadcast %403 : vector<8x1xf32> to vector<8x8xf32>
    %405 = arith.subf %401, %404 : vector<8x8xf32>
    %406 = math.exp %405 : vector<8x8xf32>
    %cst_159 = arith.constant dense<0.000000e+00> : vector<8xf32>
    %407 = vector.multi_reduction <add>, %406, %cst_159 [1] : vector<8x8xf32> to vector<8xf32>
    %408 = vector.shape_cast %407 : vector<8xf32> to vector<8x1xf32>
    %409 = tpu.reciprocal %408 {approx = true} : vector<8x1xf32> -> vector<8x1xf32>
    %410 = vector.broadcast %409 : vector<8x1xf32> to vector<8x8xf32>
    %411 = arith.mulf %406, %410 : vector<8x8xf32>
    %412 = arith.truncf %411 : vector<8x8xf32> to vector<8x8xbf16>
    %413 = vector.broadcast %19 : vector<1x32xbf16> to vector<8x32xbf16>
    %414 = arith.mulf %394, %413 : vector<8x32xbf16>
    %cst_160 = arith.constant dense<0.000000e+00> : vector<8x32xf32>
    %415 = tpu.matmul %412, %414, %cst_160 {dimension_numbers = #tpu.dot_dimension_numbers<[1], [0], [0], [1], [0, 0, 1, 1], [], []>} : vector<8x8xbf16>, vector<8x32xbf16>, vector<8x32xf32> -> vector<8x32xf32>
    %416 = vector.broadcast %27 : vector<1x32xbf16> to vector<8x32xbf16>
    %417 = arith.mulf %395, %416 : vector<8x32xbf16>
    %cst_161 = arith.constant dense<0.000000e+00> : vector<8x8xf32>
    %418 = tpu.matmul %417, %386, %cst_161 {dimension_numbers = #tpu.dot_dimension_numbers<[1], [1], [0], [0], [0, 0, 1, 0], [], []>} : vector<8x32xbf16>, vector<8x32xbf16>, vector<8x8xf32> -> vector<8x8xf32>
    %cst_162 = arith.constant 0.353553385 : f32
    %419 = vector.broadcast %cst_162 : f32 to vector<8x8xf32>
    %420 = arith.mulf %418, %419 : vector<8x8xf32>
    %421 = arith.addf %420, %10 : vector<8x8xf32>
    %cst_163 = arith.constant dense<0xFF800000> : vector<8xf32>
    %422 = vector.multi_reduction <maximumf>, %421, %cst_163 [1] : vector<8x8xf32> to vector<8xf32>
    %423 = vector.shape_cast %422 : vector<8xf32> to vector<8x1xf32>
    %424 = vector.broadcast %423 : vector<8x1xf32> to vector<8x8xf32>
    %425 = arith.subf %421, %424 : vector<8x8xf32>
    %426 = math.exp %425 : vector<8x8xf32>
    %cst_164 = arith.constant dense<0.000000e+00> : vector<8xf32>
    %427 = vector.multi_reduction <add>, %426, %cst_164 [1] : vector<8x8xf32> to vector<8xf32>
    %428 = vector.shape_cast %427 : vector<8xf32> to vector<8x1xf32>
    %429 = tpu.reciprocal %428 {approx = true} : vector<8x1xf32> -> vector<8x1xf32>
    %430 = vector.broadcast %429 : vector<8x1xf32> to vector<8x8xf32>
    %431 = arith.mulf %426, %430 : vector<8x8xf32>
    %432 = arith.truncf %431 : vector<8x8xf32> to vector<8x8xbf16>
    %433 = vector.broadcast %27 : vector<1x32xbf16> to vector<8x32xbf16>
    %434 = arith.mulf %394, %433 : vector<8x32xbf16>
    %cst_165 = arith.constant dense<0.000000e+00> : vector<8x32xf32>
    %435 = tpu.matmul %432, %434, %cst_165 {dimension_numbers = #tpu.dot_dimension_numbers<[1], [0], [0], [1], [0, 0, 1, 1], [], []>} : vector<8x8xbf16>, vector<8x32xbf16>, vector<8x32xf32> -> vector<8x32xf32>
    %436 = arith.addf %415, %435 : vector<8x32xf32>
    %437 = vector.broadcast %35 : vector<1x32xbf16> to vector<8x32xbf16>
    %438 = arith.mulf %395, %437 : vector<8x32xbf16>
    %cst_166 = arith.constant dense<0.000000e+00> : vector<8x8xf32>
    %439 = tpu.matmul %438, %386, %cst_166 {dimension_numbers = #tpu.dot_dimension_numbers<[1], [1], [0], [0], [0, 0, 1, 0], [], []>} : vector<8x32xbf16>, vector<8x32xbf16>, vector<8x8xf32> -> vector<8x8xf32>
    %cst_167 = arith.constant 0.353553385 : f32
    %440 = vector.broadcast %cst_167 : f32 to vector<8x8xf32>
    %441 = arith.mulf %439, %440 : vector<8x8xf32>
    %442 = arith.addf %441, %10 : vector<8x8xf32>
    %cst_168 = arith.constant dense<0xFF800000> : vector<8xf32>
    %443 = vector.multi_reduction <maximumf>, %442, %cst_168 [1] : vector<8x8xf32> to vector<8xf32>
    %444 = vector.shape_cast %443 : vector<8xf32> to vector<8x1xf32>
    %445 = vector.broadcast %444 : vector<8x1xf32> to vector<8x8xf32>
    %446 = arith.subf %442, %445 : vector<8x8xf32>
    %447 = math.exp %446 : vector<8x8xf32>
    %cst_169 = arith.constant dense<0.000000e+00> : vector<8xf32>
    %448 = vector.multi_reduction <add>, %447, %cst_169 [1] : vector<8x8xf32> to vector<8xf32>
    %449 = vector.shape_cast %448 : vector<8xf32> to vector<8x1xf32>
    %450 = tpu.reciprocal %449 {approx = true} : vector<8x1xf32> -> vector<8x1xf32>
    %451 = vector.broadcast %450 : vector<8x1xf32> to vector<8x8xf32>
    %452 = arith.mulf %447, %451 : vector<8x8xf32>
    %453 = arith.truncf %452 : vector<8x8xf32> to vector<8x8xbf16>
    %454 = vector.broadcast %35 : vector<1x32xbf16> to vector<8x32xbf16>
    %455 = arith.mulf %394, %454 : vector<8x32xbf16>
    %cst_170 = arith.constant dense<0.000000e+00> : vector<8x32xf32>
    %456 = tpu.matmul %453, %455, %cst_170 {dimension_numbers = #tpu.dot_dimension_numbers<[1], [0], [0], [1], [0, 0, 1, 1], [], []>} : vector<8x8xbf16>, vector<8x32xbf16>, vector<8x32xf32> -> vector<8x32xf32>
    %457 = arith.addf %436, %456 : vector<8x32xf32>
    %458 = vector.broadcast %43 : vector<1x32xbf16> to vector<8x32xbf16>
    %459 = arith.mulf %395, %458 : vector<8x32xbf16>
    %cst_171 = arith.constant dense<0.000000e+00> : vector<8x8xf32>
    %460 = tpu.matmul %459, %386, %cst_171 {dimension_numbers = #tpu.dot_dimension_numbers<[1], [1], [0], [0], [0, 0, 1, 0], [], []>} : vector<8x32xbf16>, vector<8x32xbf16>, vector<8x8xf32> -> vector<8x8xf32>
    %cst_172 = arith.constant 0.353553385 : f32
    %461 = vector.broadcast %cst_172 : f32 to vector<8x8xf32>
    %462 = arith.mulf %460, %461 : vector<8x8xf32>
    %463 = arith.addf %462, %10 : vector<8x8xf32>
    %cst_173 = arith.constant dense<0xFF800000> : vector<8xf32>
    %464 = vector.multi_reduction <maximumf>, %463, %cst_173 [1] : vector<8x8xf32> to vector<8xf32>
    %465 = vector.shape_cast %464 : vector<8xf32> to vector<8x1xf32>
    %466 = vector.broadcast %465 : vector<8x1xf32> to vector<8x8xf32>
    %467 = arith.subf %463, %466 : vector<8x8xf32>
    %468 = math.exp %467 : vector<8x8xf32>
    %cst_174 = arith.constant dense<0.000000e+00> : vector<8xf32>
    %469 = vector.multi_reduction <add>, %468, %cst_174 [1] : vector<8x8xf32> to vector<8xf32>
    %470 = vector.shape_cast %469 : vector<8xf32> to vector<8x1xf32>
    %471 = tpu.reciprocal %470 {approx = true} : vector<8x1xf32> -> vector<8x1xf32>
    %472 = vector.broadcast %471 : vector<8x1xf32> to vector<8x8xf32>
    %473 = arith.mulf %468, %472 : vector<8x8xf32>
    %474 = arith.truncf %473 : vector<8x8xf32> to vector<8x8xbf16>
    %475 = vector.broadcast %43 : vector<1x32xbf16> to vector<8x32xbf16>
    %476 = arith.mulf %394, %475 : vector<8x32xbf16>
    %cst_175 = arith.constant dense<0.000000e+00> : vector<8x32xf32>
    %477 = tpu.matmul %474, %476, %cst_175 {dimension_numbers = #tpu.dot_dimension_numbers<[1], [0], [0], [1], [0, 0, 1, 1], [], []>} : vector<8x8xbf16>, vector<8x32xbf16>, vector<8x32xf32> -> vector<8x32xf32>
    %478 = arith.addf %457, %477 : vector<8x32xf32>
    %479 = arith.truncf %478 : vector<8x32xf32> to vector<8x32xbf16>
    %c1_176 = arith.constant 1 : index
    %c96_177 = arith.constant 96 : index
    %c0_178 = arith.constant 0 : index
    %480 = vector.load %arg6[%c1_176, %c96_177, %c0_178] : memref<2x352x128xbf16, #tpu.memory_space<vmem>>, vector<1x32x32xbf16>
    %481 = vector.shape_cast %480 : vector<1x32x32xbf16> to vector<32x32xbf16>
    %cst_179 = arith.constant dense<0.000000e+00> : vector<8x32xf32>
    %482 = tpu.matmul %479, %481, %cst_179 {dimension_numbers = #tpu.dot_dimension_numbers<[1], [0], [0], [1], [0, 0, 1, 1], [], []>} : vector<8x32xbf16>, vector<32x32xbf16>, vector<8x32xf32> -> vector<8x32xf32>
    %c1_180 = arith.constant 1 : index
    %c3_181 = arith.constant 3 : index
    %c0_182 = arith.constant 0 : index
    %483 = vector.load %arg7[%c1_180, %c3_181, %c0_182] : memref<2x16x128xf32, #tpu.memory_space<vmem>>, vector<1x1x32xf32>
    %484 = vector.shape_cast %483 : vector<1x1x32xf32> to vector<1x32xf32>
    %485 = vector.broadcast %484 : vector<1x32xf32> to vector<8x32xf32>
    %486 = arith.addf %482, %485 : vector<8x32xf32>
    %487 = arith.addf %370, %486 : vector<8x32xf32>
    %c1_183 = arith.constant 1 : index
    %c4_184 = arith.constant 4 : index
    %c0_185 = arith.constant 0 : index
    %488 = vector.load %arg7[%c1_183, %c4_184, %c0_185] : memref<2x16x128xf32, #tpu.memory_space<vmem>>, vector<1x1x32xf32>
    %489 = vector.shape_cast %488 : vector<1x1x32xf32> to vector<1x32xf32>
    %c1_186 = arith.constant 1 : index
    %c5_187 = arith.constant 5 : index
    %c0_188 = arith.constant 0 : index
    %490 = vector.load %arg7[%c1_186, %c5_187, %c0_188] : memref<2x16x128xf32, #tpu.memory_space<vmem>>, vector<1x1x32xf32>
    %491 = vector.shape_cast %490 : vector<1x1x32xf32> to vector<1x32xf32>
    %cst_189 = arith.constant dense<0.000000e+00> : vector<8xf32>
    %492 = vector.multi_reduction <add>, %487, %cst_189 [1] : vector<8x32xf32> to vector<8xf32>
    %493 = vector.shape_cast %492 : vector<8xf32> to vector<8x1xf32>
    %cst_190 = arith.constant 3.200000e+01 : f32
    %494 = vector.broadcast %cst_190 : f32 to vector<8x1xf32>
    %495 = arith.divf %493, %494 : vector<8x1xf32>
    %496 = vector.broadcast %495 : vector<8x1xf32> to vector<8x32xf32>
    %497 = arith.subf %487, %496 : vector<8x32xf32>
    %498 = arith.mulf %497, %497 : vector<8x32xf32>
    %cst_191 = arith.constant dense<0.000000e+00> : vector<8xf32>
    %499 = vector.multi_reduction <add>, %498, %cst_191 [1] : vector<8x32xf32> to vector<8xf32>
    %500 = vector.shape_cast %499 : vector<8xf32> to vector<8x1xf32>
    %cst_192 = arith.constant 3.200000e+01 : f32
    %501 = vector.broadcast %cst_192 : f32 to vector<8x1xf32>
    %502 = arith.divf %500, %501 : vector<8x1xf32>
    %503 = vector.broadcast %495 : vector<8x1xf32> to vector<8x32xf32>
    %504 = arith.subf %487, %503 : vector<8x32xf32>
    %cst_193 = arith.constant 9.99999974E-6 : f32
    %505 = vector.broadcast %cst_193 : f32 to vector<8x1xf32>
    %506 = arith.addf %502, %505 : vector<8x1xf32>
    %507 = math.rsqrt %506 : vector<8x1xf32>
    %508 = vector.broadcast %507 : vector<8x1xf32> to vector<8x32xf32>
    %509 = arith.mulf %504, %508 : vector<8x32xf32>
    %510 = vector.broadcast %489 : vector<1x32xf32> to vector<8x32xf32>
    %511 = arith.mulf %509, %510 : vector<8x32xf32>
    %512 = vector.broadcast %491 : vector<1x32xf32> to vector<8x32xf32>
    %513 = arith.addf %511, %512 : vector<8x32xf32>
    %514 = arith.truncf %513 : vector<8x32xf32> to vector<8x32xbf16>
    %c1_194 = arith.constant 1 : index
    %c128_195 = arith.constant 128 : index
    %c0_196 = arith.constant 0 : index
    %515 = vector.load %arg6[%c1_194, %c128_195, %c0_196] : memref<2x352x128xbf16, #tpu.memory_space<vmem>>, vector<1x32x32xbf16>
    %516 = vector.shape_cast %515 : vector<1x32x32xbf16> to vector<32x32xbf16>
    %cst_197 = arith.constant dense<0.000000e+00> : vector<8x32xf32>
    %517 = tpu.matmul %514, %516, %cst_197 {dimension_numbers = #tpu.dot_dimension_numbers<[1], [0], [0], [1], [0, 0, 1, 1], [], []>} : vector<8x32xbf16>, vector<32x32xbf16>, vector<8x32xf32> -> vector<8x32xf32>
    %c1_198 = arith.constant 1 : index
    %c6_199 = arith.constant 6 : index
    %c0_200 = arith.constant 0 : index
    %518 = vector.load %arg7[%c1_198, %c6_199, %c0_200] : memref<2x16x128xf32, #tpu.memory_space<vmem>>, vector<1x1x32xf32>
    %519 = vector.shape_cast %518 : vector<1x1x32xf32> to vector<1x32xf32>
    %520 = vector.broadcast %519 : vector<1x32xf32> to vector<8x32xf32>
    %521 = arith.addf %517, %520 : vector<8x32xf32>
    %c1_201 = arith.constant 1 : index
    %c160_202 = arith.constant 160 : index
    %c0_203 = arith.constant 0 : index
    %522 = vector.load %arg6[%c1_201, %c160_202, %c0_203] : memref<2x352x128xbf16, #tpu.memory_space<vmem>>, vector<1x32x32xbf16>
    %523 = vector.shape_cast %522 : vector<1x32x32xbf16> to vector<32x32xbf16>
    %cst_204 = arith.constant dense<0.000000e+00> : vector<16x32xf32>
    %524 = tpu.matmul %6, %523, %cst_204 {dimension_numbers = #tpu.dot_dimension_numbers<[1], [0], [0], [1], [0, 0, 1, 1], [], []>} : vector<16x32xbf16>, vector<32x32xbf16>, vector<16x32xf32> -> vector<16x32xf32>
    %c1_205 = arith.constant 1 : index
    %c7_206 = arith.constant 7 : index
    %c0_207 = arith.constant 0 : index
    %525 = vector.load %arg7[%c1_205, %c7_206, %c0_207] : memref<2x16x128xf32, #tpu.memory_space<vmem>>, vector<1x1x32xf32>
    %526 = vector.shape_cast %525 : vector<1x1x32xf32> to vector<1x32xf32>
    %527 = vector.broadcast %526 : vector<1x32xf32> to vector<16x32xf32>
    %528 = arith.addf %524, %527 : vector<16x32xf32>
    %529 = arith.truncf %528 : vector<16x32xf32> to vector<16x32xbf16>
    %c1_208 = arith.constant 1 : index
    %c192_209 = arith.constant 192 : index
    %c0_210 = arith.constant 0 : index
    %530 = vector.load %arg6[%c1_208, %c192_209, %c0_210] : memref<2x352x128xbf16, #tpu.memory_space<vmem>>, vector<1x32x32xbf16>
    %531 = vector.shape_cast %530 : vector<1x32x32xbf16> to vector<32x32xbf16>
    %cst_211 = arith.constant dense<0.000000e+00> : vector<16x32xf32>
    %532 = tpu.matmul %6, %531, %cst_211 {dimension_numbers = #tpu.dot_dimension_numbers<[1], [0], [0], [1], [0, 0, 1, 1], [], []>} : vector<16x32xbf16>, vector<32x32xbf16>, vector<16x32xf32> -> vector<16x32xf32>
    %c1_212 = arith.constant 1 : index
    %c8_213 = arith.constant 8 : index
    %c0_214 = arith.constant 0 : index
    %533 = vector.load %arg7[%c1_212, %c8_213, %c0_214] : memref<2x16x128xf32, #tpu.memory_space<vmem>>, vector<1x1x32xf32>
    %534 = vector.shape_cast %533 : vector<1x1x32xf32> to vector<1x32xf32>
    %535 = vector.broadcast %534 : vector<1x32xf32> to vector<16x32xf32>
    %536 = arith.addf %532, %535 : vector<16x32xf32>
    %537 = arith.truncf %536 : vector<16x32xf32> to vector<16x32xbf16>
    %538 = arith.truncf %521 : vector<8x32xf32> to vector<8x32xbf16>
    %539 = vector.broadcast %19 : vector<1x32xbf16> to vector<8x32xbf16>
    %540 = arith.mulf %538, %539 : vector<8x32xbf16>
    %cst_215 = arith.constant dense<0.000000e+00> : vector<8x16xf32>
    %541 = tpu.matmul %540, %529, %cst_215 {dimension_numbers = #tpu.dot_dimension_numbers<[1], [1], [0], [0], [0, 0, 1, 0], [], []>} : vector<8x32xbf16>, vector<16x32xbf16>, vector<8x16xf32> -> vector<8x16xf32>
    %cst_216 = arith.constant 0.353553385 : f32
    %542 = vector.broadcast %cst_216 : f32 to vector<8x16xf32>
    %543 = arith.mulf %541, %542 : vector<8x16xf32>
    %cst_217 = arith.constant dense<0xFF800000> : vector<8xf32>
    %544 = vector.multi_reduction <maximumf>, %543, %cst_217 [1] : vector<8x16xf32> to vector<8xf32>
    %545 = vector.shape_cast %544 : vector<8xf32> to vector<8x1xf32>
    %546 = vector.broadcast %545 : vector<8x1xf32> to vector<8x16xf32>
    %547 = arith.subf %543, %546 : vector<8x16xf32>
    %548 = math.exp %547 : vector<8x16xf32>
    %cst_218 = arith.constant dense<0.000000e+00> : vector<8xf32>
    %549 = vector.multi_reduction <add>, %548, %cst_218 [1] : vector<8x16xf32> to vector<8xf32>
    %550 = vector.shape_cast %549 : vector<8xf32> to vector<8x1xf32>
    %551 = tpu.reciprocal %550 {approx = true} : vector<8x1xf32> -> vector<8x1xf32>
    %552 = vector.broadcast %551 : vector<8x1xf32> to vector<8x16xf32>
    %553 = arith.mulf %548, %552 : vector<8x16xf32>
    %554 = arith.truncf %553 : vector<8x16xf32> to vector<8x16xbf16>
    %555 = vector.broadcast %19 : vector<1x32xbf16> to vector<16x32xbf16>
    %556 = arith.mulf %537, %555 : vector<16x32xbf16>
    %cst_219 = arith.constant dense<0.000000e+00> : vector<8x32xf32>
    %557 = tpu.matmul %554, %556, %cst_219 {dimension_numbers = #tpu.dot_dimension_numbers<[1], [0], [0], [1], [0, 0, 1, 1], [], []>} : vector<8x16xbf16>, vector<16x32xbf16>, vector<8x32xf32> -> vector<8x32xf32>
    %558 = vector.broadcast %27 : vector<1x32xbf16> to vector<8x32xbf16>
    %559 = arith.mulf %538, %558 : vector<8x32xbf16>
    %cst_220 = arith.constant dense<0.000000e+00> : vector<8x16xf32>
    %560 = tpu.matmul %559, %529, %cst_220 {dimension_numbers = #tpu.dot_dimension_numbers<[1], [1], [0], [0], [0, 0, 1, 0], [], []>} : vector<8x32xbf16>, vector<16x32xbf16>, vector<8x16xf32> -> vector<8x16xf32>
    %cst_221 = arith.constant 0.353553385 : f32
    %561 = vector.broadcast %cst_221 : f32 to vector<8x16xf32>
    %562 = arith.mulf %560, %561 : vector<8x16xf32>
    %cst_222 = arith.constant dense<0xFF800000> : vector<8xf32>
    %563 = vector.multi_reduction <maximumf>, %562, %cst_222 [1] : vector<8x16xf32> to vector<8xf32>
    %564 = vector.shape_cast %563 : vector<8xf32> to vector<8x1xf32>
    %565 = vector.broadcast %564 : vector<8x1xf32> to vector<8x16xf32>
    %566 = arith.subf %562, %565 : vector<8x16xf32>
    %567 = math.exp %566 : vector<8x16xf32>
    %cst_223 = arith.constant dense<0.000000e+00> : vector<8xf32>
    %568 = vector.multi_reduction <add>, %567, %cst_223 [1] : vector<8x16xf32> to vector<8xf32>
    %569 = vector.shape_cast %568 : vector<8xf32> to vector<8x1xf32>
    %570 = tpu.reciprocal %569 {approx = true} : vector<8x1xf32> -> vector<8x1xf32>
    %571 = vector.broadcast %570 : vector<8x1xf32> to vector<8x16xf32>
    %572 = arith.mulf %567, %571 : vector<8x16xf32>
    %573 = arith.truncf %572 : vector<8x16xf32> to vector<8x16xbf16>
    %574 = vector.broadcast %27 : vector<1x32xbf16> to vector<16x32xbf16>
    %575 = arith.mulf %537, %574 : vector<16x32xbf16>
    %cst_224 = arith.constant dense<0.000000e+00> : vector<8x32xf32>
    %576 = tpu.matmul %573, %575, %cst_224 {dimension_numbers = #tpu.dot_dimension_numbers<[1], [0], [0], [1], [0, 0, 1, 1], [], []>} : vector<8x16xbf16>, vector<16x32xbf16>, vector<8x32xf32> -> vector<8x32xf32>
    %577 = arith.addf %557, %576 : vector<8x32xf32>
    %578 = vector.broadcast %35 : vector<1x32xbf16> to vector<8x32xbf16>
    %579 = arith.mulf %538, %578 : vector<8x32xbf16>
    %cst_225 = arith.constant dense<0.000000e+00> : vector<8x16xf32>
    %580 = tpu.matmul %579, %529, %cst_225 {dimension_numbers = #tpu.dot_dimension_numbers<[1], [1], [0], [0], [0, 0, 1, 0], [], []>} : vector<8x32xbf16>, vector<16x32xbf16>, vector<8x16xf32> -> vector<8x16xf32>
    %cst_226 = arith.constant 0.353553385 : f32
    %581 = vector.broadcast %cst_226 : f32 to vector<8x16xf32>
    %582 = arith.mulf %580, %581 : vector<8x16xf32>
    %cst_227 = arith.constant dense<0xFF800000> : vector<8xf32>
    %583 = vector.multi_reduction <maximumf>, %582, %cst_227 [1] : vector<8x16xf32> to vector<8xf32>
    %584 = vector.shape_cast %583 : vector<8xf32> to vector<8x1xf32>
    %585 = vector.broadcast %584 : vector<8x1xf32> to vector<8x16xf32>
    %586 = arith.subf %582, %585 : vector<8x16xf32>
    %587 = math.exp %586 : vector<8x16xf32>
    %cst_228 = arith.constant dense<0.000000e+00> : vector<8xf32>
    %588 = vector.multi_reduction <add>, %587, %cst_228 [1] : vector<8x16xf32> to vector<8xf32>
    %589 = vector.shape_cast %588 : vector<8xf32> to vector<8x1xf32>
    %590 = tpu.reciprocal %589 {approx = true} : vector<8x1xf32> -> vector<8x1xf32>
    %591 = vector.broadcast %590 : vector<8x1xf32> to vector<8x16xf32>
    %592 = arith.mulf %587, %591 : vector<8x16xf32>
    %593 = arith.truncf %592 : vector<8x16xf32> to vector<8x16xbf16>
    %594 = vector.broadcast %35 : vector<1x32xbf16> to vector<16x32xbf16>
    %595 = arith.mulf %537, %594 : vector<16x32xbf16>
    %cst_229 = arith.constant dense<0.000000e+00> : vector<8x32xf32>
    %596 = tpu.matmul %593, %595, %cst_229 {dimension_numbers = #tpu.dot_dimension_numbers<[1], [0], [0], [1], [0, 0, 1, 1], [], []>} : vector<8x16xbf16>, vector<16x32xbf16>, vector<8x32xf32> -> vector<8x32xf32>
    %597 = arith.addf %577, %596 : vector<8x32xf32>
    %598 = vector.broadcast %43 : vector<1x32xbf16> to vector<8x32xbf16>
    %599 = arith.mulf %538, %598 : vector<8x32xbf16>
    %cst_230 = arith.constant dense<0.000000e+00> : vector<8x16xf32>
    %600 = tpu.matmul %599, %529, %cst_230 {dimension_numbers = #tpu.dot_dimension_numbers<[1], [1], [0], [0], [0, 0, 1, 0], [], []>} : vector<8x32xbf16>, vector<16x32xbf16>, vector<8x16xf32> -> vector<8x16xf32>
    %cst_231 = arith.constant 0.353553385 : f32
    %601 = vector.broadcast %cst_231 : f32 to vector<8x16xf32>
    %602 = arith.mulf %600, %601 : vector<8x16xf32>
    %cst_232 = arith.constant dense<0xFF800000> : vector<8xf32>
    %603 = vector.multi_reduction <maximumf>, %602, %cst_232 [1] : vector<8x16xf32> to vector<8xf32>
    %604 = vector.shape_cast %603 : vector<8xf32> to vector<8x1xf32>
    %605 = vector.broadcast %604 : vector<8x1xf32> to vector<8x16xf32>
    %606 = arith.subf %602, %605 : vector<8x16xf32>
    %607 = math.exp %606 : vector<8x16xf32>
    %cst_233 = arith.constant dense<0.000000e+00> : vector<8xf32>
    %608 = vector.multi_reduction <add>, %607, %cst_233 [1] : vector<8x16xf32> to vector<8xf32>
    %609 = vector.shape_cast %608 : vector<8xf32> to vector<8x1xf32>
    %610 = tpu.reciprocal %609 {approx = true} : vector<8x1xf32> -> vector<8x1xf32>
    %611 = vector.broadcast %610 : vector<8x1xf32> to vector<8x16xf32>
    %612 = arith.mulf %607, %611 : vector<8x16xf32>
    %613 = arith.truncf %612 : vector<8x16xf32> to vector<8x16xbf16>
    %614 = vector.broadcast %43 : vector<1x32xbf16> to vector<16x32xbf16>
    %615 = arith.mulf %537, %614 : vector<16x32xbf16>
    %cst_234 = arith.constant dense<0.000000e+00> : vector<8x32xf32>
    %616 = tpu.matmul %613, %615, %cst_234 {dimension_numbers = #tpu.dot_dimension_numbers<[1], [0], [0], [1], [0, 0, 1, 1], [], []>} : vector<8x16xbf16>, vector<16x32xbf16>, vector<8x32xf32> -> vector<8x32xf32>
    %617 = arith.addf %597, %616 : vector<8x32xf32>
    %618 = arith.truncf %617 : vector<8x32xf32> to vector<8x32xbf16>
    %c1_235 = arith.constant 1 : index
    %c224_236 = arith.constant 224 : index
    %c0_237 = arith.constant 0 : index
    %619 = vector.load %arg6[%c1_235, %c224_236, %c0_237] : memref<2x352x128xbf16, #tpu.memory_space<vmem>>, vector<1x32x32xbf16>
    %620 = vector.shape_cast %619 : vector<1x32x32xbf16> to vector<32x32xbf16>
    %cst_238 = arith.constant dense<0.000000e+00> : vector<8x32xf32>
    %621 = tpu.matmul %618, %620, %cst_238 {dimension_numbers = #tpu.dot_dimension_numbers<[1], [0], [0], [1], [0, 0, 1, 1], [], []>} : vector<8x32xbf16>, vector<32x32xbf16>, vector<8x32xf32> -> vector<8x32xf32>
    %c1_239 = arith.constant 1 : index
    %c9_240 = arith.constant 9 : index
    %c0_241 = arith.constant 0 : index
    %622 = vector.load %arg7[%c1_239, %c9_240, %c0_241] : memref<2x16x128xf32, #tpu.memory_space<vmem>>, vector<1x1x32xf32>
    %623 = vector.shape_cast %622 : vector<1x1x32xf32> to vector<1x32xf32>
    %624 = vector.broadcast %623 : vector<1x32xf32> to vector<8x32xf32>
    %625 = arith.addf %621, %624 : vector<8x32xf32>
    %626 = arith.addf %513, %625 : vector<8x32xf32>
    %c1_242 = arith.constant 1 : index
    %c10_243 = arith.constant 10 : index
    %c0_244 = arith.constant 0 : index
    %627 = vector.load %arg7[%c1_242, %c10_243, %c0_244] : memref<2x16x128xf32, #tpu.memory_space<vmem>>, vector<1x1x32xf32>
    %628 = vector.shape_cast %627 : vector<1x1x32xf32> to vector<1x32xf32>
    %c1_245 = arith.constant 1 : index
    %c11_246 = arith.constant 11 : index
    %c0_247 = arith.constant 0 : index
    %629 = vector.load %arg7[%c1_245, %c11_246, %c0_247] : memref<2x16x128xf32, #tpu.memory_space<vmem>>, vector<1x1x32xf32>
    %630 = vector.shape_cast %629 : vector<1x1x32xf32> to vector<1x32xf32>
    %cst_248 = arith.constant dense<0.000000e+00> : vector<8xf32>
    %631 = vector.multi_reduction <add>, %626, %cst_248 [1] : vector<8x32xf32> to vector<8xf32>
    %632 = vector.shape_cast %631 : vector<8xf32> to vector<8x1xf32>
    %cst_249 = arith.constant 3.200000e+01 : f32
    %633 = vector.broadcast %cst_249 : f32 to vector<8x1xf32>
    %634 = arith.divf %632, %633 : vector<8x1xf32>
    %635 = vector.broadcast %634 : vector<8x1xf32> to vector<8x32xf32>
    %636 = arith.subf %626, %635 : vector<8x32xf32>
    %637 = arith.mulf %636, %636 : vector<8x32xf32>
    %cst_250 = arith.constant dense<0.000000e+00> : vector<8xf32>
    %638 = vector.multi_reduction <add>, %637, %cst_250 [1] : vector<8x32xf32> to vector<8xf32>
    %639 = vector.shape_cast %638 : vector<8xf32> to vector<8x1xf32>
    %cst_251 = arith.constant 3.200000e+01 : f32
    %640 = vector.broadcast %cst_251 : f32 to vector<8x1xf32>
    %641 = arith.divf %639, %640 : vector<8x1xf32>
    %642 = vector.broadcast %634 : vector<8x1xf32> to vector<8x32xf32>
    %643 = arith.subf %626, %642 : vector<8x32xf32>
    %cst_252 = arith.constant 9.99999974E-6 : f32
    %644 = vector.broadcast %cst_252 : f32 to vector<8x1xf32>
    %645 = arith.addf %641, %644 : vector<8x1xf32>
    %646 = math.rsqrt %645 : vector<8x1xf32>
    %647 = vector.broadcast %646 : vector<8x1xf32> to vector<8x32xf32>
    %648 = arith.mulf %643, %647 : vector<8x32xf32>
    %649 = vector.broadcast %628 : vector<1x32xf32> to vector<8x32xf32>
    %650 = arith.mulf %648, %649 : vector<8x32xf32>
    %651 = vector.broadcast %630 : vector<1x32xf32> to vector<8x32xf32>
    %652 = arith.addf %650, %651 : vector<8x32xf32>
    %653 = arith.truncf %652 : vector<8x32xf32> to vector<8x32xbf16>
    %c1_253 = arith.constant 1 : index
    %c256_254 = arith.constant 256 : index
    %c0_255 = arith.constant 0 : index
    %654 = vector.load %arg6[%c1_253, %c256_254, %c0_255] : memref<2x352x128xbf16, #tpu.memory_space<vmem>>, vector<1x32x64xbf16>
    %655 = vector.shape_cast %654 : vector<1x32x64xbf16> to vector<32x64xbf16>
    %cst_256 = arith.constant dense<0.000000e+00> : vector<8x64xf32>
    %656 = tpu.matmul %653, %655, %cst_256 {dimension_numbers = #tpu.dot_dimension_numbers<[1], [0], [0], [1], [0, 0, 1, 1], [], []>} : vector<8x32xbf16>, vector<32x64xbf16>, vector<8x64xf32> -> vector<8x64xf32>
    %c1_257 = arith.constant 1 : index
    %c12_258 = arith.constant 12 : index
    %c0_259 = arith.constant 0 : index
    %657 = vector.load %arg7[%c1_257, %c12_258, %c0_259] : memref<2x16x128xf32, #tpu.memory_space<vmem>>, vector<1x1x64xf32>
    %658 = vector.shape_cast %657 : vector<1x1x64xf32> to vector<1x64xf32>
    %659 = vector.broadcast %658 : vector<1x64xf32> to vector<8x64xf32>
    %660 = arith.addf %656, %659 : vector<8x64xf32>
    %cst_260 = arith.constant 0.000000e+00 : f32
    %661 = vector.broadcast %cst_260 : f32 to vector<8x64xf32>
    %662 = arith.maximumf %660, %661 : vector<8x64xf32>
    %663 = arith.truncf %662 : vector<8x64xf32> to vector<8x64xbf16>
    %c1_261 = arith.constant 1 : index
    %c288_262 = arith.constant 288 : index
    %c0_263 = arith.constant 0 : index
    %664 = vector.load %arg6[%c1_261, %c288_262, %c0_263] : memref<2x352x128xbf16, #tpu.memory_space<vmem>>, vector<1x64x32xbf16>
    %665 = vector.shape_cast %664 : vector<1x64x32xbf16> to vector<64x32xbf16>
    %cst_264 = arith.constant dense<0.000000e+00> : vector<8x32xf32>
    %666 = tpu.matmul %663, %665, %cst_264 {dimension_numbers = #tpu.dot_dimension_numbers<[1], [0], [0], [1], [0, 0, 1, 1], [], []>} : vector<8x64xbf16>, vector<64x32xbf16>, vector<8x32xf32> -> vector<8x32xf32>
    %c1_265 = arith.constant 1 : index
    %c13_266 = arith.constant 13 : index
    %c0_267 = arith.constant 0 : index
    %667 = vector.load %arg7[%c1_265, %c13_266, %c0_267] : memref<2x16x128xf32, #tpu.memory_space<vmem>>, vector<1x1x32xf32>
    %668 = vector.shape_cast %667 : vector<1x1x32xf32> to vector<1x32xf32>
    %669 = vector.broadcast %668 : vector<1x32xf32> to vector<8x32xf32>
    %670 = arith.addf %666, %669 : vector<8x32xf32>
    %671 = arith.addf %652, %670 : vector<8x32xf32>
    %c1_268 = arith.constant 1 : index
    %c14_269 = arith.constant 14 : index
    %c0_270 = arith.constant 0 : index
    %672 = vector.load %arg7[%c1_268, %c14_269, %c0_270] : memref<2x16x128xf32, #tpu.memory_space<vmem>>, vector<1x1x32xf32>
    %673 = vector.shape_cast %672 : vector<1x1x32xf32> to vector<1x32xf32>
    %c1_271 = arith.constant 1 : index
    %c15_272 = arith.constant 15 : index
    %c0_273 = arith.constant 0 : index
    %674 = vector.load %arg7[%c1_271, %c15_272, %c0_273] : memref<2x16x128xf32, #tpu.memory_space<vmem>>, vector<1x1x32xf32>
    %675 = vector.shape_cast %674 : vector<1x1x32xf32> to vector<1x32xf32>
    %cst_274 = arith.constant dense<0.000000e+00> : vector<8xf32>
    %676 = vector.multi_reduction <add>, %671, %cst_274 [1] : vector<8x32xf32> to vector<8xf32>
    %677 = vector.shape_cast %676 : vector<8xf32> to vector<8x1xf32>
    %cst_275 = arith.constant 3.200000e+01 : f32
    %678 = vector.broadcast %cst_275 : f32 to vector<8x1xf32>
    %679 = arith.divf %677, %678 : vector<8x1xf32>
    %680 = vector.broadcast %679 : vector<8x1xf32> to vector<8x32xf32>
    %681 = arith.subf %671, %680 : vector<8x32xf32>
    %682 = arith.mulf %681, %681 : vector<8x32xf32>
    %cst_276 = arith.constant dense<0.000000e+00> : vector<8xf32>
    %683 = vector.multi_reduction <add>, %682, %cst_276 [1] : vector<8x32xf32> to vector<8xf32>
    %684 = vector.shape_cast %683 : vector<8xf32> to vector<8x1xf32>
    %cst_277 = arith.constant 3.200000e+01 : f32
    %685 = vector.broadcast %cst_277 : f32 to vector<8x1xf32>
    %686 = arith.divf %684, %685 : vector<8x1xf32>
    %687 = vector.broadcast %679 : vector<8x1xf32> to vector<8x32xf32>
    %688 = arith.subf %671, %687 : vector<8x32xf32>
    %cst_278 = arith.constant 9.99999974E-6 : f32
    %689 = vector.broadcast %cst_278 : f32 to vector<8x1xf32>
    %690 = arith.addf %686, %689 : vector<8x1xf32>
    %691 = math.rsqrt %690 : vector<8x1xf32>
    %692 = vector.broadcast %691 : vector<8x1xf32> to vector<8x32xf32>
    %693 = arith.mulf %688, %692 : vector<8x32xf32>
    %694 = vector.broadcast %673 : vector<1x32xf32> to vector<8x32xf32>
    %695 = arith.mulf %693, %694 : vector<8x32xf32>
    %696 = vector.broadcast %675 : vector<1x32xf32> to vector<8x32xf32>
    %697 = arith.addf %695, %696 : vector<8x32xf32>
    %698 = arith.truncf %697 : vector<8x32xf32> to vector<8x32xbf16>
    %c0_279 = arith.constant 0 : index
    %c0_280 = arith.constant 0 : index
    %699 = vector.load %arg8[%c0_279, %c0_280] : memref<32x128xbf16, #tpu.memory_space<vmem>>, vector<32x128xbf16>
    %cst_281 = arith.constant dense<0.000000e+00> : vector<8x128xf32>
    %700 = tpu.matmul %698, %699, %cst_281 {dimension_numbers = #tpu.dot_dimension_numbers<[1], [0], [0], [1], [0, 0, 1, 1], [], []>} : vector<8x32xbf16>, vector<32x128xbf16>, vector<8x128xf32> -> vector<8x128xf32>
    %c0_282 = arith.constant 0 : index
    %c0_283 = arith.constant 0 : index
    %701 = vector.load %arg9[%c0_282, %c0_283] : memref<1x128xf32, #tpu.memory_space<vmem>>, vector<1x128xf32>
    %702 = vector.broadcast %701 : vector<1x128xf32> to vector<8x128xf32>
    %703 = arith.addf %700, %702 : vector<8x128xf32>
    %c0_284 = arith.constant 0 : index
    %c0_285 = arith.constant 0 : index
    %c0_286 = arith.constant 0 : index
    %704 = vector.load %arg10[%c0_284, %c0_285, %c0_286] : memref<1x8x128xf32, #tpu.memory_space<vmem>>, vector<1x8x128xf32>
    %705 = vector.shape_cast %704 : vector<1x8x128xf32> to vector<8x128xf32>
    %706 = vector.shape_cast %703 : vector<8x128xf32> to vector<1x8x128xf32>
    tpu.vector_store %arg10[%c0_284, %c0_285, %c0_286], %706 {strides = array<i32>} : memref<1x8x128xf32, #tpu.memory_space<vmem>>, vector<1x8x128xf32>,
    return
  }
  func.func @transform_0(%arg0: i32) -> (i32, i32, i32) {
    %c0_i32 = arith.constant 0 : i32
    %c0_i32_0 = arith.constant 0 : i32
    %c0_i32_1 = arith.constant 0 : i32
    return %arg0, %c0_i32, %c0_i32_0 : i32, i32, i32
  }
  func.func @transform_1(%arg0: i32) -> (i32, i32, i32) {
    %c0_i32 = arith.constant 0 : i32
    %c0_i32_0 = arith.constant 0 : i32
    %c0_i32_1 = arith.constant 0 : i32
    return %arg0, %c0_i32, %c0_i32_0 : i32, i32, i32
  }
  func.func @transform_2(%arg0: i32) -> (i32, i32, i32) {
    %c0_i32 = arith.constant 0 : i32
    %c0_i32_0 = arith.constant 0 : i32
    %c0_i32_1 = arith.constant 0 : i32
    return %arg0, %c0_i32, %c0_i32_0 : i32, i32, i32
  }
  func.func @transform_3(%arg0: i32) -> (i32, i32) {
    %c0_i32 = arith.constant 0 : i32
    %c0_i32_0 = arith.constant 0 : i32
    %c0_i32_1 = arith.constant 0 : i32
    return %c0_i32, %c0_i32_0 : i32, i32
  }
  func.func @transform_4(%arg0: i32) -> (i32, i32) {
    %c0_i32 = arith.constant 0 : i32
    %c0_i32_0 = arith.constant 0 : i32
    %c0_i32_1 = arith.constant 0 : i32
    return %c0_i32, %c0_i32_0 : i32, i32
  }
  func.func @transform_5(%arg0: i32) -> (i32, i32, i32) {
    %c0_i32 = arith.constant 0 : i32
    %c0_i32_0 = arith.constant 0 : i32
    %c0_i32_1 = arith.constant 0 : i32
    %c0_i32_2 = arith.constant 0 : i32
    return %c0_i32, %c0_i32_0, %c0_i32_1 : i32, i32, i32
  }
  func.func @transform_6(%arg0: i32) -> (i32, i32, i32) {
    %c0_i32 = arith.constant 0 : i32
    %c0_i32_0 = arith.constant 0 : i32
    %c0_i32_1 = arith.constant 0 : i32
    %c0_i32_2 = arith.constant 0 : i32
    return %c0_i32, %c0_i32_0, %c0_i32_1 : i32, i32, i32
  }
  func.func @transform_7(%arg0: i32) -> (i32, i32) {
    %c0_i32 = arith.constant 0 : i32
    %c0_i32_0 = arith.constant 0 : i32
    %c0_i32_1 = arith.constant 0 : i32
    return %c0_i32, %c0_i32_0 : i32, i32
  }
  func.func @transform_8(%arg0: i32) -> (i32, i32) {
    %c0_i32 = arith.constant 0 : i32
    %c0_i32_0 = arith.constant 0 : i32
    %c0_i32_1 = arith.constant 0 : i32
    return %c0_i32, %c0_i32_0 : i32, i32
  }
  func.func @transform_9(%arg0: i32) -> (i32, i32, i32) {
    %c0_i32 = arith.constant 0 : i32
    %c0_i32_0 = arith.constant 0 : i32
    %c0_i32_1 = arith.constant 0 : i32
    return %arg0, %c0_i32, %c0_i32_0 : i32, i32, i32
  }
}

</mosaic_0001>

<bundles_post_ra>
// kernel: model_forward.1
= control target key start
LH: loop header
LB: loop body
LE: loop exit
PB: predicated region body
PF: predicated region fallthrough
CT: control target
= control target key end

     0   :  { %14 = vsyncpa [#allocation3], 0  ;;  %s6668_s0 = inlined_call_operand.vmem [shape: f32[2,8,32], index: 0, kind: input, shape index: {}]   ;;  %s6669_s1 = inlined_call_operand.vmem [shape: f32[2,8,8], index: 1, kind: input, shape index: {}]   ;;  %s6670_s2 = inlined_call_operand.vmem [shape: bf16[2,16,1024], index: 2, kind: input, shape index: {}]   ;;  %s6671_s3 = inlined_call_operand.vmem [shape: bf16[1024,32], index: 3, kind: input, shape index: {}]   ;;  %s6672_s4 = inlined_call_operand.vmem [shape: f32[16,32], index: 4, kind: input, shape index: {}]   ;;  %s6673_s5 = inlined_call_operand.vmem [shape: bf16[2,352,128], index: 5, kind: input, shape index: {}]   ;;  %s6674_s6 = inlined_call_operand.vmem [shape: f32[2,16,128], index: 6, kind: input, shape index: {}]   ;;  %s6675_s7 = inlined_call_operand.vmem [shape: bf16[32,128], index: 7, kind: input, shape index: {}]   ;;  %s6676_s8 = inlined_call_operand.vmem [shape: f32[1,128], index: 8, kind: input, shape index: {}]   ;;  %s6677_s9 = inlined_call_operand.hbm [shape: f32[2,8,128], index: 9, kind: output, shape index: {}]  }
   0x1   :  { %16 = vsyncpa [#allocation3 + $0x1], 0  ;;  %s5700_s30 = smov 0   ;;  %s5702_s10 = smov 0  }
   0x2   :  { %s5704_s11 = smov 0   ;;  %s5706_s12 = smov 0  }
   0x3 LB: > { %s5721_s13 = sadd.s32 4294967295, %s5645_s12   ;;  %s4439_s14 = sadd.s32 4294967294, %s5645_s12   ;;  %s5645_s12 = sphi %s5706_s12, %s6683_s12   ;;  %s5641_s11 = sphi %s5704_s11, %s6682_s11   ;;  %s5637_s10 = sphi %s5702_s10, %s6681_s10   ;;  %s5633_s30 = sphi %s5700_s30, %s6680_s30  }
   0x4   : > { %s5725_s15 = sadd.s32 1, %s5645_s12   ;;  %s233_s16 = sadd.s32 1, %s5641_s11 }
   0x5   : > { %s230_s17 = ssub.s32 %s5645_s12, %s5725_s15  ;;  %p243_p0 = scmp.ne.s32.totalorder %s5641_s11, %s5637_s10 }
   0x6   : > { %p231_p1 = scmp.eq.s32.totalorder %s230_s17, 0  ;;  %p244_p2 = scmp.eq.s32.totalorder %s5721_s13, 1 }
   0x7   : > { %p249_p3 = scmp.ne.s32.totalorder %s5637_s10, %s5633_s30  ;;  %p250_p4 = scmp.eq.s32.totalorder %s4439_s14, 1 }
   0x8   : > { %s5736_s18 = scalar_select %p231_p1, %s5641_s11, %s233_s16  }
   0x9   : > { %p5738_p5 = por %p244_p2, %p243_p0  ;;  %p5742_p6 = por %p250_p4, %p249_p3 }
   0xa   : > { %p4442_p7 = scmp.ge.s32.totalorder %s5645_s12, 1  ;;  %p308_p8 = scmp.lt.s32.totalorder %s5645_s12, 3 }
   0xc   : > { %p309_p9 = pnand %p4442_p7, %p308_p8 }
   0xd   : > { %v5397_v0 = vld [vmem:[%s6671_s3 + $0x40] sm:$0xff] (!%p309_p9)   ;;  %v5401_v4 = vld [vmem:[%s6671_s3 + $0x48] sm:$0xff] (!%p309_p9)   ;;  %v5405_v8 = vld [vmem:[%s6671_s3 + $0x50] sm:$0xff] (!%p309_p9)   ;;  %p352_p10 = scmp.lt.s32.totalorder (!%p309_p9), %s5721_s13, 1  ;;  %vm1143_vm0 = vcmask (!%p309_p9), 261120   ;;  %vm5648_vm1 = vmmov (!%p309_p9), 0  }
   0xe   : > { %312 = sbr.rel (%p309_p9) target bundleno = 7955 (0x1f13), region = 56  ;;  %v5398_v1 = vld [vmem:[%s6671_s3 + $0xc0] sm:$0xff] (!%p309_p9)   ;;  %4721 = vmatprep.subr.bf16.mxu0 (!%p309_p9), %v5397_v0  ;;  %v5402_v5 = vld [vmem:[%s6671_s3 + $0xc8] sm:$0xff] (!%p309_p9)   ;;  %v5406_v9 = vld [vmem:[%s6671_s3 + $0xd0] sm:$0xff] (!%p309_p9)   ;;  %vm1437_vm12 = vcmask (!%p309_p9), 1043456   ;;  %vm1361_vm13 = vcmask (!%p309_p9), 64512  }
   0xf   : > { %v5399_v2 = vld [vmem:[%s6671_s3] sm:$0xff] (!%p309_p9)   ;;  %4743 = vmatprep.subr.bf16.mxu1 (!%p309_p9), %v5398_v1  ;;  %v5403_v6 = vld [vmem:[%s6671_s3 + $0x8] sm:$0xff] (!%p309_p9)   ;;  %v5407_v10 = vld [vmem:[%s6671_s3 + $0x10] sm:$0xff] (!%p309_p9)   ;;  %vm2074_vm14 = vcmask (!%p309_p9), 130048   ;;  %vm2631_vm15 = vcmask (!%p309_p9), 523264   ;;  %s349_s29 = sand.u32 (!%p309_p9), 1, %s5637_s10  }
  0x10   : > { %v5400_v3 = vld [vmem:[%s6671_s3 + $0x80] sm:$0xff] (!%p309_p9)   ;;  %4722 = vmatpush3.bf16.msra.mxu0 (!%p309_p9), %v5399_v2  ;;  %v5404_v7 = vld [vmem:[%s6671_s3 + $0x88] sm:$0xff] (!%p309_p9)   ;;  %v5408_v11 = vld [vmem:[%s6671_s3 + $0x90] sm:$0xff] (!%p309_p9)   ;;  %s4443_s14 = sshll.u32 (!%p309_p9), %s349_s29, 3  ;;  %s4343_s25 = scalar_lea.sflag (!%p309_p9), [#allocation3], %s349_s29 }
  0x11   : > { %4744 = vmatpush3.bf16.msra.mxu1 (!%p309_p9), %v5400_v3  ;;  %4723 = vmatprep.subr.bf16.mxu0 (!%p309_p9), %v5401_v4  ;;  %v5409_v12 = vld [vmem:[%s6671_s3 + $0x58] sm:$0xff] (!%p309_p9)   ;;  %v5413_v16 = vld [vmem:[%s6671_s3 + $0x60] sm:$0xff] (!%p309_p9)   ;;  %v5417_v20 = vld [vmem:[%s6671_s3 + $0x68] sm:$0xff] (!%p309_p9)   ;;  %s5649_s27 = smov (!%p309_p9), [#allocation2]  }
  0x12   : > { %4745 = vmatprep.subr.bf16.mxu1 (!%p309_p9), %v5402_v5  ;;  %v5410_v13 = vld [vmem:[%s6671_s3 + $0xd8] sm:$0xff] (!%p309_p9)   ;;  %v5414_v17 = vld [vmem:[%s6671_s3 + $0xe0] sm:$0xff] (!%p309_p9)   ;;  %v5418_v21 = vld [vmem:[%s6671_s3 + $0xe8] sm:$0xff] (!%p309_p9)  }
  0x13   : > { %v5411_v14 = vld [vmem:[%s6671_s3 + $0x18] sm:$0xff] (!%p309_p9)   ;;  %v5415_v18 = vld [vmem:[%s6671_s3 + $0x20] sm:$0xff] (!%p309_p9)   ;;  %v5419_v22 = vld [vmem:[%s6671_s3 + $0x28] sm:$0xff] (!%p309_p9)  }
  0x14   : > { %4724 = vmatpush3.bf16.msra.mxu0 (!%p309_p9), %v5403_v6  ;;  %v5412_v15 = vld [vmem:[%s6671_s3 + $0x98] sm:$0xff] (!%p309_p9)   ;;  %v5416_v19 = vld [vmem:[%s6671_s3 + $0xa0] sm:$0xff] (!%p309_p9)   ;;  %v5420_v23 = vld [vmem:[%s6671_s3 + $0xa8] sm:$0xff] (!%p309_p9)  }
  0x15   : > { %4746 = vmatpush3.bf16.msra.mxu1 %v5404_v7  ;;  %4725 = vmatprep.subr.bf16.mxu0 %v5405_v8  ;;  %s5819_s16 = scalar_select %p352_p10, %s5721_s13, 1  ;;  %v5421_v24 = vld [vmem:[%s6671_s3 + $0x70] sm:$0xff]   ;;  %v5425_v28 = vld [vmem:[%s6671_s3 + $0x78] sm:$0xff]   ;;  %v5429_v40 = vld [vmem:[%s6671_s3 + $0x140] sm:$0xff]  }
  0x16   : > { %4747 = vmatprep.subr.bf16.mxu1 %v5406_v9  ;;  %v5422_v25 = vld [vmem:[%s6671_s3 + $0xf0] sm:$0xff]   ;;  %v5426_v29 = vld [vmem:[%s6671_s3 + $0xf8] sm:$0xff]   ;;  %v5430_v41 = vld [vmem:[%s6671_s3 + $0x1c0] sm:$0xff]  }
  0x17   : > { %v5423_v26 = vld [vmem:[%s6671_s3 + $0x30] sm:$0xff]   ;;  %s4720_s28 = sshll.u32 %s5819_s16, 6  ;;  %v5427_v30 = vld [vmem:[%s6671_s3 + $0x38] sm:$0xff]   ;;  %v5431_v42 = vld [vmem:[%s6671_s3 + $0x100] sm:$0xff]   ;;  %s4444_s24 = sshll.u32 %s5819_s16, 3 }
  0x18   : > { %4726 = vmatpush3.bf16.msra.mxu0 %v5407_v10  ;;  %v5424_v27 = vld [vmem:[%s6671_s3 + $0xb0] sm:$0xff]   ;;  %s5846_s26 = scalar_lea.vmem %s6670_s2, %s4720_s28  ;;  %v5428_v31 = vld [vmem:[%s6671_s3 + $0xb8] sm:$0xff]   ;;  %v5432_v43 = vld [vmem:[%s6671_s3 + $0x180] sm:$0xff]   ;;  %s355_s28 = scalar_lea.vmem %s6668_s0, %s4444_s24 }
  0x19   : > { %4748 = vmatpush3.bf16.msra.mxu1 %v5408_v11  ;;  %4727 = vmatprep.subr.bf16.mxu0 %v5409_v12  ;;  %v366_v32 = vld [vmem:[%s5846_s26] sm:$0xff]  ;;  %v367_v34 = vld [vmem:[%s5846_s26 + $0x8] sm:$0xff]  ;;  %v5437_v48 = vld [vmem:[%s6671_s3 + $0x150] sm:$0xff]   ;;  %s359_s21 = scalar_lea.vmem %s6669_s1, %s4444_s24 }
  0x1a   : > { %4749 = vmatprep.subr.bf16.mxu1 %v5410_v13  ;;  %v370_v33 = vld [vmem:[%s5846_s26 + $0x20] sm:$0xff]  ;;  %v371_v37 = vld [vmem:[%s5846_s26 + $0x28] sm:$0xff]  ;;  %v5438_v49 = vld [vmem:[%s6671_s3 + $0x1d0] sm:$0xff]  }
  0x1b   : > { %v4448_v35 = vcombine.low %v366_v32, %v370_v33  ;;  %v4449_v36 = vcombine.high %v366_v32, %v370_v33  ;;  %v4450_v38 = vcombine.low %v367_v34, %v371_v37  ;;  %v4451_v39 = vcombine.high %v367_v34, %v371_v37  ;;  %v5433_v44 = vld [vmem:[%s6671_s3 + $0x148] sm:$0xff]   ;;  %v5439_v50 = vld [vmem:[%s6671_s3 + $0x110] sm:$0xff]   ;;  %v5441_v52 = vld [vmem:[%s6671_s3 + $0x158] sm:$0xff]  }
  0x1c   : > { %4728 = vmatpush3.bf16.msra.mxu0 %v5411_v14  ;;  %v5434_v45 = vld [vmem:[%s6671_s3 + $0x1c8] sm:$0xff]   ;;  %v5440_v51 = vld [vmem:[%s6671_s3 + $0x190] sm:$0xff]   ;;  %v5442_v53 = vld [vmem:[%s6671_s3 + $0x1d8] sm:$0xff]  }
  0x1d   : > { %4750 = vmatpush3.bf16.msra.mxu1 %v5412_v15  ;;  %4729 = vmatprep.subr.bf16.mxu0 %v5413_v16  ;;  %v5435_v46 = vld [vmem:[%s6671_s3 + $0x108] sm:$0xff]   ;;  %v5443_v54 = vld [vmem:[%s6671_s3 + $0x118] sm:$0xff]   ;;  %v5445_v56 = vld [vmem:[%s6671_s3 + $0x160] sm:$0xff]  }
  0x1e   : > { %4751 = vmatprep.subr.bf16.mxu1 %v5414_v17  ;;  %960 = vmatprep.mubr.bf16.mxu0 %v4449_v36  ;;  %v5436_v47 = vld [vmem:[%s6671_s3 + $0x188] sm:$0xff]   ;;  %v5444_v55 = vld [vmem:[%s6671_s3 + $0x198] sm:$0xff]   ;;  %v5446_v57 = vld [vmem:[%s6671_s3 + $0x1e0] sm:$0xff]   ;;  %v5647_v17 = vmov 0.0  }
  0x1f   : > { %1001 = vmatprep.mubr.bf16.mxu1 %v4451_v39  ;;  %v5447_v58 = vld [vmem:[%s6671_s3 + $0x120] sm:$0xff]   ;;  %v5449_v60 = vld [vmem:[%s6671_s3 + $0x168] sm:$0xff]   ;;  %v5453_v0 = vld [vmem:[%s6671_s3 + $0x170] sm:$0xff]  }
  0x20   : > { %4730 = vmatpush3.bf16.msra.mxu0 %v5415_v18  ;;  %v5448_v59 = vld [vmem:[%s6671_s3 + $0x1a0] sm:$0xff]   ;;  %v5450_v61 = vld [vmem:[%s6671_s3 + $0x1e8] sm:$0xff]   ;;  %v5454_v1 = vld [vmem:[%s6671_s3 + $0x1f0] sm:$0xff]  }
  0x21   : > { %4752 = vmatpush3.bf16.msra.mxu1 %v5416_v19  ;;  %4731 = vmatprep.subr.bf16.mxu0 %v5417_v20  ;;  %v5451_v62 = vld [vmem:[%s6671_s3 + $0x128] sm:$0xff]   ;;  %v5455_v2 = vld [vmem:[%s6671_s3 + $0x130] sm:$0xff]   ;;  %v5457_v4 = vld [vmem:[%s6671_s3 + $0x178] sm:$0xff]  }
  0x22   : > { %4753 = vmatprep.subr.bf16.mxu1 %v5418_v21  ;;  %v5452_v63 = vld [vmem:[%s6671_s3 + $0x1a8] sm:$0xff]   ;;  %v5456_v3 = vld [vmem:[%s6671_s3 + $0x1b0] sm:$0xff]   ;;  %v5458_v5 = vld [vmem:[%s6671_s3 + $0x1f8] sm:$0xff]  }
  0x23   : > { %v5459_v6 = vld [vmem:[%s6671_s3 + $0x138] sm:$0xff]   ;;  %v368_v8 = vld [vmem:[%s5846_s26 + $0x10] sm:$0xff]  ;;  %v5462_v18 = vld [vmem:[%s6673_s5] sm:$0xff]  }
  0x24   : > { %4732 = vmatpush3.bf16.msra.mxu0 %v5419_v22  ;;  %v5460_v7 = vld [vmem:[%s6671_s3 + $0x1b8] sm:$0xff]   ;;  %v372_v9 = vld [vmem:[%s5846_s26 + $0x30] sm:$0xff]  ;;  %v5464_v20 = vld [vmem:[%s6673_s5 + $0x8] sm:$0xff]  }
  0x25   : > { %4754 = vmatpush3.bf16.msra.mxu1 %v5420_v23  ;;  %4733 = vmatprep.subr.bf16.mxu0 %v5421_v24  ;;  %v4452_v10 = vcombine.low %v368_v8, %v372_v9  ;;  %v4453_v11 = vcombine.high %v368_v8, %v372_v9  ;;  %v369_v12 = vld [vmem:[%s5846_s26 + $0x18] sm:$0xff]  ;;  %v5461_v16 = vld [vmem:[%s6673_s5 + $0x10] sm:$0xff]   ;;  %v5979_v21 = vld [vmem:[%s355_s28] sm:$0xff]  ;;  %s4717_s28 = sshll.u32 %s5721_s13, 7 }
  0x26   : > { %4755 = vmatprep.subr.bf16.mxu1 %v5422_v25  ;;  %v373_v13 = vld [vmem:[%s5846_s26 + $0x38] sm:$0xff]  ;;  %v1121_v22 = vpack.c.bf16 %v5979_v21, %v5979_v21  ;;  %v5465_v23 = vld [vmem:[%s6673_s5 + $0x20] sm:$0xff]   ;;  %v5466_v24 = vld [vmem:[%s6673_s5 + $0x28] sm:$0xff]   ;;  %s6626_s23 = scalar_lea.hbm %s6677_s9, %s4717_s28 }
  0x27   : > { %v4454_v14 = vcombine.low %v369_v12, %v373_v13  ;;  %v4455_v15 = vcombine.high %v369_v12, %v373_v13  ;;  %v5463_v19 = vld [vmem:[%s6673_s5 + $0x18] sm:$0xff]   ;;  %v503_v34 = vld [vmem:[%s6672_s4 + $0x8] sm:$0xff] }
  0x28   : > { %4734 = vmatpush3.bf16.msra.mxu0 %v5423_v26 }
  0x29   : > { %4756 = vmatpush3.bf16.msra.mxu1 %v5424_v27  ;;  %4735 = vmatprep.subr.bf16.mxu0 %v5425_v28  ;;  %v502_v27 = vld [vmem:[%s6672_s4] sm:$0xff] }
  0x2a   : > { %4757 = vmatprep.subr.bf16.mxu1 %v5426_v29 }
  0x2c   : > { %4736 = vmatpush3.bf16.msra.mxu0 %v5427_v30 }
  0x2d   : > { %4758 = vmatpush3.bf16.msra.mxu1 %v5428_v31  ;;  %4765 = vmatprep.subr.bf16.mxu0 %v5429_v40 }
  0x2e   : > { %4787 = vmatprep.subr.bf16.mxu1 %v5430_v41 }
  0x2f   : > { %961 = vmatmul.mubr.bf16.vlgmr.msra.gmra.mrb[0].mxu0 %v4448_v35 }
  0x30   : > { %1002 = vmatmul.mubr.bf16.vlgmr.msra.gmra.mrb[0].mxu1 %v4450_v38  ;;  %4766 = vmatpush3.bf16.msra.mxu0 %v5431_v42 }
  0x31   : > { %4788 = vmatpush3.bf16.msra.mxu1 %v5432_v43  ;;  %4767 = vmatprep.subr.bf16.mxu0 %v5433_v44  ;;  %v1095_v43 = vlaneseq }
  0x32   : > { %4789 = vmatprep.subr.bf16.mxu1 %v5434_v45  ;;  %1042 = vmatprep.mubr.bf16.mxu0 %v4453_v11 }
  0x33   : > { %1083 = vmatprep.mubr.bf16.mxu1 %v4455_v15 }
  0x34   : > { %4768 = vmatpush3.bf16.msra.mxu0 %v5435_v46 }
  0x35   : > { %4790 = vmatpush3.bf16.msra.mxu1 %v5436_v47  ;;  %4769 = vmatprep.subr.bf16.mxu0 %v5437_v48  ;;  %v1096_v47 = vand.u32 127, %v1095_v43 }
  0x36   : > { %4791 = vmatprep.subr.bf16.mxu1 %v5438_v49 }
  0x37   : > { %vm1103_vm2 = vcmp.ge.s32.totalorder %v1096_v47, 8  ;;  %vm1104_vm3 = vcmp.lt.s32.totalorder %v1096_v47, 16  ;;  %vm1098_vm4 = vcmp.lt.s32.totalorder %v1096_v47, 8  ;;  %vm1109_vm6 = vcmp.ge.s32.totalorder %v1096_v47, 16 }
  0x38   : > { %4770 = vmatpush3.bf16.msra.mxu0 %v5439_v50  ;;  %vm1105_vm5 = vmand %vm1103_vm2, %vm1104_vm3  ;;  %v4520_v8 = vsel %vm1098_vm4, 1.0, %v5647_v17  ;;  %vm1110_vm7 = vcmp.lt.s32.totalorder %v1096_v47, 24  ;;  %vm1115_vm9 = vcmp.ge.s32.totalorder %v1096_v47, 24  ;;  %vm1116_vm10 = vcmp.lt.s32.totalorder %v1096_v47, 32 }
  0x39   : > { %4792 = vmatpush3.bf16.msra.mxu1 %v5440_v51  ;;  %4771 = vmatprep.subr.bf16.mxu0 %v5441_v52  ;;  %v4521_v9 = vsel %vm1105_vm5, 1.0, %v5647_v17  ;;  %vm1111_vm8 = vmand %vm1109_vm6, %vm1110_vm7 }
  0x3a   : > { %4793 = vmatprep.subr.bf16.mxu1 %v5442_v53  ;;  %v6026_v15 = vpack.c.bf16 %v4521_v9, %v4521_v9  ;;  %vm1117_vm11 = vmand %vm1115_vm9, %vm1116_vm10 }
  0x3c   : > { %4772 = vmatpush3.bf16.msra.mxu0 %v5443_v54 }
  0x3d   : > { %4794 = vmatpush3.bf16.msra.mxu1 %v5444_v55  ;;  %4773 = vmatprep.subr.bf16.mxu0 %v5445_v56 }
  0x3e   : > { %4795 = vmatprep.subr.bf16.mxu1 %v5446_v57 }
  0x40   : > { %4774 = vmatpush3.bf16.msra.mxu0 %v5447_v58 }
  0x41   : > { %4796 = vmatpush3.bf16.msra.mxu1 %v5448_v59  ;;  %4775 = vmatprep.subr.bf16.mxu0 %v5449_v60  ;;  %v4528_v60 = vld [vmem:[%s6674_s6 + $0x1] ss:$0 sm:$0xff] }
  0x42   : > { %4797 = vmatprep.subr.bf16.mxu1 %v5450_v61  ;;  %v4524_v61 = vld [vmem:[%s6674_s6] ss:$0 sm:$0xff] }
  0x44   : > { %4776 = vmatpush3.bf16.msra.mxu0 %v5451_v62 }
  0x45   : > { %4798 = vmatpush3.bf16.msra.mxu1 %v5452_v63  ;;  %4777 = vmatprep.subr.bf16.mxu0 %v5453_v0 }
  0x46   : > { %4799 = vmatprep.subr.bf16.mxu1 %v5454_v1 }
  0x48   : > { %4778 = vmatpush3.bf16.msra.mxu0 %v5455_v2 }
  0x49   : > { %4800 = vmatpush3.bf16.msra.mxu1 %v5456_v3  ;;  %4779 = vmatprep.subr.bf16.mxu0 %v5457_v4 }
  0x4a   : > { %4801 = vmatprep.subr.bf16.mxu1 %v5458_v5 }
  0x4c   : > { %4780 = vmatpush3.bf16.msra.mxu0 %v5459_v6 }
  0x4d   : > { %4802 = vmatpush3.bf16.msra.mxu1 %v5460_v7  ;;  %4940 = vmatprep.subr.bf16.mxu0 %v5647_v17 }
  0x4e   : > { %4948 = vmatprep.subr.bf16.mxu1 %v5647_v17 }
  0x4f   : > { %1043 = vmatmul.mubr.bf16.vlgmr.msra.gmra.mrb[4].mxu0 %v4452_v10 }
  0x50   : > { %1084 = vmatmul.mubr.bf16.vlgmr.msra.gmra.mrb[4].mxu1 %v4454_v14  ;;  %4941 = vmatpush3.bf16.msra.mxu0 %v5462_v18  ;;  %v6024_v14 = vpack.c.bf16 %v4520_v8, %v4520_v8 }
  0x51   : > { %4949 = vmatpush3.bf16.msra.mxu1 %v5461_v16  ;;  %4942 = vmatprep.subr.bf16.mxu0 %v5647_v17 }
  0x52   : > { %4950 = vmatprep.subr.bf16.mxu1 %v5647_v17  ;;  %4952 = vmatprep.mubr.msk.bf16.mxu1 %vm5648_vm1, %v5647_v17 }
  0x53   : > { %4944 = vmatprep.mubr.msk.bf16.mxu0 %vm5648_vm1, %v5647_v17 }
  0x54   : > { %4943 = vmatpush3.bf16.msra.mxu0 %v5464_v20  ;;  %v4522_v20 = vsel %vm1111_vm8, 1.0, %v5647_v17 }
  0x55   : > { %4951 = vmatpush3.bf16.msra.mxu1 %v5463_v19  ;;  %4956 = vmatprep.subr.bf16.mxu0 %v5647_v17 }
  0x56   : > { %4964 = vmatprep.subr.bf16.mxu1 %v5647_v17 }
  0x57   : > { %4945 = vmatmul.mubr.msk.bf16.vlgmr.msra.gmra.mrb[8].mxu0 %vm1143_vm0, %v1121_v22 }
  0x58   : > { %4953 = vmatmul.mubr.msk.bf16.vlgmr.msra.gmra.mrb[8].mxu1 %vm1143_vm0, %v1121_v22  ;;  %4960 = vmatprep.mubr.msk.bf16.mxu0 %vm5648_vm1, %v5647_v17 }
  0x59   : > { %4966 = vmatprep.mubr.msk.bf16.mxu1 %vm5648_vm1, %v5647_v17  ;;  %4957 = vmatpush3.bf16.msra.mxu0 %v5465_v23 }
  0x5a   : > { %4958 = vmatprep.subr.bf16.mxu0 %v5647_v17 }
  0x5d   : > { %4959 = vmatpush3.bf16.msra.mxu0 %v5466_v24  ;;  %v4523_v24 = vsel %vm1117_vm11, 1.0, %v5647_v17 }
  0x5e   : > { %4970 = vmatprep.subr.bf16.mxu0 %v5647_v17 }
  0x60   : > { %4961 = vmatmul.mubr.msk.bf16.vlgmr.msra.gmra.mrb[12].mxu0 %vm1143_vm0, %v1121_v22  ;;  %v6037_v22 = vpack.c.bf16 %v4522_v20, %v4522_v20 }
  0x61   : > { %4972 = vmatprep.mubr.msk.bf16.mxu0 %vm5648_vm1, %v5647_v17 }
 0x102   : > { %v4737_v25 = vpop.f32.mrb[0].mxu0 }
 0x103   : > { %v4759_v26 = vpop.f32.mrb[0].mxu1  ;;  %v4738_v28 = vpop.f32.mrb[1].mxu0 }
 0x104   : > { %v4739_v29 = vadd.f32 %v4738_v28, %v4737_v25  ;;  %v4760_v30 = vpop.f32.mrb[1].mxu1  ;;  %v4740_v31 = vpop.f32.mrb[2].mxu0  ;;  %v6047_v25 = vpack.c.bf16 %v4523_v24, %v4523_v24 }
 0x105   : > { %v4761_v32 = vadd.f32 %v4760_v30, %v4759_v26  ;;  %v4762_v33 = vpop.f32.mrb[2].mxu1  ;;  %v4741_v35 = vpop.f32.mrb[3].mxu0 }
 0x106   : > { %v963_v36 = vadd.f32 %v4739_v29, %v502_v27  ;;  %v4742_v37 = vadd.f32 %v4741_v35, %v4740_v31  ;;  %v4763_v38 = vpop.f32.mrb[3].mxu1  ;;  %v4532_v27 = vld [vmem:[%s6674_s6 + $0x2] ss:$0 sm:$0xff] }
 0x107   : > { %v4764_v39 = vadd.f32 %v4763_v38, %v4762_v33 }
 0x108   : > { %v1004_v40 = vadd.f32 %v4761_v32, %v963_v36  ;;  %v966_v41 = vadd.f32 %v4742_v37, %v503_v34  ;;  %v6068_v36 = vld [vmem:[%s359_s21] sm:$0xff]  ;;  %s351_s21 = scalar_lea.vmem [#allocation2], %s4443_s14  ;;  %s5587_s14 = sshll.u32 %s5649_s27, 4  ;;  %s5588_s14 = int_to_ptr.vmem [resolvable:$false] %s5587_s14 }
 0x109   : > { %s4356_s16 = sshll.u32 %s351_s21, 4  ;;  %s5589_s17 = scalar_lea.vmem %s5588_s14, 256  ;;  %s6628_s16 = int_to_ptr.vmem [resolvable:$true] %s4356_s16 }
 0x10a   : > { %v1007_v42 = vadd.f32 %v4764_v39, %v966_v41  ;;  %s5583_s13 = scalar_lea.vmem %s6628_s16, 128  ;;  %p5590_p0 = scmp.lt.s32.totalorder %s6628_s16, %s5588_s14 }
 0x10b   : > { %p5584_p11 = scmp.ne.s32.totalorder %s6628_s16, %s5583_s13  ;;  %p5591_p1 = scmp.lt.s32.totalorder %s5589_s17, %s5583_s13 }
 0x10d   : > { %p5585_p12 = pnand %p5584_p11, %p5738_p5  ;;  %p5592_p2 = por %p5591_p1, %p5590_p0 }
 0x10f   : > { %p5586_p13 = pneg %p5585_p12 }
 0x111   : > { %p5593_p3 = pnand %p5592_p2, %p5586_p13 }
 0x122   : > { %v4781_v44 = vpop.f32.mrb[4].mxu0 }
 0x123   : > { %v4803_v45 = vpop.f32.mrb[4].mxu1  ;;  %v4782_v46 = vpop.f32.mrb[5].mxu0 }
 0x124   : > { %v4783_v48 = vadd.f32 %v4782_v46, %v4781_v44  ;;  %v4804_v49 = vpop.f32.mrb[5].mxu1  ;;  %v4784_v50 = vpop.f32.mrb[6].mxu0 }
 0x125   : > { %v4805_v51 = vadd.f32 %v4804_v49, %v4803_v45  ;;  %v4806_v52 = vpop.f32.mrb[6].mxu1  ;;  %v4785_v53 = vpop.f32.mrb[7].mxu0 }
 0x126   : > { %v1045_v54 = vadd.f32 %v4783_v48, %v1004_v40  ;;  %v4786_v55 = vadd.f32 %v4785_v53, %v4784_v50  ;;  %v4807_v56 = vpop.f32.mrb[7].mxu1 }
 0x127   : > { %v4808_v57 = vadd.f32 %v4807_v56, %v4806_v52 }
 0x128   : > { %v1086_v58 = vadd.f32 %v4805_v51, %v1045_v54  ;;  %v1048_v59 = vadd.f32 %v4786_v55, %v1007_v42 }
 0x12a   : > { %v1089_v62 = vadd.f32 %v4808_v57, %v1048_v59  ;;  %v1181_v63 = vpop.f32.mrb[8].mxu0 }
 0x12b   : > { %v1242_v0 = vpop.f32.mrb[8].mxu1  ;;  %v4946_v1 = vpop.f32.mrb[9].mxu0  ;;  %v1182_v5 = vadd.f32 %v4524_v61, %v1181_v63 }
 0x12c   : > { %v6019_v2 = vpack.c.bf16 %v1089_v62, %v1086_v58  ;;  %v1243_v3 = vadd.f32 %v4528_v60, %v1242_v0  ;;  %v4954_v4 = vpop.f32.mrb[9].mxu1  ;;  %v1184_v6 = vpop.f32.mrb[10].mxu0 }
 0x12d   : > { %v1245_v7 = vpop.f32.mrb[10].mxu1  ;;  %v4947_v10 = vpop.f32.mrb[11].mxu0  ;;  %v1311_v16 = vpack.c.bf16 %v1182_v5, %v1182_v5 }
 0x12e   : > { %v1248_v11 = vpack.c.bf16 %v1243_v3, %v1243_v3  ;;  %v4955_v12 = vpop.f32.mrb[11].mxu1 }
 0x12f   : > { %v1312_v18 = vmul.bf16 %v1311_v16, %v6024_v14  ;;  %v1375_v19 = vmul.bf16 %v1311_v16, %v6026_v15  ;;  %v1527_v23 = vmul.bf16 %v1311_v16, %v6037_v22  ;;  %v1633_v26 = vmul.bf16 %v1311_v16, %v6047_v25 }
 0x130   : > { %v1317_v13 = vsel %vm1143_vm0, %v1248_v11, 0 }
 0x131   : > { %4965 = vmatpush3.bf16.xpose.msra.mxu1 %v1317_v13  ;;  %4971 = vmatpush3.bf16.xpose.msra.mxu0 %v1317_v13 }
 0x132   : > { %4988 = vmatprep.subr.bf16.mxu0 %v5647_v17  ;;  %4976 = vmatprep.subr.bf16.mxu1 %v5647_v17 }
 0x133   : > { %v1304_v28 = vpop.f32.mrb[12].mxu0 }
 0x134   : > { %v4962_v29 = vpop.f32.mrb[13].mxu0  ;;  %v1305_v30 = vadd.f32 %v4532_v27, %v1304_v28  ;;  %v5469_v28 = vld [vmem:[%s6673_s5 + $0x30] sm:$0xff]  }
 0x135   : > { %v1307_v31 = vpop.f32.mrb[14].mxu0 }
 0x136   : > { %v4963_v32 = vpop.f32.mrb[15].mxu0  ;;  %v6057_v33 = vpack.c.bf16 %v1305_v30, %v1305_v30 }
 0x138   : > { %4967 = vmatmul.mubr.msk.bf16.vlgmr.msra.gmra.mrb[12].mxu1 %vm1143_vm0, %v1312_v18  ;;  %4973 = vmatmul.mubr.msk.bf16.vlgmr.msra.gmra.mrb[16].mxu0 %vm1143_vm0, %v1375_v19  ;;  %v1433_v34 = vmul.bf16 %v6057_v33, %v6026_v15 }
 0x139   : > { %4989 = vmatpush3.bf16.xpose.msra.mxu0 %v1317_v13  ;;  %4990 = vmatprep.mubr.msk.bf16.mxu0 %vm5648_vm1, %v5647_v17 }
 0x13a   : > { %5000 = vmatprep.subr.bf16.mxu0 %v5647_v17  ;;  %4978 = vmatprep.mubr.msk.bf16.mxu1 %vm5648_vm1, %v5647_v17  ;;  %v1439_v35 = vsel %vm1437_vm12, %v1433_v34, 0  ;;  %v1374_v34 = vmul.bf16 %v6057_v33, %v6024_v14 }
 0x13b   : > { %4977 = vmatpush3.bf16.msra.mxu1 %v1439_v35 }
 0x13c   : > { %4982 = vmatprep.subr.bf16.mxu1 %v5647_v17 }
 0x140   : > { %4991 = vmatmul.mubr.msk.bf16.vlgmr.msra.gmra.mrb[20].mxu0 %vm1143_vm0, %v1527_v23 }
 0x141   : > { %5001 = vmatpush3.bf16.xpose.msra.mxu0 %v1317_v13  ;;  %5002 = vmatprep.mubr.msk.bf16.mxu0 %vm5648_vm1, %v5647_v17 }
 0x142   : > { %5012 = vmatprep.subr.bf16.mxu0 %v5647_v17 }
 0x148   : > { %5003 = vmatmul.mubr.msk.bf16.vlgmr.msra.gmra.mrb[24].mxu0 %vm1143_vm0, %v1633_v26 }
 0x149   : > { %5016 = vmatprep.mubr.msk.bf16.mxu0 %vm5648_vm1, %v5647_v17  ;;  %5013 = vmatpush3.bf16.msra.mxu0 %v5469_v28 }
 0x14a   : > { %5014 = vmatprep.subr.bf16.mxu0 %v5647_v17 }
 0x20b   : > { %v1353_v37 = vpop.f32.mrb[12].mxu1  ;;  %v1413_v38 = vpop.f32.mrb[16].mxu0 }
 0x20c   : > { %v1359_v39 = vmul.f32 0.35355338, %v1353_v37  ;;  %v1419_v40 = vmul.f32 0.35355338, %v1413_v38  ;;  %v4968_v41 = vpop.f32.mrb[13].mxu1  ;;  %v4974_v42 = vpop.f32.mrb[17].mxu0 }
 0x20d   : > { %v1356_v43 = vpop.f32.mrb[14].mxu1  ;;  %v1416_v44 = vpop.f32.mrb[18].mxu0  ;;  %v1485_v37 = vsel %vm1437_vm12, %v1374_v34, 0  ;;  %v1585_v41 = vmul.bf16 %v6057_v33, %v6037_v22 }
 0x20e   : > { %v4969_v45 = vpop.f32.mrb[15].mxu1  ;;  %v4975_v46 = vpop.f32.mrb[19].mxu0  ;;  %v1420_v47 = vadd.f32 %v1419_v40, %v6068_v36  ;;  %v1360_v49 = vadd.f32 %v1359_v39, %v6068_v36 }
 0x20f   : > { %v1590_v43 = vsel %vm1437_vm12, %v1585_v41, 0 }
 0x210   : > { %v1421_v48 = vsel %vm1361_vm13, %v1420_v47, -inf  ;;  %v1362_v53 = vsel %vm1361_vm13, %v1360_v49, -inf }
 0x211   : > { %1422 = vmax.xlane.f32.xlu0 %v1421_v48 }
 0x213   : > { %v1565_v50 = vpop.f32.mrb[20].mxu0 }
 0x214   : > { %v1571_v51 = vmul.f32 0.35355338, %v1565_v50  ;;  %v4992_v52 = vpop.f32.mrb[21].mxu0 }
 0x215   : > { %1363 = vmax.xlane.f32.xlu0 %v1362_v53  ;;  %v1568_v54 = vpop.f32.mrb[22].mxu0  ;;  %v5467_v52 = vld [vmem:[%s6673_s5 + $0x50] sm:$0xff]  }
 0x216   : > { %v4993_v55 = vpop.f32.mrb[23].mxu0  ;;  %v1572_v56 = vadd.f32 %v1571_v51, %v6068_v36  ;;  %v5470_v54 = vld [vmem:[%s6673_s5 + $0x38] sm:$0xff]  }
 0x217   : > { %5015 = vmatpush3.bf16.msra.mxu0 %v5470_v54 }
 0x218   : > { %v1573_v57 = vsel %vm1361_vm13, %v1572_v56, -inf  ;;  %5020 = vmatprep.subr.bf16.mxu0 %v5647_v17 }
 0x219   : > { %1574 = vmax.xlane.f32.xlu1 %v1573_v57 }
 0x21b   : > { %v1671_v58 = vpop.f32.mrb[24].mxu0 }
 0x21c   : > { %v1677_v59 = vmul.f32 0.35355338, %v1671_v58  ;;  %v5004_v60 = vpop.f32.mrb[25].mxu0 }
 0x21d   : > { %v1674_v61 = vpop.f32.mrb[26].mxu0  ;;  %v4554_v60 = vld [vmem:[%s6674_s6 + $0x7] ss:$0 sm:$0xff] }
 0x21e   : > { %v5005_v62 = vpop.f32.mrb[27].mxu0  ;;  %v1678_v63 = vadd.f32 %v1677_v59, %v6068_v36 }
 0x220   : > { %v1679_v0 = vsel %vm1361_vm13, %v1678_v63, -inf }
 0x221   : > { %1680 = vmax.xlane.f32.xlu1 %v1679_v0 }
 0x29e   : > { %v1423_v1 = vpop.xlane.xlu0 %1422 }
 0x29f   : > { %v1424_v3 = vsub.f32 %v1420_v47, %v1423_v1  ;;  %v1691_v47 = vmul.bf16 %v6057_v33, %v6047_v25  ;;  %v5468_v33 = vld [vmem:[%s6673_s5 + $0x58] sm:$0xff]  }
 0x2a1   : > { %v1425_v4 = vmul.f32 1.442695, %v1424_v3 }
 0x2a2   : > { %v1364_v5 = vpop.xlane.xlu0 %1363 }
 0x2a3   : > { %5507 = vpow2.f32 %v1425_v4  ;;  %v1365_v6 = vsub.f32 %v1360_v49, %v1364_v5  ;;  %v1696_v49 = vsel %vm1437_vm12, %v1691_v47, 0 }
 0x2a5   : > { %v1366_v7 = vmul.f32 1.442695, %v1365_v6  ;;  %v4544_v6 = vld [vmem:[%s6674_s6 + $0x3] ss:$0 sm:$0xff] }
 0x2a6   : > { %v1575_v8 = vpop.xlane.xlu1 %1574 }
 0x2a7   : > { %5509 = vpow2.f32 %v1366_v7  ;;  %v1576_v9 = vsub.f32 %v1572_v56, %v1575_v8 }
 0x2a9   : > { %v1577_v10 = vmul.f32 1.442695, %v1576_v9 }
 0x2ab   : > { %5511 = vpow2.f32 %v1577_v10 }
 0x2ad   : > { %v5508_v11 = vpop.eup %5507 }
 0x2ae   : > { %v1681_v12 = vpop.xlane.xlu1 %1680  ;;  %v1427_v13 = vsel %vm1361_vm13, %v5508_v11, 0.0 }
 0x2af   : > { %v1682_v16 = vsub.f32 %v1678_v63, %v1681_v12  ;;  %1428 = vadd.xlane.f32.xlu0 %v1427_v13 }
 0x2b1   : > { %v5510_v18 = vpop.eup %5509  ;;  %v1683_v19 = vmul.f32 1.442695, %v1682_v16 }
 0x2b2   : > { %v1368_v20 = vsel %vm1361_vm13, %v5510_v18, 0.0 }
 0x2b3   : > { %5513 = vpow2.f32 %v1683_v19  ;;  %1369 = vadd.xlane.f32.xlu1 %v1368_v20 }
 0x2b5   : > { %v5512_v23 = vpop.eup %5511 }
 0x2b6   : > { %v1579_v24 = vsel %vm1361_vm13, %v5512_v23, 0.0 }
 0x2b7   : > { %1580 = vadd.xlane.f32.xlu0 %v1579_v24  ;;  %v5471_v24 = vld [vmem:[%s6673_s5 + $0x40] sm:$0xff]  }
 0x2bd   : > { %v5514_v26 = vpop.eup %5513 }
 0x2be   : > { %v1685_v27 = vsel %vm1361_vm13, %v5514_v26, 0.0 }
 0x2bf   : > { %1686 = vadd.xlane.f32.xlu1 %v1685_v27 }
 0x33c   : > { %v1429_v29 = vpop.xlane.xlu0 %1428 }
 0x33d   : > { %5515 = vrcp.f32 %v1429_v29 }
 0x340   : > { %v1370_v30 = vpop.xlane.xlu1 %1369 }
 0x341   : > { %5517 = vrcp.f32 %v1370_v30  ;;  %v4548_v30 = vld [vmem:[%s6674_s6 + $0x4] ss:$0 sm:$0xff] }
 0x344   : > { %v1581_v38 = vpop.xlane.xlu0 %1580 }
 0x345   : > { %5519 = vrcp.f32 %v1581_v38 }
 0x347   : > { %v5516_v31 = vpop.eup %5515 }
 0x348   : > { %v1431_v32 = vmul.f32 %v5516_v31, %v5508_v11 }
 0x34a   : > { %v1432_v35 = vpack.c.bf16 %v1431_v32, %v1431_v32  ;;  %v4549_v32 = vld [vmem:[%s6674_s6 + $0x5] ss:$0 sm:$0xff] }
 0x34b   : > { %v5518_v39 = vpop.eup %5517 }
 0x34c   : > { %4979 = vmatmul.mubr.msk.bf16.vlgmr.msra.gmra.mrb[16].mxu1 %vm1361_vm13, %v1432_v35  ;;  %v1372_v40 = vmul.f32 %v5518_v39, %v5510_v18  ;;  %v1687_v44 = vpop.xlane.xlu1 %1686  ;;  %v5474_v39 = vld [vmem:[%s6673_s5 + $0x68] sm:$0xff]  }
 0x34d   : > { %4983 = vmatpush3.bf16.msra.mxu1 %v1485_v37  ;;  %4984 = vmatprep.mubr.msk.bf16.mxu1 %vm5648_vm1, %v5647_v17  ;;  %5521 = vrcp.f32 %v1687_v44  ;;  %v5473_v37 = vld [vmem:[%s6673_s5 + $0x60] sm:$0xff]  }
 0x34e   : > { %4994 = vmatprep.subr.bf16.mxu1 %v5647_v17  ;;  %v1373_v42 = vpack.c.bf16 %v1372_v40, %v1372_v40  ;;  %v4550_v40 = vld [vmem:[%s6674_s6 + $0x6] ss:$0 sm:$0xff] }
 0x34f   : > { %v5520_v45 = vpop.eup %5519 }
 0x350   : > { %v1583_v46 = vmul.f32 %v5520_v45, %v5512_v23 }
 0x352   : > { %v1584_v48 = vpack.c.bf16 %v1583_v46, %v1583_v46 }
 0x357   : > { %v5522_v50 = vpop.eup %5521 }
 0x358   : > { %4985 = vmatmul.mubr.msk.bf16.vlgmr.msra.gmra.mrb[16].mxu1 %vm1361_vm13, %v1373_v42  ;;  %v1689_v51 = vmul.f32 %v5522_v50, %v5514_v26 }
 0x359   : > { %4995 = vmatpush3.bf16.msra.mxu1 %v1590_v43  ;;  %4996 = vmatprep.mubr.msk.bf16.mxu1 %vm5648_vm1, %v5647_v17 }
 0x35a   : > { %5006 = vmatprep.subr.bf16.mxu1 %v5647_v17  ;;  %v1690_v53 = vpack.c.bf16 %v1689_v51, %v1689_v51 }
 0x364   : > { %4997 = vmatmul.mubr.msk.bf16.vlgmr.msra.gmra.mrb[16].mxu1 %vm1361_vm13, %v1584_v48 }
 0x365   : > { %5007 = vmatpush3.bf16.msra.mxu1 %v1696_v49  ;;  %5008 = vmatprep.mubr.msk.bf16.mxu1 %vm5648_vm1, %v5647_v17  ;;  %v4558_v49 = vld [vmem:[%s6674_s6 + $0x8] ss:$0 sm:$0xff] }
 0x366   : > { %5028 = vmatprep.subr.bf16.mxu1 %v5647_v17 }
 0x370   : > { %5009 = vmatmul.mubr.msk.bf16.vlgmr.msra.gmra.mrb[16].mxu1 %vm1361_vm13, %v1690_v53 }
 0x371   : > { %5029 = vmatpush3.bf16.msra.mxu1 %v5467_v52  ;;  %5032 = vmatprep.mubr.msk.bf16.mxu1 %vm5648_vm1, %v5647_v17 }
 0x372   : > { %5030 = vmatprep.subr.bf16.mxu1 %v5647_v17 }
 0x375   : > { %5031 = vmatpush3.bf16.msra.mxu1 %v5468_v33 }
 0x376   : > { %5044 = vmatprep.subr.bf16.mxu1 %v5647_v17 }
 0x378   : > { %5033 = vmatmul.mubr.msk.bf16.vlgmr.msra.gmra.mrb[20].mxu1 %vm1143_vm0, %v6019_v2 }
 0x379   : > { %5046 = vmatprep.mubr.msk.bf16.mxu1 %vm5648_vm1, %v5647_v17 }
 0x443   : > { %v1732_v55 = vpop.f32.mrb[16].mxu1 }
 0x444   : > { %v1739_v56 = vpack.c.bf16 %v1732_v55, %v1732_v55  ;;  %v5010_v57 = vpop.f32.mrb[17].mxu1 }
 0x445   : > { %v1735_v58 = vpop.f32.mrb[18].mxu1 }
 0x446   : > { %v5011_v59 = vpop.f32.mrb[19].mxu1  ;;  %5017 = vmatmul.mubr.msk.bf16.vlgmr.msra.gmra.mrb[28].mxu0 %vm1143_vm0, %v1739_v56 }
 0x447   : > { %5024 = vmatprep.mubr.msk.bf16.mxu0 %vm5648_vm1, %v5647_v17  ;;  %5021 = vmatpush3.bf16.msra.mxu0 %v5471_v24 }
 0x448   : > { %5022 = vmatprep.subr.bf16.mxu0 %v5647_v17 }
 0x44b   : > { %v1954_v61 = vpop.f32.mrb[20].mxu1 }
 0x44c   : > { %v5034_v62 = vpop.f32.mrb[21].mxu1  ;;  %v1955_v0 = vadd.f32 %v4554_v60, %v1954_v61 }
 0x44d   : > { %v1957_v63 = vpop.f32.mrb[22].mxu1 }
 0x44e   : > { %v1958_v1 = vadd.f32 %v4554_v60, %v1957_v63  ;;  %v5035_v3 = vpop.f32.mrb[23].mxu1 }
 0x450   : > { %v1961_v4 = vpack.c.bf16 %v1958_v1, %v1955_v0 }
 0x452   : > { %v6133_v5 = vsel %vm1143_vm0, %v1961_v4, 0 }
 0x453   : > { %5045 = vmatpush3.bf16.xpose.msra.mxu1 %v6133_v5 }
 0x454   : > { %5056 = vmatprep.subr.bf16.mxu1 %v5647_v17 }
 0x519   : > { %v1798_v7 = vpop.f32.mrb[28].mxu0 }
 0x51a   : > { %v1799_v8 = vadd.f32 %v4544_v6, %v1798_v7  ;;  %v5018_v9 = vpop.f32.mrb[29].mxu0 }
 0x51b   : > { %v1801_v10 = vpop.f32.mrb[30].mxu0 }
 0x51c   : > { %v5019_v11 = vpop.f32.mrb[31].mxu0  ;;  %v1804_v12 = vadd.f32 %v1799_v8, %v5979_v21  ;;  %v5472_v21 = vld [vmem:[%s6673_s5 + $0x48] sm:$0xff]  }
 0x51d   : > { %5023 = vmatpush3.bf16.msra.mxu0 %v5472_v21 }
 0x51e   : > { %v1807_v13 = vsel %vm1143_vm0, %v1804_v12, 0.0  ;;  %5036 = vmatprep.subr.bf16.mxu0 %v5647_v17 }
 0x51f   : > { %1808 = vadd.xlane.f32.xlu0 %v1807_v13 }
 0x5ac   : > { %v1809_v16 = vpop.xlane.xlu0 %1808 }
 0x5ad   : > { %v1811_v18 = vmul.f32 0.03125, %v1809_v16 }
 0x5af   : > { %v1812_v19 = vsub.f32 %v1804_v12, %v1811_v18 }
 0x5b1   : > { %v1813_v20 = vmul.f32 %v1812_v19, %v1812_v19 }
 0x5b3   : > { %v1814_v23 = vsel %vm1143_vm0, %v1813_v20, 0.0 }
 0x5b4   : > { %1815 = vadd.xlane.f32.xlu1 %v1814_v23 }
 0x641   : > { %v1816_v26 = vpop.xlane.xlu1 %1815 }
 0x642   : > { %v1817_v27 = vmul.f32 0.03125, %v1816_v26 }
 0x644   : > { %v1818_v28 = vadd.f32 1e-05, %v1817_v27 }
 0x646   : > { %5523 = vrsqrt.f32 %v1818_v28 }
 0x650   : > { %v5524_v29 = vpop.eup %5523 }
 0x651   : > { %v1820_v31 = vmul.f32 %v5524_v29, %v1812_v19 }
 0x653   : > { %v1825_v34 = vmul.f32 %v4548_v30, %v1820_v31 }
 0x655   : > { %v6157_v35 = vadd.f32 %v4549_v32, %v1825_v34 }
 0x657   : > { %v1831_v38 = vpack.c.bf16 %v6157_v35, %v6157_v35 }
 0x659   : > { %5025 = vmatmul.mubr.msk.bf16.vlgmr.msra.gmra.mrb[32].mxu0 %vm1143_vm0, %v1831_v38 }
 0x65a   : > { %5037 = vmatpush3.bf16.msra.mxu0 %v5473_v37  ;;  %5040 = vmatprep.mubr.msk.bf16.mxu0 %vm5648_vm1, %v5647_v17 }
 0x65b   : > { %5038 = vmatprep.subr.bf16.mxu0 %v5647_v17 }
 0x65e   : > { %5039 = vmatpush3.bf16.msra.mxu0 %v5474_v39 }
 0x65f   : > { %5050 = vmatprep.subr.bf16.mxu0 %v5647_v17 }
 0x661   : > { %5041 = vmatmul.mubr.msk.bf16.vlgmr.msra.gmra.mrb[36].mxu0 %vm1143_vm0, %v6019_v2 }
 0x662   : > { %5052 = vmatprep.mubr.msk.bf16.mxu0 %vm5648_vm1, %v5647_v17 }
 0x667   : > { %5051 = vmatpush3.bf16.xpose.msra.mxu0 %v6133_v5 }
 0x668   : > { %5068 = vmatprep.subr.bf16.mxu0 %v5647_v17 }
 0x72c   : > { %v1890_v41 = vpop.f32.mrb[32].mxu0 }
 0x72d   : > { %v1891_v42 = vadd.f32 %v4550_v40, %v1890_v41  ;;  %v5026_v43 = vpop.f32.mrb[33].mxu0 }
 0x72e   : > { %v1893_v44 = vpop.f32.mrb[34].mxu0 }
 0x72f   : > { %v2025_v45 = vpack.c.bf16 %v1891_v42, %v1891_v42  ;;  %v5027_v46 = vpop.f32.mrb[35].mxu0 }
 0x731   : > { %v2026_v47 = vmul.bf16 %v2025_v45, %v6024_v14  ;;  %v2088_v48 = vmul.bf16 %v2025_v45, %v6026_v15  ;;  %v2232_v55 = vmul.bf16 %v2025_v45, %v6037_v22  ;;  %v2334_v58 = vmul.bf16 %v2025_v45, %v6047_v25 }
 0x733   : > { %5047 = vmatmul.mubr.msk.bf16.vlgmr.msra.gmra.mrb[24].mxu1 %vm1143_vm0, %v2026_v47  ;;  %5053 = vmatmul.mubr.msk.bf16.vlgmr.msra.gmra.mrb[40].mxu0 %vm1143_vm0, %v2088_v48  ;;  %v5475_v48 = vld [vmem:[%s6673_s5 + $0x70] sm:$0xff]  }
 0x734   : > { %5069 = vmatpush3.bf16.xpose.msra.mxu0 %v6133_v5  ;;  %v2017_v50 = vpop.f32.mrb[36].mxu0  ;;  %5070 = vmatprep.mubr.msk.bf16.mxu0 %vm5648_vm1, %v5647_v17 }
 0x735   : > { %v5042_v51 = vpop.f32.mrb[37].mxu0  ;;  %5080 = vmatprep.subr.bf16.mxu0 %v5647_v17  ;;  %5058 = vmatprep.mubr.msk.bf16.mxu1 %vm5648_vm1, %v5647_v17  ;;  %v2018_v53 = vadd.f32 %v4558_v49, %v2017_v50 }
 0x736   : > { %v2020_v52 = vpop.f32.mrb[38].mxu0 }
 0x737   : > { %v2021_v33 = vadd.f32 %v4558_v49, %v2020_v52  ;;  %v5043_v54 = vpop.f32.mrb[39].mxu0 }
 0x739   : > { %v6195_v56 = vpack.c.bf16 %v2021_v33, %v2018_v53 }
 0x73b   : > { %5071 = vmatmul.mubr.msk.bf16.vlgmr.msra.gmra.mrb[44].mxu0 %vm1143_vm0, %v2232_v55  ;;  %v2145_v57 = vmul.bf16 %v6195_v56, %v6026_v15  ;;  %v2087_v33 = vmul.bf16 %v6195_v56, %v6024_v14 }
 0x73c   : > { %5081 = vmatpush3.bf16.xpose.msra.mxu0 %v6133_v5  ;;  %5082 = vmatprep.mubr.msk.bf16.mxu0 %vm5648_vm1, %v5647_v17 }
 0x73d   : > { %5057 = vmatpush3.bf16.msra.mxu1 %v2145_v57  ;;  %5092 = vmatprep.subr.bf16.mxu0 %v5647_v17 }
 0x73e   : > { %5062 = vmatprep.subr.bf16.mxu1 %v5647_v17 }
 0x743   : > { %5083 = vmatmul.mubr.msk.bf16.vlgmr.msra.gmra.mrb[48].mxu0 %vm1143_vm0, %v2334_v58 }
 0x744   : > { %5096 = vmatprep.mubr.msk.bf16.mxu0 %vm5648_vm1, %v5647_v17  ;;  %5093 = vmatpush3.bf16.msra.mxu0 %v5475_v48 }
 0x745   : > { %5094 = vmatprep.subr.bf16.mxu0 %v5647_v17 }
 0x806   : > { %v2067_v59 = vpop.f32.mrb[24].mxu1  ;;  %v2126_v60 = vpop.f32.mrb[40].mxu0 }
 0x807   : > { %v2073_v61 = vmul.f32 0.35355338, %v2067_v59  ;;  %v2132_v62 = vmul.f32 0.35355338, %v2126_v60  ;;  %v5048_v63 = vpop.f32.mrb[25].mxu1  ;;  %v5054_v0 = vpop.f32.mrb[41].mxu0  ;;  %v2289_v59 = vmul.bf16 %v6195_v56, %v6037_v22 }
 0x808   : > { %v2070_v1 = vpop.f32.mrb[26].mxu1  ;;  %v2129_v3 = vpop.f32.mrb[42].mxu0  ;;  %v2391_v0 = vmul.bf16 %v6195_v56, %v6047_v25  ;;  %v5476_v56 = vld [vmem:[%s6673_s5 + $0x78] sm:$0xff]  }
 0x809   : > { %v5049_v4 = vpop.f32.mrb[27].mxu1  ;;  %v5055_v5 = vpop.f32.mrb[43].mxu0  ;;  %v2075_v6 = vsel %vm2074_vm14, %v2073_v61, -inf  ;;  %v2133_v7 = vsel %vm2074_vm14, %v2132_v62, -inf  ;;  %5095 = vmatpush3.bf16.msra.mxu0 %v5476_v56  ;;  %v5484_v56 = vld [vmem:[%s6673_s5 + $0xd0] sm:$0xff]  }
 0x80a   : > { %2076 = vmax.xlane.f32.xlu1 %v2075_v6  ;;  %2134 = vmax.xlane.f32.xlu0 %v2133_v7 }
 0x80b   : > { %5100 = vmatprep.subr.bf16.mxu0 %v5647_v17 }
 0x80e   : > { %v2270_v8 = vpop.f32.mrb[44].mxu0 }
 0x80f   : > { %v2276_v9 = vmul.f32 0.35355338, %v2270_v8  ;;  %v5072_v10 = vpop.f32.mrb[45].mxu0 }
 0x810   : > { %v2273_v11 = vpop.f32.mrb[46].mxu0  ;;  %v4570_v10 = vld [vmem:[%s6674_s6 + $0x9] ss:$0 sm:$0xff] }
 0x811   : > { %v5073_v12 = vpop.f32.mrb[47].mxu0  ;;  %v2277_v13 = vsel %vm2074_vm14, %v2276_v9, -inf }
 0x812   : > { %2278 = vmax.xlane.f32.xlu0 %v2277_v13 }
 0x816   : > { %v2372_v16 = vpop.f32.mrb[48].mxu0 }
 0x817   : > { %v2378_v18 = vmul.f32 0.35355338, %v2372_v16  ;;  %v5084_v19 = vpop.f32.mrb[49].mxu0 }
 0x818   : > { %v2375_v20 = vpop.f32.mrb[50].mxu0 }
 0x819   : > { %v5085_v23 = vpop.f32.mrb[51].mxu0  ;;  %v2379_v24 = vsel %vm2074_vm14, %v2378_v18, -inf }
 0x81a   : > { %2380 = vmax.xlane.f32.xlu1 %v2379_v24 }
 0x897   : > { %v2077_v21 = vpop.xlane.xlu1 %2076  ;;  %v2135_v26 = vpop.xlane.xlu0 %2134 }
 0x898   : > { %v2078_v27 = vsub.f32 %v2073_v61, %v2077_v21  ;;  %v2136_v28 = vsub.f32 %v2132_v62, %v2135_v26 }
 0x89a   : > { %v2079_v29 = vmul.f32 1.442695, %v2078_v27  ;;  %v2137_v30 = vmul.f32 1.442695, %v2136_v28  ;;  %v5477_v28 = vld [vmem:[%s6673_s5 + $0x80] sm:$0xff]  }
 0x89c   : > { %5525 = vpow2.f32 %v2079_v29  ;;  %v5478_v29 = vld [vmem:[%s6673_s5 + $0x88] sm:$0xff]  }
 0x89d   : > { %5527 = vpow2.f32 %v2137_v30  ;;  %v5480_v30 = vld [vmem:[%s6673_s5 + $0x98] sm:$0xff]  }
 0x89f   : > { %v2279_v31 = vpop.xlane.xlu0 %2278 }
 0x8a0   : > { %v2280_v32 = vsub.f32 %v2276_v9, %v2279_v31 }
 0x8a2   : > { %v2281_v34 = vmul.f32 1.442695, %v2280_v32 }
 0x8a4   : > { %5529 = vpow2.f32 %v2281_v34 }
 0x8a6   : > { %v5526_v37 = vpop.eup %5525 }
 0x8a7   : > { %v5528_v38 = vpop.eup %5527  ;;  %v2381_v39 = vpop.xlane.xlu1 %2380  ;;  %v2081_v40 = vsel %vm2074_vm14, %v5526_v37, 0.0 }
 0x8a8   : > { %v2382_v41 = vsub.f32 %v2378_v18, %v2381_v39  ;;  %v2139_v42 = vsel %vm2074_vm14, %v5528_v38, 0.0  ;;  %2082 = vadd.xlane.f32.xlu1 %v2081_v40  ;;  %v4575_v40 = vld [vmem:[%s6674_s6 + $0xb] ss:$0 sm:$0xff] }
 0x8a9   : > { %2140 = vadd.xlane.f32.xlu0 %v2139_v42 }
 0x8aa   : > { %v2383_v43 = vmul.f32 1.442695, %v2382_v41 }
 0x8ac   : > { %5531 = vpow2.f32 %v2383_v43 }
 0x8ae   : > { %v5530_v44 = vpop.eup %5529 }
 0x8af   : > { %v2283_v45 = vsel %vm2074_vm14, %v5530_v44, 0.0 }
 0x8b0   : > { %2284 = vadd.xlane.f32.xlu0 %v2283_v45  ;;  %v5482_v45 = vld [vmem:[%s6673_s5 + $0xa8] sm:$0xff]  }
 0x8b6   : > { %v5532_v46 = vpop.eup %5531 }
 0x8b7   : > { %v2385_v47 = vsel %vm2074_vm14, %v5532_v46, 0.0 }
 0x8b8   : > { %2386 = vadd.xlane.f32.xlu1 %v2385_v47 }
 0x935   : > { %v2083_v50 = vpop.xlane.xlu1 %2082 }
 0x936   : > { %v2141_v49 = vpop.xlane.xlu0 %2140 }
 0x937   : > { %5533 = vrcp.f32 %v2141_v49 }
 0x938   : > { %5535 = vrcp.f32 %v2083_v50 }
 0x93d   : > { %v2285_v54 = vpop.xlane.xlu0 %2284 }
 0x93e   : > { %5537 = vrcp.f32 %v2285_v54 }
 0x941   : > { %v5534_v51 = vpop.eup %5533 }
 0x942   : > { %v2143_v52 = vmul.f32 %v5534_v51, %v5528_v38  ;;  %v5536_v55 = vpop.eup %5535  ;;  %v4574_v38 = vld [vmem:[%s6674_s6 + $0xa] ss:$0 sm:$0xff] }
 0x943   : > { %v2085_v57 = vmul.f32 %v5536_v55, %v5526_v37 }
 0x944   : > { %v2144_v53 = vpack.c.bf16 %v2143_v52, %v2143_v52 }
 0x945   : > { %v2086_v58 = vpack.c.bf16 %v2085_v57, %v2085_v57  ;;  %v2387_v60 = vpop.xlane.xlu1 %2386 }
 0x946   : > { %5059 = vmatmul.mubr.msk.bf16.vlgmr.msra.gmra.mrb[28].mxu1 %vm2074_vm14, %v2144_v53  ;;  %5539 = vrcp.f32 %v2387_v60 }
 0x947   : > { %5063 = vmatpush3.bf16.msra.mxu1 %v2087_v33  ;;  %5064 = vmatprep.mubr.msk.bf16.mxu1 %vm5648_vm1, %v5647_v17  ;;  %v4580_v33 = vld [vmem:[%s6674_s6 + $0xd] ss:$0 sm:$0xff] }
 0x948   : > { %5074 = vmatprep.subr.bf16.mxu1 %v5647_v17  ;;  %v5538_v61 = vpop.eup %5537 }
 0x949   : > { %v2287_v62 = vmul.f32 %v5538_v61, %v5530_v44  ;;  %v5481_v44 = vld [vmem:[%s6673_s5 + $0xa0] sm:$0xff]  }
 0x94b   : > { %v2288_v63 = vpack.c.bf16 %v2287_v62, %v2287_v62 }
 0x950   : > { %v5540_v1 = vpop.eup %5539 }
 0x951   : > { %v2389_v3 = vmul.f32 %v5540_v1, %v5532_v46  ;;  %v4576_v46 = vld [vmem:[%s6674_s6 + $0xc] ss:$0 sm:$0xff] }
 0x952   : > { %5065 = vmatmul.mubr.msk.bf16.vlgmr.msra.gmra.mrb[28].mxu1 %vm2074_vm14, %v2086_v58 }
 0x953   : > { %5075 = vmatpush3.bf16.msra.mxu1 %v2289_v59  ;;  %5076 = vmatprep.mubr.msk.bf16.mxu1 %vm5648_vm1, %v5647_v17  ;;  %v2390_v4 = vpack.c.bf16 %v2389_v3, %v2389_v3 }
 0x954   : > { %5086 = vmatprep.subr.bf16.mxu1 %v5647_v17 }
 0x95e   : > { %5077 = vmatmul.mubr.msk.bf16.vlgmr.msra.gmra.mrb[28].mxu1 %vm2074_vm14, %v2288_v63 }
 0x95f   : > { %5087 = vmatpush3.bf16.msra.mxu1 %v2391_v0  ;;  %5088 = vmatprep.mubr.msk.bf16.mxu1 %vm5648_vm1, %v5647_v17 }
 0x960   : > { %5108 = vmatprep.subr.bf16.mxu1 %v5647_v17 }
 0x96a   : > { %5089 = vmatmul.mubr.msk.bf16.vlgmr.msra.gmra.mrb[28].mxu1 %vm2074_vm14, %v2390_v4  ;;  %v5483_v4 = vld [vmem:[%s6673_s5 + $0xb0] sm:$0xff]  }
 0x96b   : > { %5116 = vmatprep.mubr.msk.bf16.mxu1 %vm5648_vm1, %v5647_v17 }
 0xa3d   : > { %v2429_v5 = vpop.f32.mrb[28].mxu1 }
 0xa3e   : > { %v2436_v6 = vpack.c.bf16 %v2429_v5, %v2429_v5  ;;  %v5090_v7 = vpop.f32.mrb[29].mxu1  ;;  %v5485_v5 = vld [vmem:[%s6673_s5 + $0xb8] sm:$0xff]  }
 0xa3f   : > { %v2432_v8 = vpop.f32.mrb[30].mxu1 }
 0xa40   : > { %v5091_v9 = vpop.f32.mrb[31].mxu1  ;;  %5097 = vmatmul.mubr.msk.bf16.vlgmr.msra.gmra.mrb[52].mxu0 %vm1143_vm0, %v2436_v6  ;;  %v5486_v6 = vld [vmem:[%s6673_s5 + $0xd8] sm:$0xff]  }
 0xa41   : > { %5104 = vmatprep.mubr.msk.bf16.mxu0 %vm5648_vm1, %v5647_v17  ;;  %5101 = vmatpush3.bf16.msra.mxu0 %v5477_v28 }
 0xa42   : > { %5102 = vmatprep.subr.bf16.mxu0 %v5647_v17 }
 0xa45   : > { %5103 = vmatpush3.bf16.msra.mxu0 %v5478_v29 }
 0xa46   : > { %5120 = vmatprep.subr.bf16.mxu0 %v5647_v17 }
 0xb13   : > { %v2495_v11 = vpop.f32.mrb[52].mxu0 }
 0xb14   : > { %v2496_v12 = vadd.f32 %v4570_v10, %v2495_v11  ;;  %v5098_v13 = vpop.f32.mrb[53].mxu0  ;;  %v4586_v11 = vld [vmem:[%s6674_s6 + $0xe] ss:$0 sm:$0xff] }
 0xb15   : > { %v2498_v16 = vpop.f32.mrb[54].mxu0  ;;  %v4587_v13 = vld [vmem:[%s6674_s6 + $0xf] ss:$0 sm:$0xff] }
 0xb16   : > { %v5099_v18 = vpop.f32.mrb[55].mxu0  ;;  %v2501_v19 = vadd.f32 %v2496_v12, %v6157_v35  ;;  %v5479_v35 = vld [vmem:[%s6673_s5 + $0x90] sm:$0xff]  }
 0xb17   : > { %5109 = vmatpush3.bf16.msra.mxu1 %v5479_v35 }
 0xb18   : > { %v2504_v20 = vsel %vm1143_vm0, %v2501_v19, 0.0  ;;  %5110 = vmatprep.subr.bf16.mxu1 %v5647_v17 }
 0xb19   : > { %2505 = vadd.xlane.f32.xlu0 %v2504_v20 }
 0xb1b   : > { %5111 = vmatpush3.bf16.msra.mxu1 %v5480_v30 }
 0xb1c   : > { %5112 = vmatprep.subr.bf16.mxu1 %v5647_v17 }
 0xb1f   : > { %5113 = vmatpush3.bf16.msra.mxu1 %v5481_v44 }
 0xb20   : > { %5114 = vmatprep.subr.bf16.mxu1 %v5647_v17 }
 0xb23   : > { %5115 = vmatpush3.bf16.msra.mxu1 %v5482_v45 }
 0xb24   : > { %5136 = vmatprep.subr.bf16.mxu1 %v5647_v17 }
 0xba6   : > { %v2506_v23 = vpop.xlane.xlu0 %2505 }
 0xba7   : > { %v2507_v24 = vmul.f32 0.03125, %v2506_v23  ;;  %v5488_v23 = vld [vmem:[%s6673_s5 + $0xc8] sm:$0xff]  }
 0xba9   : > { %v2508_v21 = vsub.f32 %v2501_v19, %v2507_v24  ;;  %v5487_v19 = vld [vmem:[%s6673_s5 + $0xc0] sm:$0xff]  }
 0xbab   : > { %v2509_v26 = vmul.f32 %v2508_v21, %v2508_v21 }
 0xbad   : > { %v2510_v27 = vsel %vm1143_vm0, %v2509_v26, 0.0 }
 0xbae   : > { %2511 = vadd.xlane.f32.xlu1 %v2510_v27 }
 0xc3b   : > { %v2512_v31 = vpop.xlane.xlu1 %2511 }
 0xc3c   : > { %v2513_v32 = vmul.f32 0.03125, %v2512_v31  ;;  %v4611_v31 = vld [vmem:[%s6674_s6 + $0x12] ss:$0 sm:$0xff] }
 0xc3e   : > { %v2514_v34 = vadd.f32 1e-05, %v2513_v32  ;;  %v4602_v32 = vld [vmem:[%s6674_s6 + $0x11] ss:$0 sm:$0xff] }
 0xc40   : > { %5541 = vrsqrt.f32 %v2514_v34  ;;  %v4593_v34 = vld [vmem:[%s6674_s6 + $0x10] ss:$0 sm:$0xff] }
 0xc4a   : > { %v5542_v37 = vpop.eup %5541 }
 0xc4b   : > { %v2516_v39 = vmul.f32 %v5542_v37, %v2508_v21 }
 0xc4d   : > { %v2521_v41 = vmul.f32 %v4574_v38, %v2516_v39 }
 0xc4f   : > { %v2526_v42 = vadd.f32 %v4575_v40, %v2521_v41 }
 0xc51   : > { %v2527_v43 = vpack.c.bf16 %v2526_v42, %v2526_v42 }
 0xc53   : > { %5105 = vmatmul.mubr.msk.bf16.vlgmr.msra.gmra.mrb[56].mxu0 %vm1143_vm0, %v2527_v43 }
 0xc54   : > { %5124 = vmatprep.mubr.msk.bf16.mxu0 %vm5648_vm1, %v5647_v17  ;;  %5121 = vmatpush3.bf16.msra.mxu0 %v5483_v4 }
 0xc55   : > { %5122 = vmatprep.subr.bf16.mxu0 %v5647_v17 }
 0xc58   : > { %5123 = vmatpush3.bf16.msra.mxu0 %v5485_v5 }
 0xc59   : > { %5128 = vmatprep.subr.bf16.mxu0 %v5647_v17 }
 0xd26   : > { %v2586_v47 = vpop.f32.mrb[56].mxu0 }
 0xd27   : > { %v2587_v48 = vadd.f32 %v4576_v46, %v2586_v47  ;;  %v5106_v49 = vpop.f32.mrb[57].mxu0 }
 0xd28   : > { %v2589_v50 = vpop.f32.mrb[58].mxu0 }
 0xd29   : > { %v2592_v51 = vmax.f32 %v2587_v48, 0.0  ;;  %v5107_v52 = vpop.f32.mrb[59].mxu0 }
 0xd2b   : > { %v2593_v53 = vpack.c.bf16 %v2592_v51, %v2592_v51 }
 0xd2d   : > { %5117 = vmatmul.mubr.msk.bf16.vlgmr.msra.gmra.mrb[32].mxu1 %vm2631_vm15, %v2593_v53 }
 0xd2e   : > { %5140 = vmatprep.mubr.msk.bf16.mxu1 %vm5648_vm1, %v5647_v17  ;;  %5137 = vmatpush3.bf16.msra.mxu1 %v5484_v56 }
 0xd2f   : > { %5138 = vmatprep.subr.bf16.mxu1 %v5647_v17 }
 0xd32   : > { %5139 = vmatpush3.bf16.msra.mxu1 %v5486_v6 }
 0xd33   : > { %5150 = vmatprep.subr.bf16.mxu1 %v5647_v17 }
 0xe00   : > { %v2669_v54 = vpop.f32.mrb[32].mxu1 }
 0xe01   : > { %v2670_v55 = vadd.f32 %v4580_v33, %v2669_v54  ;;  %v5118_v57 = vpop.f32.mrb[33].mxu1 }
 0xe02   : > { %v2672_v58 = vpop.f32.mrb[34].mxu1 }
 0xe03   : > { %v5119_v59 = vpop.f32.mrb[35].mxu1  ;;  %v2675_v60 = vadd.f32 %v2670_v55, %v2526_v42 }
 0xe05   : > { %v2678_v61 = vsel %vm1143_vm0, %v2675_v60, 0.0 }
 0xe06   : > { %2679 = vadd.xlane.f32.xlu0 %v2678_v61 }
 0xe93   : > { %v2680_v62 = vpop.xlane.xlu0 %2679 }
 0xe94   : > { %v2681_v63 = vmul.f32 0.03125, %v2680_v62 }
 0xe96   : > { %v2682_v0 = vsub.f32 %v2675_v60, %v2681_v63 }
 0xe98   : > { %v2683_v1 = vmul.f32 %v2682_v0, %v2682_v0 }
 0xe9a   : > { %v2684_v3 = vsel %vm1143_vm0, %v2683_v1, 0.0 }
 0xe9b   : > { %2685 = vadd.xlane.f32.xlu1 %v2684_v3 }
 0xf28   : > { %v2686_v7 = vpop.xlane.xlu1 %2685 }
 0xf29   : > { %v2687_v8 = vmul.f32 0.03125, %v2686_v7 }
 0xf2b   : > { %v2688_v9 = vadd.f32 1e-05, %v2687_v8 }
 0xf2d   : > { %5543 = vrsqrt.f32 %v2688_v9 }
 0xf37   : > { %v5544_v10 = vpop.eup %5543 }
 0xf38   : > { %v2690_v12 = vmul.f32 %v5544_v10, %v2682_v0 }
 0xf3a   : > { %v2695_v16 = vmul.f32 %v4586_v11, %v2690_v12 }
 0xf3c   : > { %v6321_v18 = vadd.f32 %v4587_v13, %v2695_v16 }
 0xf3e   : > { %v2701_v20 = vpack.c.bf16 %v6321_v18, %v6321_v18 }
 0xf40   : > { %5125 = vmatmul.mubr.msk.bf16.vlgmr.msra.gmra.mrb[60].mxu0 %vm1143_vm0, %v2701_v20  ;;  %5141 = vmatmul.mubr.msk.bf16.vlgmr.msra.gmra.mrb[36].mxu1 %vm1143_vm0, %v2701_v20 }
 0xf41   : > { %5129 = vmatpush3.bf16.msra.mxu0 %v5487_v19  ;;  %5132 = vmatprep.mubr.msk.bf16.mxu0 %vm5648_vm1, %v5647_v17 }
 0xf42   : > { %5130 = vmatprep.subr.bf16.mxu0 %v5647_v17  ;;  %5152 = vmatprep.mubr.msk.bf16.mxu1 %vm5648_vm1, %v5647_v17 }
 0xf45   : > { %5131 = vmatpush3.bf16.msra.mxu0 %v5488_v23 }
 0xf46   : > { %5144 = vmatprep.subr.bf16.mxu0 %v5647_v17 }
 0xf48   : > { %5133 = vmatmul.mubr.msk.bf16.vlgmr.msra.gmra.mrb[64].mxu0 %vm1143_vm0, %v2701_v20 }
 0xf49   : > { %5146 = vmatprep.mubr.msk.bf16.mxu0 %vm5648_vm1, %v5647_v17 }
0x1013   : > { %v2762_v24 = vpop.f32.mrb[60].mxu0  ;;  %v2885_v21 = vpop.f32.mrb[36].mxu1 }
0x1014   : > { %v5126_v26 = vpop.f32.mrb[61].mxu0  ;;  %v5142_v27 = vpop.f32.mrb[37].mxu1  ;;  %v2886_v38 = vadd.f32 %v4611_v31, %v2885_v21  ;;  %v2763_v42 = vadd.f32 %v4593_v34, %v2762_v24 }
0x1015   : > { %v2765_v28 = vpop.f32.mrb[62].mxu0  ;;  %v2888_v29 = vpop.f32.mrb[38].mxu1 }
0x1016   : > { %v5127_v35 = vpop.f32.mrb[63].mxu0  ;;  %v5143_v30 = vpop.f32.mrb[39].mxu1  ;;  %v6351_v45 = vpack.c.bf16 %v2886_v38, %v2886_v38  ;;  %v2892_v47 = vpack.c.bf16 %v2763_v42, %v2763_v42 }
0x1018   : > { %v3013_v48 = vmul.bf16 %v6351_v45, %v6026_v15  ;;  %v2893_v49 = vmul.bf16 %v2892_v47, %v6024_v14  ;;  %v2955_v50 = vmul.bf16 %v2892_v47, %v6026_v15  ;;  %v3106_v52 = vmul.bf16 %v2892_v47, %v6037_v22 }
0x1019   : > { %v3212_v53 = vmul.bf16 %v2892_v47, %v6047_v25 }
0x101a   : > { %v3018_v51 = vsel %vm1437_vm12, %v3013_v48, 0 }
0x101b   : > { %v2823_v37 = vpop.f32.mrb[64].mxu0 }
0x101c   : > { %v2824_v39 = vadd.f32 %v4602_v32, %v2823_v37  ;;  %v5134_v40 = vpop.f32.mrb[65].mxu0 }
0x101d   : > { %v2826_v41 = vpop.f32.mrb[66].mxu0 }
0x101e   : > { %v2829_v43 = vpack.c.bf16 %v2824_v39, %v2824_v39  ;;  %v5135_v44 = vpop.f32.mrb[67].mxu0 }
0x1020   : > { %v2898_v46 = vsel %vm1143_vm0, %v2829_v43, 0 }
0x1021   : > { %5145 = vmatpush3.bf16.xpose.msra.mxu0 %v2898_v46  ;;  %5151 = vmatpush3.bf16.xpose.msra.mxu1 %v2898_v46 }
0x1022   : > { %5156 = vmatprep.subr.bf16.mxu0 %v5647_v17  ;;  %5168 = vmatprep.subr.bf16.mxu1 %v5647_v17 }
0x1028   : > { %5147 = vmatmul.mubr.msk.bf16.vlgmr.msra.gmra.mrb[68].mxu0 %vm1143_vm0, %v2893_v49  ;;  %5153 = vmatmul.mubr.msk.bf16.vlgmr.msra.gmra.mrb[40].mxu1 %vm1143_vm0, %v2955_v50 }
0x1029   : > { %5157 = vmatpush3.bf16.msra.mxu0 %v3018_v51  ;;  %5169 = vmatpush3.bf16.xpose.msra.mxu1 %v2898_v46  ;;  %v2954_v51 = vmul.bf16 %v6351_v45, %v6024_v14 }
0x102a   : > { %5170 = vmatprep.mubr.msk.bf16.mxu1 %vm5648_vm1, %v5647_v17  ;;  %5180 = vmatprep.subr.bf16.mxu1 %v5647_v17 }
0x102b   : > { %5158 = vmatprep.mubr.msk.bf16.mxu0 %vm5648_vm1, %v5647_v17  ;;  %5162 = vmatprep.subr.bf16.mxu0 %v5647_v17 }
0x1030   : > { %5171 = vmatmul.mubr.msk.bf16.vlgmr.msra.gmra.mrb[44].mxu1 %vm1143_vm0, %v3106_v52 }
0x1031   : > { %5181 = vmatpush3.bf16.xpose.msra.mxu1 %v2898_v46  ;;  %5182 = vmatprep.mubr.msk.bf16.mxu1 %vm5648_vm1, %v5647_v17  ;;  %v5491_v46 = vld [vmem:[%s6673_s5 + $0xe0] sm:$0xff]  }
0x1032   : > { %5192 = vmatprep.subr.bf16.mxu1 %v5647_v17 }
0x1038   : > { %5183 = vmatmul.mubr.msk.bf16.vlgmr.msra.gmra.mrb[48].mxu1 %vm1143_vm0, %v3212_v53  ;;  %v3064_v53 = vsel %vm1437_vm12, %v2954_v51, 0 }
0x1039   : > { %5196 = vmatprep.mubr.msk.bf16.mxu1 %vm5648_vm1, %v5647_v17  ;;  %5193 = vmatpush3.bf16.msra.mxu1 %v5491_v46 }
0x103a   : > { %5194 = vmatprep.subr.bf16.mxu1 %v5647_v17 }
0x10fb   : > { %v2934_v33 = vpop.f32.mrb[68].mxu0  ;;  %v2993_v54 = vpop.f32.mrb[40].mxu1 }
0x10fc   : > { %v2940_v55 = vmul.f32 0.35355338, %v2934_v33  ;;  %v2999_v57 = vmul.f32 0.35355338, %v2993_v54  ;;  %v5148_v58 = vpop.f32.mrb[69].mxu0  ;;  %v5154_v59 = vpop.f32.mrb[41].mxu1 }
0x10fd   : > { %v2937_v60 = vpop.f32.mrb[70].mxu0  ;;  %v2996_v61 = vpop.f32.mrb[42].mxu1 }
0x10fe   : > { %v5149_v62 = vpop.f32.mrb[71].mxu0  ;;  %v5155_v63 = vpop.f32.mrb[43].mxu1  ;;  %v3000_v0 = vadd.f32 %v2999_v57, %v6068_v36  ;;  %v2941_v1 = vadd.f32 %v2940_v55, %v6068_v36  ;;  %v3164_v57 = vmul.bf16 %v6351_v45, %v6037_v22 }
0x10ff   : > { %v3270_v63 = vmul.bf16 %v6351_v45, %v6047_v25  ;;  %v5490_v45 = vld [vmem:[%s6673_s5 + $0x108] sm:$0xff]  }
0x1100   : > { %v3001_v3 = vsel %vm1361_vm13, %v3000_v0, -inf  ;;  %v2942_v4 = vsel %vm1361_vm13, %v2941_v1, -inf  ;;  %v3169_v59 = vsel %vm1437_vm12, %v3164_v57, 0 }
0x1101   : > { %3002 = vmax.xlane.f32.xlu0 %v3001_v3  ;;  %2943 = vmax.xlane.f32.xlu1 %v2942_v4 }
0x1103   : > { %v3144_v56 = vpop.f32.mrb[44].mxu1 }
0x1104   : > { %v3150_v5 = vmul.f32 0.35355338, %v3144_v56  ;;  %v5172_v6 = vpop.f32.mrb[45].mxu1  ;;  %v5489_v56 = vld [vmem:[%s6673_s5 + $0x100] sm:$0xff]  }
0x1105   : > { %v3147_v7 = vpop.f32.mrb[46].mxu1  ;;  %v5492_v6 = vld [vmem:[%s6673_s5 + $0xe8] sm:$0xff]  }
0x1106   : > { %v5173_v8 = vpop.f32.mrb[47].mxu1  ;;  %v3151_v9 = vadd.f32 %v3150_v5, %v6068_v36  ;;  %5195 = vmatpush3.bf16.msra.mxu1 %v5492_v6 }
0x1107   : > { %5200 = vmatprep.subr.bf16.mxu1 %v5647_v17 }
0x1108   : > { %v3152_v10 = vsel %vm1361_vm13, %v3151_v9, -inf }
0x1109   : > { %3153 = vmax.xlane.f32.xlu0 %v3152_v10 }
0x110b   : > { %v3250_v11 = vpop.f32.mrb[48].mxu1 }
0x110c   : > { %v3256_v12 = vmul.f32 0.35355338, %v3250_v11  ;;  %v5184_v13 = vpop.f32.mrb[49].mxu1 }
0x110d   : > { %v3253_v16 = vpop.f32.mrb[50].mxu1 }
0x110e   : > { %v5185_v19 = vpop.f32.mrb[51].mxu1  ;;  %v3257_v20 = vadd.f32 %v3256_v12, %v6068_v36  ;;  %v4650_v12 = vld [vmem:[%s6674_s6 + $0x17] ss:$0 sm:$0xff] }
0x1110   : > { %v3258_v23 = vsel %vm1361_vm13, %v3257_v20, -inf }
0x1111   : > { %3259 = vmax.xlane.f32.xlu1 %v3258_v23 }
0x118e   : > { %v3003_v24 = vpop.xlane.xlu0 %3002  ;;  %v2944_v21 = vpop.xlane.xlu1 %2943 }
0x118f   : > { %v3004_v26 = vsub.f32 %v3000_v0, %v3003_v24  ;;  %v2945_v27 = vsub.f32 %v2941_v1, %v2944_v21  ;;  %v3275_v1 = vsel %vm1437_vm12, %v3270_v63, 0  ;;  %v4659_v63 = vld [vmem:[%s6674_s6 + $0x18] ss:$0 sm:$0xff] }
0x1191   : > { %v3005_v28 = vmul.f32 1.442695, %v3004_v26  ;;  %v2946_v29 = vmul.f32 1.442695, %v2945_v27  ;;  %v4628_v27 = vld [vmem:[%s6674_s6 + $0x13] ss:$0 sm:$0xff] }
0x1193   : > { %5545 = vpow2.f32 %v3005_v28 }
0x1194   : > { %5547 = vpow2.f32 %v2946_v29 }
0x1196   : > { %v3154_v35 = vpop.xlane.xlu0 %3153 }
0x1197   : > { %v3155_v30 = vsub.f32 %v3151_v9, %v3154_v35 }
0x1199   : > { %v3156_v31 = vmul.f32 1.442695, %v3155_v30 }
0x119b   : > { %5549 = vpow2.f32 %v3156_v31 }
0x119d   : > { %v5546_v32 = vpop.eup %5545 }
0x119e   : > { %v5548_v34 = vpop.eup %5547  ;;  %v3260_v37 = vpop.xlane.xlu1 %3259  ;;  %v3007_v36 = vsel %vm1361_vm13, %v5546_v32, 0.0 }
0x119f   : > { %v3261_v38 = vsub.f32 %v3257_v20, %v3260_v37  ;;  %3008 = vadd.xlane.f32.xlu0 %v3007_v36  ;;  %v2948_v39 = vsel %vm1361_vm13, %v5548_v34, 0.0 }
0x11a0   : > { %2949 = vadd.xlane.f32.xlu1 %v2948_v39 }
0x11a1   : > { %v3262_v40 = vmul.f32 1.442695, %v3261_v38 }
0x11a3   : > { %5551 = vpow2.f32 %v3262_v40 }
0x11a5   : > { %v5550_v41 = vpop.eup %5549 }
0x11a6   : > { %v3158_v42 = vsel %vm1361_vm13, %v5550_v41, 0.0 }
0x11a7   : > { %3159 = vadd.xlane.f32.xlu0 %v3158_v42 }
0x11ad   : > { %v5552_v43 = vpop.eup %5551 }
0x11ae   : > { %v3264_v44 = vsel %vm1361_vm13, %v5552_v43, 0.0 }
0x11af   : > { %3265 = vadd.xlane.f32.xlu1 %v3264_v44 }
0x122c   : > { %v3009_v47 = vpop.xlane.xlu0 %3008 }
0x122d   : > { %5553 = vrcp.f32 %v3009_v47  ;;  %v2950_v48 = vpop.xlane.xlu1 %2949  ;;  %v4634_v47 = vld [vmem:[%s6674_s6 + $0x14] ss:$0 sm:$0xff] }
0x122e   : > { %5555 = vrcp.f32 %v2950_v48 }
0x1234   : > { %v3160_v33 = vpop.xlane.xlu0 %3159 }
0x1235   : > { %5557 = vrcp.f32 %v3160_v33  ;;  %v5496_v33 = vld [vmem:[%s6673_s5 + $0x118] sm:$0xff]  }
0x1237   : > { %v5554_v49 = vpop.eup %5553 }
0x1238   : > { %v3011_v50 = vmul.f32 %v5554_v49, %v5546_v32  ;;  %v5556_v54 = vpop.eup %5555  ;;  %v4635_v49 = vld [vmem:[%s6674_s6 + $0x15] ss:$0 sm:$0xff] }
0x1239   : > { %v2952_v55 = vmul.f32 %v5556_v54, %v5548_v34  ;;  %v4641_v54 = vld [vmem:[%s6674_s6 + $0x16] ss:$0 sm:$0xff] }
0x123a   : > { %v3012_v52 = vpack.c.bf16 %v3011_v50, %v3011_v50 }
0x123b   : > { %v2953_v58 = vpack.c.bf16 %v2952_v55, %v2952_v55 }
0x123c   : > { %5159 = vmatmul.mubr.msk.bf16.vlgmr.msra.gmra.mrb[72].mxu0 %vm1361_vm13, %v3012_v52  ;;  %v3266_v60 = vpop.xlane.xlu1 %3265  ;;  %v5495_v52 = vld [vmem:[%s6673_s5 + $0x110] sm:$0xff]  }
0x123d   : > { %5163 = vmatpush3.bf16.msra.mxu0 %v3064_v53  ;;  %5164 = vmatprep.mubr.msk.bf16.mxu0 %vm5648_vm1, %v5647_v17  ;;  %5559 = vrcp.f32 %v3266_v60 }
0x123e   : > { %5174 = vmatprep.subr.bf16.mxu0 %v5647_v17 }
0x123f   : > { %v5558_v61 = vpop.eup %5557 }
0x1240   : > { %v3162_v62 = vmul.f32 %v5558_v61, %v5550_v41  ;;  %v5493_v41 = vld [vmem:[%s6673_s5 + $0xf0] sm:$0xff]  }
0x1242   : > { %v3163_v0 = vpack.c.bf16 %v3162_v62, %v3162_v62 }
0x1247   : > { %v5560_v3 = vpop.eup %5559 }
0x1248   : > { %5165 = vmatmul.mubr.msk.bf16.vlgmr.msra.gmra.mrb[72].mxu0 %vm1361_vm13, %v2953_v58  ;;  %v3268_v4 = vmul.f32 %v5560_v3, %v5552_v43 }
0x1249   : > { %5175 = vmatpush3.bf16.msra.mxu0 %v3169_v59  ;;  %5176 = vmatprep.mubr.msk.bf16.mxu0 %vm5648_vm1, %v5647_v17 }
0x124a   : > { %5186 = vmatprep.subr.bf16.mxu0 %v5647_v17  ;;  %v3269_v5 = vpack.c.bf16 %v3268_v4, %v3268_v4 }
0x1254   : > { %5177 = vmatmul.mubr.msk.bf16.vlgmr.msra.gmra.mrb[72].mxu0 %vm1361_vm13, %v3163_v0 }
0x1255   : > { %5187 = vmatpush3.bf16.msra.mxu0 %v3275_v1  ;;  %5188 = vmatprep.mubr.msk.bf16.mxu0 %vm5648_vm1, %v5647_v17 }
0x1256   : > { %5208 = vmatprep.subr.bf16.mxu0 %v5647_v17 }
0x1260   : > { %5189 = vmatmul.mubr.msk.bf16.vlgmr.msra.gmra.mrb[72].mxu0 %vm1361_vm13, %v3269_v5 }
0x1261   : > { %5209 = vmatpush3.bf16.msra.mxu0 %v5489_v56  ;;  %5212 = vmatprep.mubr.msk.bf16.mxu0 %vm5648_vm1, %v5647_v17 }
0x1262   : > { %5210 = vmatprep.subr.bf16.mxu0 %v5647_v17 }
0x1265   : > { %5211 = vmatpush3.bf16.msra.mxu0 %v5490_v45 }
0x1266   : > { %5224 = vmatprep.subr.bf16.mxu0 %v5647_v17 }
0x1268   : > { %5213 = vmatmul.mubr.msk.bf16.vlgmr.msra.gmra.mrb[76].mxu0 %vm1143_vm0, %v6019_v2 }
0x1269   : > { %5226 = vmatprep.mubr.msk.bf16.mxu0 %vm5648_vm1, %v5647_v17 }
0x1333   : > { %v3311_v7 = vpop.f32.mrb[72].mxu0 }
0x1334   : > { %v3318_v8 = vpack.c.bf16 %v3311_v7, %v3311_v7  ;;  %v5190_v9 = vpop.f32.mrb[73].mxu0 }
0x1335   : > { %v3314_v10 = vpop.f32.mrb[74].mxu0 }
0x1336   : > { %v5191_v11 = vpop.f32.mrb[75].mxu0  ;;  %5197 = vmatmul.mubr.msk.bf16.vlgmr.msra.gmra.mrb[52].mxu1 %vm1143_vm0, %v3318_v8 }
0x1337   : > { %5204 = vmatprep.mubr.msk.bf16.mxu1 %vm5648_vm1, %v5647_v17  ;;  %5201 = vmatpush3.bf16.msra.mxu1 %v5493_v41 }
0x1338   : > { %5202 = vmatprep.subr.bf16.mxu1 %v5647_v17 }
0x133b   : > { %v3529_v13 = vpop.f32.mrb[76].mxu0 }
0x133c   : > { %v5214_v16 = vpop.f32.mrb[77].mxu0  ;;  %v3530_v20 = vadd.f32 %v4650_v12, %v3529_v13 }
0x133d   : > { %v3532_v19 = vpop.f32.mrb[78].mxu0 }
0x133e   : > { %v3533_v23 = vadd.f32 %v4650_v12, %v3532_v19  ;;  %v5215_v24 = vpop.f32.mrb[79].mxu0 }
0x1340   : > { %v3536_v21 = vpack.c.bf16 %v3533_v23, %v3530_v20 }
0x1342   : > { %v6441_v26 = vsel %vm1143_vm0, %v3536_v21, 0 }
0x1343   : > { %5225 = vmatpush3.bf16.xpose.msra.mxu0 %v6441_v26 }
0x1344   : > { %5236 = vmatprep.subr.bf16.mxu0 %v5647_v17 }
0x1409   : > { %v3377_v28 = vpop.f32.mrb[52].mxu1 }
0x140a   : > { %v3378_v29 = vadd.f32 %v4628_v27, %v3377_v28  ;;  %v5198_v35 = vpop.f32.mrb[53].mxu1 }
0x140b   : > { %v3380_v30 = vpop.f32.mrb[54].mxu1 }
0x140c   : > { %v5199_v31 = vpop.f32.mrb[55].mxu1  ;;  %v3383_v32 = vadd.f32 %v3378_v29, %v6321_v18  ;;  %v5494_v18 = vld [vmem:[%s6673_s5 + $0xf8] sm:$0xff]  }
0x140d   : > { %5203 = vmatpush3.bf16.msra.mxu1 %v5494_v18 }
0x140e   : > { %v3386_v34 = vsel %vm1143_vm0, %v3383_v32, 0.0  ;;  %5216 = vmatprep.subr.bf16.mxu1 %v5647_v17 }
0x140f   : > { %3387 = vadd.xlane.f32.xlu0 %v3386_v34 }
0x149c   : > { %v3388_v37 = vpop.xlane.xlu0 %3387 }
0x149d   : > { %v3389_v36 = vmul.f32 0.03125, %v3388_v37 }
0x149f   : > { %v3390_v38 = vsub.f32 %v3383_v32, %v3389_v36 }
0x14a1   : > { %v3391_v39 = vmul.f32 %v3390_v38, %v3390_v38 }
0x14a3   : > { %v3392_v40 = vsel %vm1143_vm0, %v3391_v39, 0.0 }
0x14a4   : > { %3393 = vadd.xlane.f32.xlu1 %v3392_v40 }
0x1531   : > { %v3394_v42 = vpop.xlane.xlu1 %3393 }
0x1532   : > { %v3395_v43 = vmul.f32 0.03125, %v3394_v42 }
0x1534   : > { %v3396_v44 = vadd.f32 1e-05, %v3395_v43 }
0x1536   : > { %5561 = vrsqrt.f32 %v3396_v44 }
0x1540   : > { %v5562_v46 = vpop.eup %5561 }
0x1541   : > { %v3398_v48 = vmul.f32 %v5562_v46, %v3390_v38 }
0x1543   : > { %v3403_v50 = vmul.f32 %v4634_v47, %v3398_v48 }
0x1545   : > { %v6465_v51 = vadd.f32 %v4635_v49, %v3403_v50 }
0x1547   : > { %v3409_v53 = vpack.c.bf16 %v6465_v51, %v6465_v51 }
0x1549   : > { %5205 = vmatmul.mubr.msk.bf16.vlgmr.msra.gmra.mrb[56].mxu1 %vm1143_vm0, %v3409_v53 }
0x154a   : > { %5217 = vmatpush3.bf16.msra.mxu1 %v5495_v52  ;;  %5220 = vmatprep.mubr.msk.bf16.mxu1 %vm5648_vm1, %v5647_v17 }
0x154b   : > { %5218 = vmatprep.subr.bf16.mxu1 %v5647_v17 }
0x154e   : > { %5219 = vmatpush3.bf16.msra.mxu1 %v5496_v33 }
0x154f   : > { %5230 = vmatprep.subr.bf16.mxu1 %v5647_v17 }
0x1551   : > { %5221 = vmatmul.mubr.msk.bf16.vlgmr.msra.gmra.mrb[60].mxu1 %vm1143_vm0, %v6019_v2 }
0x1552   : > { %5232 = vmatprep.mubr.msk.bf16.mxu1 %vm5648_vm1, %v5647_v17 }
0x1557   : > { %5231 = vmatpush3.bf16.xpose.msra.mxu1 %v6441_v26 }
0x1558   : > { %5248 = vmatprep.subr.bf16.mxu1 %v5647_v17 }
0x161c   : > { %v3468_v55 = vpop.f32.mrb[56].mxu1 }
0x161d   : > { %v3469_v57 = vadd.f32 %v4641_v54, %v3468_v55  ;;  %v5206_v58 = vpop.f32.mrb[57].mxu1 }
0x161e   : > { %v3471_v59 = vpop.f32.mrb[58].mxu1 }
0x161f   : > { %v3600_v60 = vpack.c.bf16 %v3469_v57, %v3469_v57  ;;  %v5207_v61 = vpop.f32.mrb[59].mxu1 }
0x1621   : > { %v3601_v62 = vmul.bf16 %v3600_v60, %v6024_v14  ;;  %v3662_v2 = vmul.bf16 %v3600_v60, %v6026_v15  ;;  %v3806_v45 = vmul.bf16 %v3600_v60, %v6037_v22  ;;  %v3908_v8 = vmul.bf16 %v3600_v60, %v6047_v25  ;;  %v5497_v60 = vld [vmem:[%s6673_s5 + $0x120] sm:$0xff]  }
0x1623   : > { %5227 = vmatmul.mubr.msk.bf16.vlgmr.msra.gmra.mrb[80].mxu0 %vm1143_vm0, %v3601_v62  ;;  %5233 = vmatmul.mubr.msk.bf16.vlgmr.msra.gmra.mrb[64].mxu1 %vm1143_vm0, %v3662_v2 }
0x1624   : > { %5249 = vmatpush3.bf16.xpose.msra.mxu1 %v6441_v26  ;;  %v3592_v0 = vpop.f32.mrb[60].mxu1  ;;  %5250 = vmatprep.mubr.msk.bf16.mxu1 %vm5648_vm1, %v5647_v17 }
0x1625   : > { %v5222_v1 = vpop.f32.mrb[61].mxu1  ;;  %5260 = vmatprep.subr.bf16.mxu1 %v5647_v17  ;;  %5238 = vmatprep.mubr.msk.bf16.mxu0 %vm5648_vm1, %v5647_v17  ;;  %v3593_v4 = vadd.f32 %v4659_v63, %v3592_v0 }
0x1626   : > { %v3595_v3 = vpop.f32.mrb[62].mxu1 }
0x1627   : > { %v3596_v56 = vadd.f32 %v4659_v63, %v3595_v3  ;;  %v5223_v5 = vpop.f32.mrb[63].mxu1 }
0x1629   : > { %v6503_v6 = vpack.c.bf16 %v3596_v56, %v3593_v4 }
0x162b   : > { %5251 = vmatmul.mubr.msk.bf16.vlgmr.msra.gmra.mrb[68].mxu1 %vm1143_vm0, %v3806_v45  ;;  %v3719_v7 = vmul.bf16 %v6503_v6, %v6026_v15  ;;  %v3661_v1 = vmul.bf16 %v6503_v6, %v6024_v14  ;;  %v3863_v45 = vmul.bf16 %v6503_v6, %v6037_v22 }
0x162c   : > { %5261 = vmatpush3.bf16.xpose.msra.mxu1 %v6441_v26  ;;  %5262 = vmatprep.mubr.msk.bf16.mxu1 %vm5648_vm1, %v5647_v17 }
0x162d   : > { %5237 = vmatpush3.bf16.msra.mxu0 %v3719_v7  ;;  %5272 = vmatprep.subr.bf16.mxu1 %v5647_v17 }
0x162e   : > { %5242 = vmatprep.subr.bf16.mxu0 %v5647_v17 }
0x1633   : > { %5263 = vmatmul.mubr.msk.bf16.vlgmr.msra.gmra.mrb[72].mxu1 %vm1143_vm0, %v3908_v8 }
0x1634   : > { %5276 = vmatprep.mubr.msk.bf16.mxu1 %vm5648_vm1, %v5647_v17  ;;  %5273 = vmatpush3.bf16.msra.mxu1 %v5497_v60  ;;  %v4702_v60 = vld [vmem:[%s6674_s6 + $0x1d] ss:$0 sm:$0xff] }
0x1635   : > { %5274 = vmatprep.subr.bf16.mxu1 %v5647_v17 }
0x16f6   : > { %v3642_v9 = vpop.f32.mrb[80].mxu0  ;;  %v3700_v10 = vpop.f32.mrb[64].mxu1 }
0x16f7   : > { %v3648_v15 = vmul.f32 0.35355338, %v3642_v9  ;;  %v3706_v11 = vmul.f32 0.35355338, %v3700_v10  ;;  %v5228_v12 = vpop.f32.mrb[81].mxu0  ;;  %v5234_v13 = vpop.f32.mrb[65].mxu1  ;;  %v3965_v10 = vmul.bf16 %v6503_v6, %v6047_v25 }
0x16f8   : > { %v3645_v16 = vpop.f32.mrb[82].mxu0  ;;  %v3703_v19 = vpop.f32.mrb[66].mxu1  ;;  %v5498_v25 = vld [vmem:[%s6673_s5 + $0x128] sm:$0xff]  }
0x16f9   : > { %v5229_v20 = vpop.f32.mrb[83].mxu0  ;;  %v5235_v23 = vpop.f32.mrb[67].mxu1  ;;  %v3707_v24 = vsel %vm2074_vm14, %v3706_v11, -inf  ;;  %v3649_v21 = vsel %vm2074_vm14, %v3648_v15, -inf  ;;  %5275 = vmatpush3.bf16.msra.mxu1 %v5498_v25 }
0x16fa   : > { %3708 = vmax.xlane.f32.xlu0 %v3707_v24  ;;  %3650 = vmax.xlane.f32.xlu1 %v3649_v21  ;;  %v4676_v20 = vld [vmem:[%s6674_s6 + $0x19] ss:$0 sm:$0xff] }
0x16fb   : > { %5280 = vmatprep.subr.bf16.mxu1 %v5647_v17 }
0x16fe   : > { %v3844_v26 = vpop.f32.mrb[68].mxu1 }
0x16ff   : > { %v3850_v27 = vmul.f32 0.35355338, %v3844_v26  ;;  %v5252_v28 = vpop.f32.mrb[69].mxu1 }
0x1700   : > { %v3847_v29 = vpop.f32.mrb[70].mxu1 }
0x1701   : > { %v5253_v35 = vpop.f32.mrb[71].mxu1  ;;  %v3851_v30 = vsel %vm2074_vm14, %v3850_v27, -inf }
0x1702   : > { %3852 = vmax.xlane.f32.xlu0 %v3851_v30 }
0x1706   : > { %v3946_v31 = vpop.f32.mrb[72].mxu1 }
0x1707   : > { %v3952_v32 = vmul.f32 0.35355338, %v3946_v31  ;;  %v5264_v34 = vpop.f32.mrb[73].mxu1 }
0x1708   : > { %v3949_v37 = vpop.f32.mrb[74].mxu1 }
0x1709   : > { %v5265_v36 = vpop.f32.mrb[75].mxu1  ;;  %v3953_v38 = vsel %vm2074_vm14, %v3952_v32, -inf  ;;  %v5499_v37 = vld [vmem:[%s6673_s5 + $0x130] sm:$0xff]  }
0x170a   : > { %3954 = vmax.xlane.f32.xlu1 %v3953_v38  ;;  %v5500_v36 = vld [vmem:[%s6673_s5 + $0x138] sm:$0xff]   ;;  %v5502_v38 = vld [vmem:[%s6673_s5 + $0x148] sm:$0xff]  }
0x1787   : > { %v3709_v39 = vpop.xlane.xlu0 %3708  ;;  %v3651_v40 = vpop.xlane.xlu1 %3650 }
0x1788   : > { %v3710_v41 = vsub.f32 %v3706_v11, %v3709_v39  ;;  %v3652_v18 = vsub.f32 %v3648_v15, %v3651_v40 }
0x178a   : > { %v3711_v42 = vmul.f32 1.442695, %v3710_v41  ;;  %v3653_v43 = vmul.f32 1.442695, %v3652_v18 }
0x178c   : > { %5563 = vpow2.f32 %v3711_v42  ;;  %v4682_v42 = vld [vmem:[%s6674_s6 + $0x1a] ss:$0 sm:$0xff] }
0x178d   : > { %5565 = vpow2.f32 %v3653_v43 }
0x178f   : > { %v3853_v44 = vpop.xlane.xlu0 %3852 }
0x1790   : > { %v3854_v46 = vsub.f32 %v3850_v27, %v3853_v44  ;;  %v4683_v44 = vld [vmem:[%s6674_s6 + $0x1b] ss:$0 sm:$0xff] }
0x1792   : > { %v3855_v47 = vmul.f32 1.442695, %v3854_v46 }
0x1794   : > { %5567 = vpow2.f32 %v3855_v47 }
0x1796   : > { %v5564_v48 = vpop.eup %5563 }
0x1797   : > { %v5566_v49 = vpop.eup %5565  ;;  %v3955_v50 = vpop.xlane.xlu1 %3954  ;;  %v3713_v52 = vsel %vm2074_vm14, %v5564_v48, 0.0 }
0x1798   : > { %v3956_v53 = vsub.f32 %v3952_v32, %v3955_v50  ;;  %3714 = vadd.xlane.f32.xlu0 %v3713_v52  ;;  %v3655_v33 = vsel %vm2074_vm14, %v5566_v49, 0.0  ;;  %v5504_v50 = vld [vmem:[%s6673_s5 + $0x158] sm:$0xff]  }
0x1799   : > { %3656 = vadd.xlane.f32.xlu1 %v3655_v33  ;;  %v4689_v52 = vld [vmem:[%s6674_s6 + $0x1c] ss:$0 sm:$0xff] }
0x179a   : > { %v3957_v54 = vmul.f32 1.442695, %v3956_v53 }
0x179c   : > { %5569 = vpow2.f32 %v3957_v54 }
0x179e   : > { %v5568_v55 = vpop.eup %5567 }
0x179f   : > { %v3857_v57 = vsel %vm2074_vm14, %v5568_v55, 0.0 }
0x17a0   : > { %3858 = vadd.xlane.f32.xlu0 %v3857_v57 }
0x17a6   : > { %v5570_v58 = vpop.eup %5569 }
0x17a7   : > { %v3959_v59 = vsel %vm2074_vm14, %v5570_v58, 0.0 }
0x17a8   : > { %3960 = vadd.xlane.f32.xlu1 %v3959_v59 }
0x1825   : > { %v3715_v61 = vpop.xlane.xlu0 %3714 }
0x1826   : > { %5571 = vrcp.f32 %v3715_v61  ;;  %v3657_v62 = vpop.xlane.xlu1 %3656 }
0x1827   : > { %5573 = vrcp.f32 %v3657_v62 }
0x182d   : > { %v3859_v3 = vpop.xlane.xlu0 %3858 }
0x182e   : > { %5575 = vrcp.f32 %v3859_v3 }
0x1830   : > { %v5572_v2 = vpop.eup %5571 }
0x1831   : > { %v3717_v63 = vmul.f32 %v5572_v2, %v5564_v48  ;;  %v5574_v4 = vpop.eup %5573 }
0x1832   : > { %v3659_v56 = vmul.f32 %v5574_v4, %v5566_v49  ;;  %v5503_v49 = vld [vmem:[%s6673_s5 + $0x150] sm:$0xff]  }
0x1833   : > { %v3718_v0 = vpack.c.bf16 %v3717_v63, %v3717_v63 }
0x1834   : > { %v3660_v5 = vpack.c.bf16 %v3659_v56, %v3659_v56 }
0x1835   : > { %5239 = vmatmul.mubr.msk.bf16.vlgmr.msra.gmra.mrb[84].mxu0 %vm2074_vm14, %v3718_v0  ;;  %v3961_v14 = vpop.xlane.xlu1 %3960 }
0x1836   : > { %5243 = vmatpush3.bf16.msra.mxu0 %v3661_v1  ;;  %5244 = vmatprep.mubr.msk.bf16.mxu0 %vm5648_vm1, %v5647_v17  ;;  %5577 = vrcp.f32 %v3961_v14 }
0x1837   : > { %5254 = vmatprep.subr.bf16.mxu0 %v5647_v17 }
0x1838   : > { %v5576_v7 = vpop.eup %5575 }
0x1839   : > { %v3861_v8 = vmul.f32 %v5576_v7, %v5568_v55  ;;  %v5505_v7 = vld [vmem:[%s6675_s7] sm:$0xff]  }
0x183b   : > { %v3862_v9 = vpack.c.bf16 %v3861_v8, %v3861_v8  ;;  %v5506_v8 = vld [vmem:[%s6675_s7 + $0x8] sm:$0xff]  }
0x1840   : > { %v5578_v22 = vpop.eup %5577 }
0x1841   : > { %5245 = vmatmul.mubr.msk.bf16.vlgmr.msra.gmra.mrb[84].mxu0 %vm2074_vm14, %v3660_v5  ;;  %v3963_v15 = vmul.f32 %v5578_v22, %v5570_v58 }
0x1842   : > { %5255 = vmatpush3.bf16.msra.mxu0 %v3863_v45  ;;  %5256 = vmatprep.mubr.msk.bf16.mxu0 %vm5648_vm1, %v5647_v17 }
0x1843   : > { %5266 = vmatprep.subr.bf16.mxu0 %v5647_v17  ;;  %v3964_v11 = vpack.c.bf16 %v3963_v15, %v3963_v15 }
0x184d   : > { %5257 = vmatmul.mubr.msk.bf16.vlgmr.msra.gmra.mrb[84].mxu0 %vm2074_vm14, %v3862_v9 }
0x184e   : > { %5267 = vmatpush3.bf16.msra.mxu0 %v3965_v10  ;;  %5268 = vmatprep.mubr.msk.bf16.mxu0 %vm5648_vm1, %v5647_v17 }
0x184f   : > { %5288 = vmatprep.subr.bf16.mxu0 %v5647_v17 }
0x1859   : > { %5269 = vmatmul.mubr.msk.bf16.vlgmr.msra.gmra.mrb[84].mxu0 %vm2074_vm14, %v3964_v11  ;;  %v4710_v11 = vld [vmem:[%s6674_s6 + $0x1e] ss:$0 sm:$0xff] }
0x185a   : > { %5296 = vmatprep.mubr.msk.bf16.mxu0 %vm5648_vm1, %v5647_v17 }
0x192c   : > { %v4003_v6 = vpop.f32.mrb[84].mxu0 }
0x192d   : > { %v4010_v12 = vpack.c.bf16 %v4003_v6, %v4003_v6  ;;  %v5270_v13 = vpop.f32.mrb[85].mxu0  ;;  %v4711_v6 = vld [vmem:[%s6674_s6 + $0x1f] ss:$0 sm:$0xff] }
0x192e   : > { %v4006_v16 = vpop.f32.mrb[86].mxu0 }
0x192f   : > { %v5271_v19 = vpop.f32.mrb[87].mxu0  ;;  %5277 = vmatmul.mubr.msk.bf16.vlgmr.msra.gmra.mrb[76].mxu1 %vm1143_vm0, %v4010_v12 }
0x1930   : > { %5284 = vmatprep.mubr.msk.bf16.mxu1 %vm5648_vm1, %v5647_v17  ;;  %5281 = vmatpush3.bf16.msra.mxu1 %v5499_v37 }
0x1931   : > { %5282 = vmatprep.subr.bf16.mxu1 %v5647_v17 }
0x1934   : > { %5283 = vmatpush3.bf16.msra.mxu1 %v5500_v36 }
0x1935   : > { %5300 = vmatprep.subr.bf16.mxu1 %v5647_v17 }
0x1a02   : > { %v4069_v23 = vpop.f32.mrb[76].mxu1 }
0x1a03   : > { %v4070_v24 = vadd.f32 %v4676_v20, %v4069_v23  ;;  %v5278_v21 = vpop.f32.mrb[77].mxu1 }
0x1a04   : > { %v4072_v26 = vpop.f32.mrb[78].mxu1 }
0x1a05   : > { %v5279_v27 = vpop.f32.mrb[79].mxu1  ;;  %v4075_v28 = vadd.f32 %v4070_v24, %v6465_v51  ;;  %v5501_v51 = vld [vmem:[%s6673_s5 + $0x140] sm:$0xff]  }
0x1a06   : > { %5289 = vmatpush3.bf16.msra.mxu0 %v5501_v51 }
0x1a07   : > { %v4078_v29 = vsel %vm1143_vm0, %v4075_v28, 0.0  ;;  %5290 = vmatprep.subr.bf16.mxu0 %v5647_v17 }
0x1a08   : > { %4079 = vadd.xlane.f32.xlu0 %v4078_v29 }
0x1a0a   : > { %5291 = vmatpush3.bf16.msra.mxu0 %v5502_v38 }
0x1a0b   : > { %5292 = vmatprep.subr.bf16.mxu0 %v5647_v17 }
0x1a0e   : > { %5293 = vmatpush3.bf16.msra.mxu0 %v5503_v49 }
0x1a0f   : > { %5294 = vmatprep.subr.bf16.mxu0 %v5647_v17 }
0x1a12   : > { %5295 = vmatpush3.bf16.msra.mxu0 %v5504_v50 }
0x1a95   : > { %v4080_v35 = vpop.xlane.xlu0 %4079 }
0x1a96   : > { %v4081_v30 = vmul.f32 0.03125, %v4080_v35 }
0x1a98   : > { %v4082_v31 = vsub.f32 %v4075_v28, %v4081_v30 }
0x1a9a   : > { %v4083_v32 = vmul.f32 %v4082_v31, %v4082_v31 }
0x1a9c   : > { %v4084_v34 = vsel %vm1143_vm0, %v4083_v32, 0.0 }
0x1a9d   : > { %4085 = vadd.xlane.f32.xlu1 %v4084_v34 }
0x1b2a   : > { %v4086_v39 = vpop.xlane.xlu1 %4085 }
0x1b2b   : > { %v4087_v40 = vmul.f32 0.03125, %v4086_v39 }
0x1b2d   : > { %v4088_v41 = vadd.f32 1e-05, %v4087_v40 }
0x1b2f   : > { %5579 = vrsqrt.f32 %v4088_v41 }
0x1b39   : > { %v5580_v18 = vpop.eup %5579 }
0x1b3a   : > { %v4090_v43 = vmul.f32 %v5580_v18, %v4082_v31 }
0x1b3c   : > { %v4095_v46 = vmul.f32 %v4682_v42, %v4090_v43 }
0x1b3e   : > { %v4100_v47 = vadd.f32 %v4683_v44, %v4095_v46 }
0x1b40   : > { %v4101_v48 = vpack.c.bf16 %v4100_v47, %v4100_v47 }
0x1b42   : > { %5285 = vmatmul.mubr.msk.bf16.vlgmr.msra.gmra.mrb[80].mxu1 %vm1143_vm0, %v4101_v48 }
0x1b43   : > { %5304 = vmatprep.mubr.msk.bf16.mxu1 %vm5648_vm1, %v5647_v17  ;;  %5301 = vmatpush3.bf16.msra.mxu1 %v5505_v7 }
0x1b44   : > { %5302 = vmatprep.subr.bf16.mxu1 %v5647_v17  ;;  %v4712_v17 = vld [vmem:[%s6676_s8] ss:$0 sm:$0xff] }
0x1b47   : > { %5303 = vmatpush3.bf16.msra.mxu1 %v5506_v8 }
0x1c15   : > { %v4160_v53 = vpop.f32.mrb[80].mxu1 }
0x1c16   : > { %v4161_v33 = vadd.f32 %v4689_v52, %v4160_v53  ;;  %v5286_v54 = vpop.f32.mrb[81].mxu1 }
0x1c17   : > { %v4163_v55 = vpop.f32.mrb[82].mxu1 }
0x1c18   : > { %v4166_v57 = vmax.f32 %v4161_v33, 0.0  ;;  %v5287_v58 = vpop.f32.mrb[83].mxu1 }
0x1c1a   : > { %v4167_v59 = vpack.c.bf16 %v4166_v57, %v4166_v57 }
0x1c1c   : > { %5297 = vmatmul.mubr.msk.bf16.vlgmr.msra.gmra.mrb[88].mxu0 %vm2631_vm15, %v4167_v59 }
0x1cef   : > { %v4242_v61 = vpop.f32.mrb[88].mxu0 }
0x1cf0   : > { %v4243_v62 = vadd.f32 %v4702_v60, %v4242_v61  ;;  %v5298_v2 = vpop.f32.mrb[89].mxu0 }
0x1cf1   : > { %v4245_v63 = vpop.f32.mrb[90].mxu0 }
0x1cf2   : > { %v5299_v0 = vpop.f32.mrb[91].mxu0  ;;  %v4248_v1 = vadd.f32 %v4243_v62, %v4100_v47 }
0x1cf4   : > { %v4251_v3 = vsel %vm1143_vm0, %v4248_v1, 0.0 }
0x1cf5   : > { %4252 = vadd.xlane.f32.xlu0 %v4251_v3 }
0x1d82   : > { %v4253_v4 = vpop.xlane.xlu0 %4252 }
0x1d83   : > { %v4254_v56 = vmul.f32 0.03125, %v4253_v4 }
0x1d85   : > { %v4255_v5 = vsub.f32 %v4248_v1, %v4254_v56 }
0x1d87   : > { %v4256_v45 = vmul.f32 %v4255_v5, %v4255_v5 }
0x1d89   : > { %v4257_v14 = vsel %vm1143_vm0, %v4256_v45, 0.0 }
0x1d8a   : > { %4258 = vadd.xlane.f32.xlu1 %v4257_v14 }
0x1e17   : > { %v4259_v9 = vpop.xlane.xlu1 %4258 }
0x1e18   : > { %v4260_v10 = vmul.f32 0.03125, %v4259_v9 }
0x1e1a   : > { %v4261_v22 = vadd.f32 1e-05, %v4260_v10 }
0x1e1c   : > { %5581 = vrsqrt.f32 %v4261_v22 }
0x1e26   : > { %v5582_v15 = vpop.eup %5581 }
0x1e27   : > { %v4263_v25 = vmul.f32 %v5582_v15, %v4255_v5 }
0x1e29   : > { %v4268_v12 = vmul.f32 %v4710_v11, %v4263_v25 }
0x1e2b   : > { %v4273_v13 = vadd.f32 %v4711_v6, %v4268_v12 }
0x1e2d   : > { %v4274_v16 = vpack.c.bf16 %v4273_v13, %v4273_v13 }
0x1e2f   : > { %5305 = vmatmul.mubr.msk.bf16.vlgmr.msra.gmra.mrb[84].mxu1 %vm1143_vm0, %v4274_v16 }
0x1f02   : > { %v4335_v19 = vpop.f32.mrb[84].mxu1 }
0x1f03   : > { %v4336_v20 = vadd.f32 %v4712_v17, %v4335_v19  ;;  %v5306_v23 = vpop.f32.mrb[85].mxu1 }
0x1f04   : > { %v4338_v24 = vpop.f32.mrb[86].mxu1 }
0x1f05   : > { %4341 = vst [vmem:[%s351_s21] sm:$0xff] %v4336_v20  ;;  %v5307_v21 = vpop.f32.mrb[87].mxu1 }
0x1f06   : > { %5596 = shalt.err (!%p5593_p3)
}
0x1f07   : > { %s5597_s29 = scalar_lea.hbm %s6626_s23, 128  ;;  %s5601_s21 = scalar_lea.hbm %s6677_s9, 256 }
0x1f08   : > { %p5598_p4 = scmp.ne.s32.totalorder %s6626_s23, %s5597_s29  ;;  %p5602_p9 = scmp.lt.u32.totalorder %s6626_s23, %s6677_s9 }
0x1f09   : > { %p5603_p10 = scmp.lt.u32.totalorder %s5601_s21, %s5597_s29  ;;  %p5605_p12 = scmp.lt.u32.totalorder %s5597_s29, %s6626_s23 }
0x1f0a   : > { %p5599_p7 = pnand %p5598_p4, %p5738_p5 }
0x1f0b   : > { %p5604_p11 = por %p5603_p10, %p5602_p9 }
0x1f0c   : > { %p5600_p8 = pneg %p5599_p7 }
0x1f0d   : > { %p5606_p13 = por %p5605_p12, %p5604_p11 }
0x1f0f   : > { %p5607_p0 = pnand %p5606_p13, %p5600_p8 }
0x1f11   : > { %5610 = shalt.err (!%p5607_p0)
}
0x1f12   : > { %5356 = dma.vmem_to_hbm [thread:$0]  (%p5738_p5), %s6628_s16, 128, %s6626_s23, %s4343_s25  }
0x1f13 PF: > { %p5362_p1 = scmp.ge.s32.totalorder %s5645_s12, 2  ;;  %s4368_s13 = sand.u32 1, %s5633_s30  }
0x1f14   : > { %s4369_s27 = scalar_lea.sflag [#allocation3], %s4368_s13 }
0x1f15   : > { %p5359_p2 = pnand %p5362_p1, %p5742_p6 }
0x1f17   : > { %5628 = dma.done.wait (!%p5359_p2), %s4369_s27, 128  }
0x1f18   : > { %5630 = vsyncadd (!%p5359_p2), %s4369_s27, 4294967168  ;;  %p19_p3 = scmp.ge.s32.totalorder %s5725_s15, 4   ;;  %s6680_s30 = smov %s5637_s10 }
0x1f19   : > { %s6681_s10 = smov %s5641_s11  ;;  %s6682_s11 = smov %s5736_s18 }
0x1f1a   : > { %s6683_s12 = smov %s5725_s15  ;;  %21 = sbr.rel (!%p19_p3) target bundleno = 3 (0x3), region = 99 }
0x1f21   :  { %4374 = vsyncpa [#allocation3], 1 }
0x1f22   :  { %4376 = vsyncpa [#allocation3 + $0x1], 1 }

</bundles_post_ra>
